<compile_context>
chip_gen: v7x
topology: tpu7x:2x2x1
jax: 0.10.0
libtpu: 0.0.40
codegen_flags: <defaults>
</compile_context>

<pallas_src>
import functools
import math

import jax
import jax.numpy as jnp
from jax.experimental import pallas as pl
from jax.experimental.pallas import tpu as pltpu


# ----------------------------------------------------------------------------
# In-kernel math helpers (traced inside the kernels)
# ----------------------------------------------------------------------------
_SQRT_HALF = 0.7071067811865476


def _erf_poly(x):
    # Abramowitz & Stegun 7.1.26 rational approximation, max abs error 1.5e-7.
    a1, a2, a3, a4, a5 = 0.254829592, -0.284496736, 1.421413741, -1.453152027, 1.061405429
    p = 0.3275911
    sgn = jnp.where(x >= 0.0, 1.0, -1.0)
    z = jnp.abs(x)
    t = 1.0 / (1.0 + p * z)
    poly = ((((a5 * t + a4) * t + a3) * t + a2) * t + a1) * t
    return sgn * (1.0 - poly * jnp.exp(-z * z))


def _gelu_exact(x):
    return 0.5 * x * (1.0 + _erf_poly(x * _SQRT_HALF))


def _layernorm(h, g, b, eps):
    mu = jnp.mean(h, axis=-1, keepdims=True)
    var = jnp.mean((h - mu) * (h - mu), axis=-1, keepdims=True)
    return (h - mu) * jax.lax.rsqrt(var + eps) * g + b


# ----------------------------------------------------------------------------
# Fused transformer encoder stack: one pallas_call, grid = (num_layers,)
# ----------------------------------------------------------------------------
def _encoder_stack_kernel(x0_ref, bias_ref, wqkv_ref, bqkv_ref, wo_ref, bo_ref,
                          ln1g_ref, ln1b_ref, w1_ref, b1_ref, w2_ref, b2_ref,
                          ln2g_ref, ln2b_ref, out_ref, *, heads, eps):
    layer = pl.program_id(0)

    # Residual stream lives in out_ref (constant output block index across the
    # grid -> resident in VMEM).  Initialize it from the embedded patches once.
    @pl.when(layer == 0)
    def _():
        out_ref[...] = x0_ref[...]

    M, D = out_ref.shape
    dh = D // heads
    scale = 1.0 / math.sqrt(dh)

    x = out_ref[...]                                             # (M, D) f32

    # ---- fused QKV projection: one (M,D)@(D,3D) bf16 MXU pass, f32 accumulate
    qkv = jnp.dot(x.astype(jnp.bfloat16), wqkv_ref[...],
                  preferred_element_type=jnp.float32) + bqkv_ref[...]    # (M, 3D)

    # ---- multi-head self-attention over the flattened (batch*seq) rows.
    # bias_ref holds 0 for same-batch (q,k) pairs, -1e30 for cross-batch pairs.
    # Heads are sliced from the QKV columns in-kernel (no XLA-level transposes);
    # the head-concat + output projection is folded into a per-head accumulation
    # against the matching row-slice of the output-projection weight.
    attn_bias = bias_ref[...]                                    # (M, M) f32
    wo = wo_ref[...]                                             # (D, D) bf16
    attn_proj = bo_ref[...]                                      # (1, D) -> broadcasts
    for h in range(heads):
        c0 = h * dh
        q = qkv[:, c0:c0 + dh]                                   # (M, dh) f32
        k = qkv[:, D + c0:D + c0 + dh]
        v = qkv[:, 2 * D + c0:2 * D + c0 + dh]
        s = jnp.dot(q, k.T, preferred_element_type=jnp.float32) * scale + attn_bias
        s = s - jnp.max(s, axis=-1, keepdims=True)
        p = jnp.exp(s)
        p = p * pl.reciprocal(jnp.sum(p, axis=-1, keepdims=True), approx=True)
        o = jnp.dot(p, v, preferred_element_type=jnp.float32)    # (M, dh)
        attn_proj = attn_proj + jnp.dot(o.astype(jnp.bfloat16), wo[c0:c0 + dh, :],
                                        preferred_element_type=jnp.float32)

    # ---- post-norm: x = LN1(x + MHA(x))
    x1 = _layernorm(x + attn_proj, ln1g_ref[...], ln1b_ref[...], eps)

    # ---- feed-forward: Linear -> GELU -> Linear; x = LN2(x + FFN(x))
    hg = _gelu_exact(jnp.dot(x1.astype(jnp.bfloat16), w1_ref[...],
                             preferred_element_type=jnp.float32) + b1_ref[...])
    ffn = jnp.dot(hg.astype(jnp.bfloat16), w2_ref[...],
                  preferred_element_type=jnp.float32) + b2_ref[...]
    out_ref[...] = _layernorm(x1 + ffn, ln2g_ref[...], ln2b_ref[...], eps)


def transformer_stack(x, sp, *, seq, n_heads):
    """Run the full stacked encoder. x: (M, D) with M = batch * seq."""
    M, D = x.shape
    L = sp["wqkv"].shape[0]
    F = sp["w1"].shape[2]

    # Additive cross-batch mask (constant; built once in XLA, resident in VMEM).
    ids = jnp.arange(M) // seq
    attn_bias = jnp.where(ids[:, None] == ids[None, :], 0.0, -1e30).astype(jnp.float32)

    def per_layer(r, c):
        return pl.BlockSpec((None, r, c), lambda l: (l, 0, 0))

    def resident(r, c):
        return pl.BlockSpec((r, c), lambda l: (0, 0))

    return pl.pallas_call(
        functools.partial(_encoder_stack_kernel, heads=n_heads, eps=1e-5),
        out_shape=jax.ShapeDtypeStruct((M, D), jnp.float32),
        grid=(L,),
        in_specs=[
            resident(M, D),          # x0 (read only at layer 0)
            resident(M, M),          # additive attention bias (batch mask)
            per_layer(D, 3 * D),     # wqkv  (bf16)
            per_layer(1, 3 * D),     # bqkv
            per_layer(D, D),         # wo    (bf16)
            per_layer(1, D),         # bo
            per_layer(1, D),         # ln1_g
            per_layer(1, D),         # ln1_b
            per_layer(D, F),         # w1    (bf16)
            per_layer(1, F),         # b1
            per_layer(F, D),         # w2    (bf16)
            per_layer(1, D),         # b2
            per_layer(1, D),         # ln2_g
            per_layer(1, D),         # ln2_b
        ],
        out_specs=resident(M, D),
        compiler_params=pltpu.CompilerParams(
            # The layer axis carries the residual stream -> sequential.
            dimension_semantics=("arbitrary",),
        ),
    )(x, attn_bias,
      sp["wqkv"], sp["bqkv"], sp["wo"], sp["bo"], sp["ln1_g"], sp["ln1_b"],
      sp["w1"], sp["b1"], sp["w2"], sp["b2"], sp["ln2_g"], sp["ln2_b"])


# ----------------------------------------------------------------------------
# Small fused kernels (whole-array, single invocation)
# ----------------------------------------------------------------------------
def _patch_proj_kernel(x_ref, w_ref, b_ref, o_ref):
    o_ref[...] = jnp.dot(x_ref[...].astype(jnp.bfloat16), w_ref[...],
                         preferred_element_type=jnp.float32) + b_ref[...]


def _cls_head_kernel(x_ref, g_ref, b_ref, w_ref, wb_ref, o_ref, *, eps):
    # Final encoder LayerNorm (eps=1e-6) + mlp_head, applied to the cls rows only
    # (LayerNorm is per-token, so this equals norming the full sequence first).
    xn = _layernorm(x_ref[...], g_ref[...], b_ref[...], eps)
    o_ref[...] = jnp.dot(xn, w_ref[...], preferred_element_type=jnp.float32) + wb_ref[...]


def _joystick_kernel(x_ref, w1_ref, b1_ref, w2_ref, b2_ref, o_ref):
    # Linear -> (folded eval-mode BN) -> ReLU, twice.
    h = jnp.dot(x_ref[...], w1_ref[...], preferred_element_type=jnp.float32) + b1_ref[...]
    h = jnp.maximum(h, 0.0)
    h = jnp.dot(h, w2_ref[...], preferred_element_type=jnp.float32) + b2_ref[...]
    o_ref[...] = jnp.maximum(h, 0.0)


def _fold_bn_into_linear(w, b, bn, eps=1e-5):
    # Eval-mode BatchNorm1d after a Linear is affine -> fold into (W, b). Exact.
    s = bn["gamma"] * jax.lax.rsqrt(bn["var"] + eps)
    return w * s[None, :], (b - bn["mean"]) * s + bn["beta"]


# ----------------------------------------------------------------------------
# JAX glue: patch extraction (layout only) + full forward
# ----------------------------------------------------------------------------
def patchify(img, patch_size):
    """(B,C,H,W) -> (B, nP, p*p*C); per-patch feature order (row, col, channel),
    matching torch's unfold(2).unfold(3).reshape.movedim(1,-1).flatten(-3)."""
    B, C, H, W = img.shape
    p = patch_size
    nH, nW = H // p, W // p
    x = img.reshape(B, C, nH, p, nW, p)
    x = x.transpose(0, 2, 4, 3, 5, 1)            # (B, nH, nW, pr, pc, C)
    return x.reshape(B, nH * nW, p * p * C)


def btsn_forward(params, img_batch, joystick_batch, *, patch_size, n_heads):
    B = img_batch.shape[0]
    D = params["patch_proj_w"].shape[1]

    # --- patch embedding ---
    patches = patchify(img_batch, patch_size)                    # (B, nP, p*p*C)
    nP = patches.shape[1]
    x = pl.pallas_call(
        _patch_proj_kernel,
        out_shape=jax.ShapeDtypeStruct((B * nP, D), jnp.float32),
    )(patches.reshape(B * nP, -1), params["patch_proj_w"], params["patch_proj_b"])
    x = x.reshape(B, nP, D)

    # --- prepend cls token, add positional embeddings (tiny; JAX glue) ---
    cls = jnp.broadcast_to(params["cls_token"], (B, 1, D))
    x = jnp.concatenate([cls, x], axis=1) + params["pos_embed"]  # (B, S, D)
    S = nP + 1

    # --- 6 post-norm transformer encoder layers: ONE fused pallas_call ---
    x = transformer_stack(x.reshape(B * S, D), params["stack"], seq=S, n_heads=n_heads)

    # --- final LayerNorm (eps=1e-6) + cls head ---
    cls_tok = x.reshape(B, S, D)[:, 0]                           # (B, D)
    out_size = params["head_w"].shape[1]
    cls_out = pl.pallas_call(
        functools.partial(_cls_head_kernel, eps=1e-6),
        out_shape=jax.ShapeDtypeStruct((B, out_size), jnp.float32),
    )(cls_tok, params["final_ln_g"], params["final_ln_b"],
      params["head_w"], params["head_b"])

    # --- joystick encoder: Linear -> BN -> ReLU -> Linear -> BN -> ReLU ---
    w1, b1 = _fold_bn_into_linear(params["joy1_w"], params["joy1_b"], params["bn1"])
    w2, b2 = _fold_bn_into_linear(params["joy2_w"], params["joy2_b"], params["bn2"])
    joy_out = pl.pallas_call(
        _joystick_kernel,
        out_shape=jax.ShapeDtypeStruct((B, out_size), jnp.float32),
    )(joystick_batch, w1, b1.reshape(1, -1), w2, b2.reshape(1, -1))

    return cls_out, joy_out


# ----------------------------------------------------------------------------
# Deterministic parameter init (shapes mirror the PyTorch module; (in,out) layout)
# ----------------------------------------------------------------------------
def init_params(key, *, img_channels, img_size, patch_size, d_model, ff_dim,
                n_layers, joy_in, out_size):
    patch_dim = patch_size * patch_size * img_channels
    num_patches = (img_size // patch_size) ** 2
    k = jax.random.split(key, 8)

    def w(kk, shape, dtype=jnp.bfloat16):
        return (jax.random.normal(kk, shape, jnp.float32) * 0.02).astype(dtype)

    def bn(c):
        return {"gamma": jnp.ones((c,), jnp.float32), "beta": jnp.zeros((c,), jnp.float32),
                "mean": jnp.zeros((c,), jnp.float32), "var": jnp.ones((c,), jnp.float32)}

    stack = {
        "wqkv":  w(k[0], (n_layers, d_model, 3 * d_model)),
        "bqkv":  jnp.zeros((n_layers, 1, 3 * d_model), jnp.float32),
        "wo":    w(k[1], (n_layers, d_model, d_model)),
        "bo":    jnp.zeros((n_layers, 1, d_model), jnp.float32),
        "ln1_g": jnp.ones((n_layers, 1, d_model), jnp.float32),
        "ln1_b": jnp.zeros((n_layers, 1, d_model), jnp.float32),
        "w1":    w(k[2], (n_layers, d_model, ff_dim)),
        "b1":    jnp.zeros((n_layers, 1, ff_dim), jnp.float32),
        "w2":    w(k[3], (n_layers, ff_dim, d_model)),
        "b2":    jnp.zeros((n_layers, 1, d_model), jnp.float32),
        "ln2_g": jnp.ones((n_layers, 1, d_model), jnp.float32),
        "ln2_b": jnp.zeros((n_layers, 1, d_model), jnp.float32),
    }
    return {
        "patch_proj_w": w(k[4], (patch_dim, d_model)),
        "patch_proj_b": jnp.zeros((1, d_model), jnp.float32),
        "cls_token": jnp.zeros((1, 1, d_model), jnp.float32),          # zeros as in __init__
        "pos_embed": jnp.zeros((1, 1 + num_patches, d_model), jnp.float32),
        "stack": stack,
        "final_ln_g": jnp.ones((1, d_model), jnp.float32),
        "final_ln_b": jnp.zeros((1, d_model), jnp.float32),
        "head_w": w(k[5], (d_model, out_size), jnp.float32),
        "head_b": jnp.zeros((1, out_size), jnp.float32),
        "joy1_w": w(k[6], (joy_in, joy_in), jnp.float32),
        "joy1_b": jnp.zeros((joy_in,), jnp.float32),
        "bn1": bn(joy_in),
        "joy2_w": w(k[7], (joy_in, out_size), jnp.float32),
        "joy2_b": jnp.zeros((out_size,), jnp.float32),
        "bn2": bn(out_size),
    }


# ----------------------------------------------------------------------------
# Demo
# ----------------------------------------------------------------------------
if __name__ == "__main__":
    B = 2
    IMG_CHANNELS = 3
    IMG_SIZE = 32
    PATCH_SIZE = 16            # -> num_patches = 4, seq len = 5
    D_MODEL = 128              # divisible by nhead = 8
    FF_DIM = 2048              # nn.TransformerEncoderLayer default dim_feedforward
    N_LAYERS = 6
    N_HEADS = 8
    JOY_IN = 8
    OUT_SIZE = 64

    root = jax.random.PRNGKey(0)
    k_params, k_img, k_joy = jax.random.split(root, 3)

    params = init_params(
        k_params, img_channels=IMG_CHANNELS, img_size=IMG_SIZE, patch_size=PATCH_SIZE,
        d_model=D_MODEL, ff_dim=FF_DIM, n_layers=N_LAYERS, joy_in=JOY_IN, out_size=OUT_SIZE)

    img_batch = jax.random.normal(k_img, (B, IMG_CHANNELS, IMG_SIZE, IMG_SIZE), jnp.float32)
    joystick_batch = jax.random.normal(k_joy, (B, JOY_IN), jnp.float32)

    fwd = jax.jit(functools.partial(btsn_forward, patch_size=PATCH_SIZE, n_heads=N_HEADS))
    cls_out, joy_out = fwd(params, img_batch, joystick_batch)
    jax.block_until_ready((cls_out, joy_out))

    assert cls_out.shape == (B, OUT_SIZE), cls_out.shape
    assert joy_out.shape == (B, OUT_SIZE), joy_out.shape
    assert bool(jnp.all(jnp.isfinite(cls_out))) and bool(jnp.all(jnp.isfinite(joy_out)))
    print("KERNEL_OK")
</pallas_src>

<mosaic_0001>
module attributes {stable_mosaic.version = 11 : i64} {
  func.func @_patch_proj_kernel(%arg0: memref<8x768xf32, #tpu.memory_space<vmem>>, %arg1: memref<768x128xbf16, #tpu.memory_space<vmem>>, %arg2: memref<1x128xf32, #tpu.memory_space<vmem>>, %arg3: memref<8x128xf32, #tpu.memory_space<vmem>>) attributes {dimension_semantics = [], scalar_prefetch = 0 : i64, scratch_operands = 0 : i64, tpu.core_type = #tpu.core_type<tc>} {
    %c0 = arith.constant 0 : index
    %c0_0 = arith.constant 0 : index
    %0 = vector.load %arg0[%c0, %c0_0] : memref<8x768xf32, #tpu.memory_space<vmem>>, vector<8x768xf32>
    %1 = arith.truncf %0 : vector<8x768xf32> to vector<8x768xbf16>
    %c0_1 = arith.constant 0 : index
    %c0_2 = arith.constant 0 : index
    %2 = vector.load %arg1[%c0_1, %c0_2] : memref<768x128xbf16, #tpu.memory_space<vmem>>, vector<768x128xbf16>
    %cst = arith.constant dense<0.000000e+00> : vector<8x128xf32>
    %3 = tpu.matmul %1, %2, %cst {dimension_numbers = #tpu.dot_dimension_numbers<[1], [0], [0], [1], [0, 0, 1, 1], [], []>} : vector<8x768xbf16>, vector<768x128xbf16>, vector<8x128xf32> -> vector<8x128xf32>
    %c0_3 = arith.constant 0 : index
    %c0_4 = arith.constant 0 : index
    %4 = vector.load %arg2[%c0_3, %c0_4] : memref<1x128xf32, #tpu.memory_space<vmem>>, vector<1x128xf32>
    %5 = vector.broadcast %4 : vector<1x128xf32> to vector<8x128xf32>
    %6 = arith.addf %3, %5 : vector<8x128xf32>
    %c0_5 = arith.constant 0 : index
    %c0_6 = arith.constant 0 : index
    %7 = vector.load %arg3[%c0_5, %c0_6] : memref<8x128xf32, #tpu.memory_space<vmem>>, vector<8x128xf32>
    tpu.vector_store %arg3[%c0_5, %c0_6], %6 {strides = array<i32>} : memref<8x128xf32, #tpu.memory_space<vmem>>, vector<8x128xf32>,
    return
  }
}

module attributes {stable_mosaic.version = 11 : i64} {
  func.func @_cls_head_kernel(%arg0: memref<2x128xf32, #tpu.memory_space<vmem>>, %arg1: memref<1x128xf32, #tpu.memory_space<vmem>>, %arg2: memref<1x128xf32, #tpu.memory_space<vmem>>, %arg3: memref<128x64xf32, #tpu.memory_space<vmem>>, %arg4: memref<1x64xf32, #tpu.memory_space<vmem>>, %arg5: memref<2x64xf32, #tpu.memory_space<vmem>>) attributes {dimension_semantics = [], scalar_prefetch = 0 : i64, scratch_operands = 0 : i64, tpu.core_type = #tpu.core_type<tc>} {
    %c0 = arith.constant 0 : index
    %c0_0 = arith.constant 0 : index
    %0 = vector.load %arg0[%c0, %c0_0] : memref<2x128xf32, #tpu.memory_space<vmem>>, vector<2x128xf32>
    %c0_1 = arith.constant 0 : index
    %c0_2 = arith.constant 0 : index
    %1 = vector.load %arg1[%c0_1, %c0_2] : memref<1x128xf32, #tpu.memory_space<vmem>>, vector<1x128xf32>
    %c0_3 = arith.constant 0 : index
    %c0_4 = arith.constant 0 : index
    %2 = vector.load %arg2[%c0_3, %c0_4] : memref<1x128xf32, #tpu.memory_space<vmem>>, vector<1x128xf32>
    %cst = arith.constant dense<0.000000e+00> : vector<2xf32>
    %3 = vector.multi_reduction <add>, %0, %cst [1] : vector<2x128xf32> to vector<2xf32>
    %4 = vector.shape_cast %3 : vector<2xf32> to vector<2x1xf32>
    %cst_5 = arith.constant 1.280000e+02 : f32
    %5 = vector.broadcast %cst_5 : f32 to vector<2x1xf32>
    %6 = arith.divf %4, %5 : vector<2x1xf32>
    %7 = vector.broadcast %6 : vector<2x1xf32> to vector<2x128xf32>
    %8 = arith.subf %0, %7 : vector<2x128xf32>
    %9 = vector.broadcast %6 : vector<2x1xf32> to vector<2x128xf32>
    %10 = arith.subf %0, %9 : vector<2x128xf32>
    %11 = arith.mulf %8, %10 : vector<2x128xf32>
    %cst_6 = arith.constant dense<0.000000e+00> : vector<2xf32>
    %12 = vector.multi_reduction <add>, %11, %cst_6 [1] : vector<2x128xf32> to vector<2xf32>
    %13 = vector.shape_cast %12 : vector<2xf32> to vector<2x1xf32>
    %cst_7 = arith.constant 1.280000e+02 : f32
    %14 = vector.broadcast %cst_7 : f32 to vector<2x1xf32>
    %15 = arith.divf %13, %14 : vector<2x1xf32>
    %16 = vector.broadcast %6 : vector<2x1xf32> to vector<2x128xf32>
    %17 = arith.subf %0, %16 : vector<2x128xf32>
    %cst_8 = arith.constant 9.99999997E-7 : f32
    %18 = vector.broadcast %cst_8 : f32 to vector<2x1xf32>
    %19 = arith.addf %15, %18 : vector<2x1xf32>
    %20 = math.rsqrt %19 : vector<2x1xf32>
    %21 = vector.broadcast %20 : vector<2x1xf32> to vector<2x128xf32>
    %22 = arith.mulf %17, %21 : vector<2x128xf32>
    %23 = vector.broadcast %1 : vector<1x128xf32> to vector<2x128xf32>
    %24 = arith.mulf %22, %23 : vector<2x128xf32>
    %25 = vector.broadcast %2 : vector<1x128xf32> to vector<2x128xf32>
    %26 = arith.addf %24, %25 : vector<2x128xf32>
    %c0_9 = arith.constant 0 : index
    %c0_10 = arith.constant 0 : index
    %27 = vector.load %arg3[%c0_9, %c0_10] : memref<128x64xf32, #tpu.memory_space<vmem>>, vector<128x64xf32>
    %cst_11 = arith.constant dense<0.000000e+00> : vector<2x64xf32>
    %28 = tpu.matmul %26, %27, %cst_11 {dimension_numbers = #tpu.dot_dimension_numbers<[1], [0], [0], [1], [0, 0, 1, 1], [], []>} : vector<2x128xf32>, vector<128x64xf32>, vector<2x64xf32> -> vector<2x64xf32>
    %c0_12 = arith.constant 0 : index
    %c0_13 = arith.constant 0 : index
    %29 = vector.load %arg4[%c0_12, %c0_13] : memref<1x64xf32, #tpu.memory_space<vmem>>, vector<1x64xf32>
    %30 = vector.broadcast %29 : vector<1x64xf32> to vector<2x64xf32>
    %31 = arith.addf %28, %30 : vector<2x64xf32>
    %c0_14 = arith.constant 0 : index
    %c0_15 = arith.constant 0 : index
    %32 = vector.load %arg5[%c0_14, %c0_15] : memref<2x64xf32, #tpu.memory_space<vmem>>, vector<2x64xf32>
    tpu.vector_store %arg5[%c0_14, %c0_15], %31 {strides = array<i32>} : memref<2x64xf32, #tpu.memory_space<vmem>>, vector<2x64xf32>,
    return
  }
}

module attributes {stable_mosaic.version = 11 : i64} {
  func.func @_encoder_stack_kernel(%arg0: i32, %arg1: memref<10x128xf32, #tpu.memory_space<vmem>>, %arg2: memref<10x10xf32, #tpu.memory_space<vmem>>, %arg3: memref<1x128x384xbf16, #tpu.memory_space<vmem>>, %arg4: memref<1x1x384xf32, #tpu.memory_space<vmem>>, %arg5: memref<1x128x128xbf16, #tpu.memory_space<vmem>>, %arg6: memref<1x1x128xf32, #tpu.memory_space<vmem>>, %arg7: memref<1x1x128xf32, #tpu.memory_space<vmem>>, %arg8: memref<1x1x128xf32, #tpu.memory_space<vmem>>, %arg9: memref<1x128x2048xbf16, #tpu.memory_space<vmem>>, %arg10: memref<1x1x2048xf32, #tpu.memory_space<vmem>>, %arg11: memref<1x2048x128xbf16, #tpu.memory_space<vmem>>, %arg12: memref<1x1x128xf32, #tpu.memory_space<vmem>>, %arg13: memref<1x1x128xf32, #tpu.memory_space<vmem>>, %arg14: memref<1x1x128xf32, #tpu.memory_space<vmem>>, %arg15: memref<10x128xf32, #tpu.memory_space<vmem>>) attributes {dimension_semantics = [#tpu.dimension_semantics<arbitrary>], iteration_bounds = array<i64: 6>, scalar_prefetch = 0 : i64, scratch_operands = 0 : i64, tpu.core_type = #tpu.core_type<tc>, window_params = [{pipeline_mode = #tpu.pipeline_mode<synchronous>, transform_indices = @transform_0, window_bounds = array<i64: 10, 128>}, {pipeline_mode = #tpu.pipeline_mode<synchronous>, transform_indices = @transform_1, window_bounds = array<i64: 10, 10>}, {transform_indices = @transform_2, window_bounds = array<i64: 1, 128, 384>}, {transform_indices = @transform_3, window_bounds = array<i64: 1, 1, 384>}, {transform_indices = @transform_4, window_bounds = array<i64: 1, 128, 128>}, {transform_indices = @transform_5, window_bounds = array<i64: 1, 1, 128>}, {transform_indices = @transform_6, window_bounds = array<i64: 1, 1, 128>}, {transform_indices = @transform_7, window_bounds = array<i64: 1, 1, 128>}, {transform_indices = @transform_8, window_bounds = array<i64: 1, 128, 2048>}, {transform_indices = @transform_9, window_bounds = array<i64: 1, 1, 2048>}, {transform_indices = @transform_10, window_bounds = array<i64: 1, 2048, 128>}, {transform_indices = @transform_11, window_bounds = array<i64: 1, 1, 128>}, {transform_indices = @transform_12, window_bounds = array<i64: 1, 1, 128>}, {transform_indices = @transform_13, window_bounds = array<i64: 1, 1, 128>}, {pipeline_mode = #tpu.pipeline_mode<synchronous>, transform_indices = @transform_14, window_bounds = array<i64: 10, 128>}]} {
    %c0_i32 = arith.constant 0 : i32
    %0 = arith.cmpi eq, %arg0, %c0_i32 : i32
    %1 = arith.extui %0 : i1 to i32
    %c0_i32_0 = arith.constant 0 : i32
    %2 = arith.cmpi ne, %1, %c0_i32_0 : i32
    scf.if %2 {
      %c0_118 = arith.constant 0 : index
      %c0_119 = arith.constant 0 : index
      %318 = vector.load %arg1[%c0_118, %c0_119] : memref<10x128xf32, #tpu.memory_space<vmem>>, vector<10x128xf32>
      %c0_120 = arith.constant 0 : index
      %c0_121 = arith.constant 0 : index
      %319 = vector.load %arg15[%c0_120, %c0_121] : memref<10x128xf32, #tpu.memory_space<vmem>>, vector<10x128xf32>
      tpu.vector_store %arg15[%c0_120, %c0_121], %318 {strides = array<i32>} : memref<10x128xf32, #tpu.memory_space<vmem>>, vector<10x128xf32>,
    } else {
    }
    %c0 = arith.constant 0 : index
    %c0_1 = arith.constant 0 : index
    %3 = vector.load %arg15[%c0, %c0_1] : memref<10x128xf32, #tpu.memory_space<vmem>>, vector<10x128xf32>
    %4 = arith.truncf %3 : vector<10x128xf32> to vector<10x128xbf16>
    %c0_2 = arith.constant 0 : index
    %c0_3 = arith.constant 0 : index
    %c0_4 = arith.constant 0 : index
    %5 = vector.load %arg3[%c0_2, %c0_3, %c0_4] : memref<1x128x384xbf16, #tpu.memory_space<vmem>>, vector<1x128x384xbf16>
    %6 = vector.shape_cast %5 : vector<1x128x384xbf16> to vector<128x384xbf16>
    %cst = arith.constant dense<0.000000e+00> : vector<10x384xf32>
    %7 = tpu.matmul %4, %6, %cst {dimension_numbers = #tpu.dot_dimension_numbers<[1], [0], [0], [1], [0, 0, 1, 1], [], []>} : vector<10x128xbf16>, vector<128x384xbf16>, vector<10x384xf32> -> vector<10x384xf32>
    %c0_5 = arith.constant 0 : index
    %c0_6 = arith.constant 0 : index
    %c0_7 = arith.constant 0 : index
    %8 = vector.load %arg4[%c0_5, %c0_6, %c0_7] : memref<1x1x384xf32, #tpu.memory_space<vmem>>, vector<1x1x384xf32>
    %9 = vector.shape_cast %8 : vector<1x1x384xf32> to vector<1x384xf32>
    %10 = vector.broadcast %9 : vector<1x384xf32> to vector<10x384xf32>
    %11 = arith.addf %7, %10 : vector<10x384xf32>
    %c0_8 = arith.constant 0 : index
    %c0_9 = arith.constant 0 : index
    %12 = vector.load %arg2[%c0_8, %c0_9] : memref<10x10xf32, #tpu.memory_space<vmem>>, vector<10x10xf32>
    %c0_10 = arith.constant 0 : index
    %c0_11 = arith.constant 0 : index
    %c0_12 = arith.constant 0 : index
    %13 = vector.load %arg5[%c0_10, %c0_11, %c0_12] : memref<1x128x128xbf16, #tpu.memory_space<vmem>>, vector<1x128x128xbf16>
    %14 = vector.shape_cast %13 : vector<1x128x128xbf16> to vector<128x128xbf16>
    %c0_13 = arith.constant 0 : index
    %c0_14 = arith.constant 0 : index
    %c0_15 = arith.constant 0 : index
    %15 = vector.load %arg6[%c0_13, %c0_14, %c0_15] : memref<1x1x128xf32, #tpu.memory_space<vmem>>, vector<1x1x128xf32>
    %16 = vector.shape_cast %15 : vector<1x1x128xf32> to vector<1x128xf32>
    %17 = vector.extract_strided_slice %11 {offsets = [0, 0], sizes = [10, 16], strides = [1, 1]} : vector<10x384xf32> to vector<10x16xf32>
    %18 = vector.extract_strided_slice %11 {offsets = [0, 128], sizes = [10, 16], strides = [1, 1]} : vector<10x384xf32> to vector<10x16xf32>
    %19 = vector.extract_strided_slice %11 {offsets = [0, 256], sizes = [10, 16], strides = [1, 1]} : vector<10x384xf32> to vector<10x16xf32>
    %20 = tpu.transpose %18, [1, 0] : vector<10x16xf32> -> vector<16x10xf32>
    %cst_16 = arith.constant dense<0.000000e+00> : vector<10x10xf32>
    %21 = tpu.matmul %17, %20, %cst_16 {dimension_numbers = #tpu.dot_dimension_numbers<[1], [0], [0], [1], [0, 0, 1, 1], [], []>} : vector<10x16xf32>, vector<16x10xf32>, vector<10x10xf32> -> vector<10x10xf32>
    %cst_17 = arith.constant 2.500000e-01 : f32
    %22 = vector.broadcast %cst_17 : f32 to vector<10x10xf32>
    %23 = arith.mulf %21, %22 : vector<10x10xf32>
    %24 = arith.addf %23, %12 : vector<10x10xf32>
    %cst_18 = arith.constant dense<0xFF800000> : vector<10xf32>
    %25 = vector.multi_reduction <maximumf>, %24, %cst_18 [1] : vector<10x10xf32> to vector<10xf32>
    %26 = vector.shape_cast %25 : vector<10xf32> to vector<10x1xf32>
    %27 = vector.broadcast %26 : vector<10x1xf32> to vector<10x10xf32>
    %28 = arith.subf %24, %27 : vector<10x10xf32>
    %29 = math.exp %28 : vector<10x10xf32>
    %cst_19 = arith.constant dense<0.000000e+00> : vector<10xf32>
    %30 = vector.multi_reduction <add>, %29, %cst_19 [1] : vector<10x10xf32> to vector<10xf32>
    %31 = vector.shape_cast %30 : vector<10xf32> to vector<10x1xf32>
    %32 = tpu.reciprocal %31 {approx = true} : vector<10x1xf32> -> vector<10x1xf32>
    %33 = vector.broadcast %32 : vector<10x1xf32> to vector<10x10xf32>
    %34 = arith.mulf %29, %33 : vector<10x10xf32>
    %cst_20 = arith.constant dense<0.000000e+00> : vector<10x16xf32>
    %35 = tpu.matmul %34, %19, %cst_20 {dimension_numbers = #tpu.dot_dimension_numbers<[1], [0], [0], [1], [0, 0, 1, 1], [], []>} : vector<10x10xf32>, vector<10x16xf32>, vector<10x16xf32> -> vector<10x16xf32>
    %36 = arith.truncf %35 : vector<10x16xf32> to vector<10x16xbf16>
    %37 = vector.extract_strided_slice %14 {offsets = [0, 0], sizes = [16, 128], strides = [1, 1]} : vector<128x128xbf16> to vector<16x128xbf16>
    %cst_21 = arith.constant dense<0.000000e+00> : vector<10x128xf32>
    %38 = tpu.matmul %36, %37, %cst_21 {dimension_numbers = #tpu.dot_dimension_numbers<[1], [0], [0], [1], [0, 0, 1, 1], [], []>} : vector<10x16xbf16>, vector<16x128xbf16>, vector<10x128xf32> -> vector<10x128xf32>
    %39 = vector.broadcast %16 : vector<1x128xf32> to vector<10x128xf32>
    %40 = arith.addf %39, %38 : vector<10x128xf32>
    %41 = vector.extract_strided_slice %11 {offsets = [0, 16], sizes = [10, 16], strides = [1, 1]} : vector<10x384xf32> to vector<10x16xf32>
    %42 = vector.extract_strided_slice %11 {offsets = [0, 144], sizes = [10, 16], strides = [1, 1]} : vector<10x384xf32> to vector<10x16xf32>
    %43 = vector.extract_strided_slice %11 {offsets = [0, 272], sizes = [10, 16], strides = [1, 1]} : vector<10x384xf32> to vector<10x16xf32>
    %44 = tpu.transpose %42, [1, 0] : vector<10x16xf32> -> vector<16x10xf32>
    %cst_22 = arith.constant dense<0.000000e+00> : vector<10x10xf32>
    %45 = tpu.matmul %41, %44, %cst_22 {dimension_numbers = #tpu.dot_dimension_numbers<[1], [0], [0], [1], [0, 0, 1, 1], [], []>} : vector<10x16xf32>, vector<16x10xf32>, vector<10x10xf32> -> vector<10x10xf32>
    %cst_23 = arith.constant 2.500000e-01 : f32
    %46 = vector.broadcast %cst_23 : f32 to vector<10x10xf32>
    %47 = arith.mulf %45, %46 : vector<10x10xf32>
    %48 = arith.addf %47, %12 : vector<10x10xf32>
    %cst_24 = arith.constant dense<0xFF800000> : vector<10xf32>
    %49 = vector.multi_reduction <maximumf>, %48, %cst_24 [1] : vector<10x10xf32> to vector<10xf32>
    %50 = vector.shape_cast %49 : vector<10xf32> to vector<10x1xf32>
    %51 = vector.broadcast %50 : vector<10x1xf32> to vector<10x10xf32>
    %52 = arith.subf %48, %51 : vector<10x10xf32>
    %53 = math.exp %52 : vector<10x10xf32>
    %cst_25 = arith.constant dense<0.000000e+00> : vector<10xf32>
    %54 = vector.multi_reduction <add>, %53, %cst_25 [1] : vector<10x10xf32> to vector<10xf32>
    %55 = vector.shape_cast %54 : vector<10xf32> to vector<10x1xf32>
    %56 = tpu.reciprocal %55 {approx = true} : vector<10x1xf32> -> vector<10x1xf32>
    %57 = vector.broadcast %56 : vector<10x1xf32> to vector<10x10xf32>
    %58 = arith.mulf %53, %57 : vector<10x10xf32>
    %cst_26 = arith.constant dense<0.000000e+00> : vector<10x16xf32>
    %59 = tpu.matmul %58, %43, %cst_26 {dimension_numbers = #tpu.dot_dimension_numbers<[1], [0], [0], [1], [0, 0, 1, 1], [], []>} : vector<10x10xf32>, vector<10x16xf32>, vector<10x16xf32> -> vector<10x16xf32>
    %60 = arith.truncf %59 : vector<10x16xf32> to vector<10x16xbf16>
    %61 = vector.extract_strided_slice %14 {offsets = [16, 0], sizes = [16, 128], strides = [1, 1]} : vector<128x128xbf16> to vector<16x128xbf16>
    %cst_27 = arith.constant dense<0.000000e+00> : vector<10x128xf32>
    %62 = tpu.matmul %60, %61, %cst_27 {dimension_numbers = #tpu.dot_dimension_numbers<[1], [0], [0], [1], [0, 0, 1, 1], [], []>} : vector<10x16xbf16>, vector<16x128xbf16>, vector<10x128xf32> -> vector<10x128xf32>
    %63 = arith.addf %40, %62 : vector<10x128xf32>
    %64 = vector.extract_strided_slice %11 {offsets = [0, 32], sizes = [10, 16], strides = [1, 1]} : vector<10x384xf32> to vector<10x16xf32>
    %65 = vector.extract_strided_slice %11 {offsets = [0, 160], sizes = [10, 16], strides = [1, 1]} : vector<10x384xf32> to vector<10x16xf32>
    %66 = vector.extract_strided_slice %11 {offsets = [0, 288], sizes = [10, 16], strides = [1, 1]} : vector<10x384xf32> to vector<10x16xf32>
    %67 = tpu.transpose %65, [1, 0] : vector<10x16xf32> -> vector<16x10xf32>
    %cst_28 = arith.constant dense<0.000000e+00> : vector<10x10xf32>
    %68 = tpu.matmul %64, %67, %cst_28 {dimension_numbers = #tpu.dot_dimension_numbers<[1], [0], [0], [1], [0, 0, 1, 1], [], []>} : vector<10x16xf32>, vector<16x10xf32>, vector<10x10xf32> -> vector<10x10xf32>
    %cst_29 = arith.constant 2.500000e-01 : f32
    %69 = vector.broadcast %cst_29 : f32 to vector<10x10xf32>
    %70 = arith.mulf %68, %69 : vector<10x10xf32>
    %71 = arith.addf %70, %12 : vector<10x10xf32>
    %cst_30 = arith.constant dense<0xFF800000> : vector<10xf32>
    %72 = vector.multi_reduction <maximumf>, %71, %cst_30 [1] : vector<10x10xf32> to vector<10xf32>
    %73 = vector.shape_cast %72 : vector<10xf32> to vector<10x1xf32>
    %74 = vector.broadcast %73 : vector<10x1xf32> to vector<10x10xf32>
    %75 = arith.subf %71, %74 : vector<10x10xf32>
    %76 = math.exp %75 : vector<10x10xf32>
    %cst_31 = arith.constant dense<0.000000e+00> : vector<10xf32>
    %77 = vector.multi_reduction <add>, %76, %cst_31 [1] : vector<10x10xf32> to vector<10xf32>
    %78 = vector.shape_cast %77 : vector<10xf32> to vector<10x1xf32>
    %79 = tpu.reciprocal %78 {approx = true} : vector<10x1xf32> -> vector<10x1xf32>
    %80 = vector.broadcast %79 : vector<10x1xf32> to vector<10x10xf32>
    %81 = arith.mulf %76, %80 : vector<10x10xf32>
    %cst_32 = arith.constant dense<0.000000e+00> : vector<10x16xf32>
    %82 = tpu.matmul %81, %66, %cst_32 {dimension_numbers = #tpu.dot_dimension_numbers<[1], [0], [0], [1], [0, 0, 1, 1], [], []>} : vector<10x10xf32>, vector<10x16xf32>, vector<10x16xf32> -> vector<10x16xf32>
    %83 = arith.truncf %82 : vector<10x16xf32> to vector<10x16xbf16>
    %84 = vector.extract_strided_slice %14 {offsets = [32, 0], sizes = [16, 128], strides = [1, 1]} : vector<128x128xbf16> to vector<16x128xbf16>
    %cst_33 = arith.constant dense<0.000000e+00> : vector<10x128xf32>
    %85 = tpu.matmul %83, %84, %cst_33 {dimension_numbers = #tpu.dot_dimension_numbers<[1], [0], [0], [1], [0, 0, 1, 1], [], []>} : vector<10x16xbf16>, vector<16x128xbf16>, vector<10x128xf32> -> vector<10x128xf32>
    %86 = arith.addf %63, %85 : vector<10x128xf32>
    %87 = vector.extract_strided_slice %11 {offsets = [0, 48], sizes = [10, 16], strides = [1, 1]} : vector<10x384xf32> to vector<10x16xf32>
    %88 = vector.extract_strided_slice %11 {offsets = [0, 176], sizes = [10, 16], strides = [1, 1]} : vector<10x384xf32> to vector<10x16xf32>
    %89 = vector.extract_strided_slice %11 {offsets = [0, 304], sizes = [10, 16], strides = [1, 1]} : vector<10x384xf32> to vector<10x16xf32>
    %90 = tpu.transpose %88, [1, 0] : vector<10x16xf32> -> vector<16x10xf32>
    %cst_34 = arith.constant dense<0.000000e+00> : vector<10x10xf32>
    %91 = tpu.matmul %87, %90, %cst_34 {dimension_numbers = #tpu.dot_dimension_numbers<[1], [0], [0], [1], [0, 0, 1, 1], [], []>} : vector<10x16xf32>, vector<16x10xf32>, vector<10x10xf32> -> vector<10x10xf32>
    %cst_35 = arith.constant 2.500000e-01 : f32
    %92 = vector.broadcast %cst_35 : f32 to vector<10x10xf32>
    %93 = arith.mulf %91, %92 : vector<10x10xf32>
    %94 = arith.addf %93, %12 : vector<10x10xf32>
    %cst_36 = arith.constant dense<0xFF800000> : vector<10xf32>
    %95 = vector.multi_reduction <maximumf>, %94, %cst_36 [1] : vector<10x10xf32> to vector<10xf32>
    %96 = vector.shape_cast %95 : vector<10xf32> to vector<10x1xf32>
    %97 = vector.broadcast %96 : vector<10x1xf32> to vector<10x10xf32>
    %98 = arith.subf %94, %97 : vector<10x10xf32>
    %99 = math.exp %98 : vector<10x10xf32>
    %cst_37 = arith.constant dense<0.000000e+00> : vector<10xf32>
    %100 = vector.multi_reduction <add>, %99, %cst_37 [1] : vector<10x10xf32> to vector<10xf32>
    %101 = vector.shape_cast %100 : vector<10xf32> to vector<10x1xf32>
    %102 = tpu.reciprocal %101 {approx = true} : vector<10x1xf32> -> vector<10x1xf32>
    %103 = vector.broadcast %102 : vector<10x1xf32> to vector<10x10xf32>
    %104 = arith.mulf %99, %103 : vector<10x10xf32>
    %cst_38 = arith.constant dense<0.000000e+00> : vector<10x16xf32>
    %105 = tpu.matmul %104, %89, %cst_38 {dimension_numbers = #tpu.dot_dimension_numbers<[1], [0], [0], [1], [0, 0, 1, 1], [], []>} : vector<10x10xf32>, vector<10x16xf32>, vector<10x16xf32> -> vector<10x16xf32>
    %106 = arith.truncf %105 : vector<10x16xf32> to vector<10x16xbf16>
    %107 = vector.extract_strided_slice %14 {offsets = [48, 0], sizes = [16, 128], strides = [1, 1]} : vector<128x128xbf16> to vector<16x128xbf16>
    %cst_39 = arith.constant dense<0.000000e+00> : vector<10x128xf32>
    %108 = tpu.matmul %106, %107, %cst_39 {dimension_numbers = #tpu.dot_dimension_numbers<[1], [0], [0], [1], [0, 0, 1, 1], [], []>} : vector<10x16xbf16>, vector<16x128xbf16>, vector<10x128xf32> -> vector<10x128xf32>
    %109 = arith.addf %86, %108 : vector<10x128xf32>
    %110 = vector.extract_strided_slice %11 {offsets = [0, 64], sizes = [10, 16], strides = [1, 1]} : vector<10x384xf32> to vector<10x16xf32>
    %111 = vector.extract_strided_slice %11 {offsets = [0, 192], sizes = [10, 16], strides = [1, 1]} : vector<10x384xf32> to vector<10x16xf32>
    %112 = vector.extract_strided_slice %11 {offsets = [0, 320], sizes = [10, 16], strides = [1, 1]} : vector<10x384xf32> to vector<10x16xf32>
    %113 = tpu.transpose %111, [1, 0] : vector<10x16xf32> -> vector<16x10xf32>
    %cst_40 = arith.constant dense<0.000000e+00> : vector<10x10xf32>
    %114 = tpu.matmul %110, %113, %cst_40 {dimension_numbers = #tpu.dot_dimension_numbers<[1], [0], [0], [1], [0, 0, 1, 1], [], []>} : vector<10x16xf32>, vector<16x10xf32>, vector<10x10xf32> -> vector<10x10xf32>
    %cst_41 = arith.constant 2.500000e-01 : f32
    %115 = vector.broadcast %cst_41 : f32 to vector<10x10xf32>
    %116 = arith.mulf %114, %115 : vector<10x10xf32>
    %117 = arith.addf %116, %12 : vector<10x10xf32>
    %cst_42 = arith.constant dense<0xFF800000> : vector<10xf32>
    %118 = vector.multi_reduction <maximumf>, %117, %cst_42 [1] : vector<10x10xf32> to vector<10xf32>
    %119 = vector.shape_cast %118 : vector<10xf32> to vector<10x1xf32>
    %120 = vector.broadcast %119 : vector<10x1xf32> to vector<10x10xf32>
    %121 = arith.subf %117, %120 : vector<10x10xf32>
    %122 = math.exp %121 : vector<10x10xf32>
    %cst_43 = arith.constant dense<0.000000e+00> : vector<10xf32>
    %123 = vector.multi_reduction <add>, %122, %cst_43 [1] : vector<10x10xf32> to vector<10xf32>
    %124 = vector.shape_cast %123 : vector<10xf32> to vector<10x1xf32>
    %125 = tpu.reciprocal %124 {approx = true} : vector<10x1xf32> -> vector<10x1xf32>
    %126 = vector.broadcast %125 : vector<10x1xf32> to vector<10x10xf32>
    %127 = arith.mulf %122, %126 : vector<10x10xf32>
    %cst_44 = arith.constant dense<0.000000e+00> : vector<10x16xf32>
    %128 = tpu.matmul %127, %112, %cst_44 {dimension_numbers = #tpu.dot_dimension_numbers<[1], [0], [0], [1], [0, 0, 1, 1], [], []>} : vector<10x10xf32>, vector<10x16xf32>, vector<10x16xf32> -> vector<10x16xf32>
    %129 = arith.truncf %128 : vector<10x16xf32> to vector<10x16xbf16>
    %130 = vector.extract_strided_slice %14 {offsets = [64, 0], sizes = [16, 128], strides = [1, 1]} : vector<128x128xbf16> to vector<16x128xbf16>
    %cst_45 = arith.constant dense<0.000000e+00> : vector<10x128xf32>
    %131 = tpu.matmul %129, %130, %cst_45 {dimension_numbers = #tpu.dot_dimension_numbers<[1], [0], [0], [1], [0, 0, 1, 1], [], []>} : vector<10x16xbf16>, vector<16x128xbf16>, vector<10x128xf32> -> vector<10x128xf32>
    %132 = arith.addf %109, %131 : vector<10x128xf32>
    %133 = vector.extract_strided_slice %11 {offsets = [0, 80], sizes = [10, 16], strides = [1, 1]} : vector<10x384xf32> to vector<10x16xf32>
    %134 = vector.extract_strided_slice %11 {offsets = [0, 208], sizes = [10, 16], strides = [1, 1]} : vector<10x384xf32> to vector<10x16xf32>
    %135 = vector.extract_strided_slice %11 {offsets = [0, 336], sizes = [10, 16], strides = [1, 1]} : vector<10x384xf32> to vector<10x16xf32>
    %136 = tpu.transpose %134, [1, 0] : vector<10x16xf32> -> vector<16x10xf32>
    %cst_46 = arith.constant dense<0.000000e+00> : vector<10x10xf32>
    %137 = tpu.matmul %133, %136, %cst_46 {dimension_numbers = #tpu.dot_dimension_numbers<[1], [0], [0], [1], [0, 0, 1, 1], [], []>} : vector<10x16xf32>, vector<16x10xf32>, vector<10x10xf32> -> vector<10x10xf32>
    %cst_47 = arith.constant 2.500000e-01 : f32
    %138 = vector.broadcast %cst_47 : f32 to vector<10x10xf32>
    %139 = arith.mulf %137, %138 : vector<10x10xf32>
    %140 = arith.addf %139, %12 : vector<10x10xf32>
    %cst_48 = arith.constant dense<0xFF800000> : vector<10xf32>
    %141 = vector.multi_reduction <maximumf>, %140, %cst_48 [1] : vector<10x10xf32> to vector<10xf32>
    %142 = vector.shape_cast %141 : vector<10xf32> to vector<10x1xf32>
    %143 = vector.broadcast %142 : vector<10x1xf32> to vector<10x10xf32>
    %144 = arith.subf %140, %143 : vector<10x10xf32>
    %145 = math.exp %144 : vector<10x10xf32>
    %cst_49 = arith.constant dense<0.000000e+00> : vector<10xf32>
    %146 = vector.multi_reduction <add>, %145, %cst_49 [1] : vector<10x10xf32> to vector<10xf32>
    %147 = vector.shape_cast %146 : vector<10xf32> to vector<10x1xf32>
    %148 = tpu.reciprocal %147 {approx = true} : vector<10x1xf32> -> vector<10x1xf32>
    %149 = vector.broadcast %148 : vector<10x1xf32> to vector<10x10xf32>
    %150 = arith.mulf %145, %149 : vector<10x10xf32>
    %cst_50 = arith.constant dense<0.000000e+00> : vector<10x16xf32>
    %151 = tpu.matmul %150, %135, %cst_50 {dimension_numbers = #tpu.dot_dimension_numbers<[1], [0], [0], [1], [0, 0, 1, 1], [], []>} : vector<10x10xf32>, vector<10x16xf32>, vector<10x16xf32> -> vector<10x16xf32>
    %152 = arith.truncf %151 : vector<10x16xf32> to vector<10x16xbf16>
    %153 = vector.extract_strided_slice %14 {offsets = [80, 0], sizes = [16, 128], strides = [1, 1]} : vector<128x128xbf16> to vector<16x128xbf16>
    %cst_51 = arith.constant dense<0.000000e+00> : vector<10x128xf32>
    %154 = tpu.matmul %152, %153, %cst_51 {dimension_numbers = #tpu.dot_dimension_numbers<[1], [0], [0], [1], [0, 0, 1, 1], [], []>} : vector<10x16xbf16>, vector<16x128xbf16>, vector<10x128xf32> -> vector<10x128xf32>
    %155 = arith.addf %132, %154 : vector<10x128xf32>
    %156 = vector.extract_strided_slice %11 {offsets = [0, 96], sizes = [10, 16], strides = [1, 1]} : vector<10x384xf32> to vector<10x16xf32>
    %157 = vector.extract_strided_slice %11 {offsets = [0, 224], sizes = [10, 16], strides = [1, 1]} : vector<10x384xf32> to vector<10x16xf32>
    %158 = vector.extract_strided_slice %11 {offsets = [0, 352], sizes = [10, 16], strides = [1, 1]} : vector<10x384xf32> to vector<10x16xf32>
    %159 = tpu.transpose %157, [1, 0] : vector<10x16xf32> -> vector<16x10xf32>
    %cst_52 = arith.constant dense<0.000000e+00> : vector<10x10xf32>
    %160 = tpu.matmul %156, %159, %cst_52 {dimension_numbers = #tpu.dot_dimension_numbers<[1], [0], [0], [1], [0, 0, 1, 1], [], []>} : vector<10x16xf32>, vector<16x10xf32>, vector<10x10xf32> -> vector<10x10xf32>
    %cst_53 = arith.constant 2.500000e-01 : f32
    %161 = vector.broadcast %cst_53 : f32 to vector<10x10xf32>
    %162 = arith.mulf %160, %161 : vector<10x10xf32>
    %163 = arith.addf %162, %12 : vector<10x10xf32>
    %cst_54 = arith.constant dense<0xFF800000> : vector<10xf32>
    %164 = vector.multi_reduction <maximumf>, %163, %cst_54 [1] : vector<10x10xf32> to vector<10xf32>
    %165 = vector.shape_cast %164 : vector<10xf32> to vector<10x1xf32>
    %166 = vector.broadcast %165 : vector<10x1xf32> to vector<10x10xf32>
    %167 = arith.subf %163, %166 : vector<10x10xf32>
    %168 = math.exp %167 : vector<10x10xf32>
    %cst_55 = arith.constant dense<0.000000e+00> : vector<10xf32>
    %169 = vector.multi_reduction <add>, %168, %cst_55 [1] : vector<10x10xf32> to vector<10xf32>
    %170 = vector.shape_cast %169 : vector<10xf32> to vector<10x1xf32>
    %171 = tpu.reciprocal %170 {approx = true} : vector<10x1xf32> -> vector<10x1xf32>
    %172 = vector.broadcast %171 : vector<10x1xf32> to vector<10x10xf32>
    %173 = arith.mulf %168, %172 : vector<10x10xf32>
    %cst_56 = arith.constant dense<0.000000e+00> : vector<10x16xf32>
    %174 = tpu.matmul %173, %158, %cst_56 {dimension_numbers = #tpu.dot_dimension_numbers<[1], [0], [0], [1], [0, 0, 1, 1], [], []>} : vector<10x10xf32>, vector<10x16xf32>, vector<10x16xf32> -> vector<10x16xf32>
    %175 = arith.truncf %174 : vector<10x16xf32> to vector<10x16xbf16>
    %176 = vector.extract_strided_slice %14 {offsets = [96, 0], sizes = [16, 128], strides = [1, 1]} : vector<128x128xbf16> to vector<16x128xbf16>
    %cst_57 = arith.constant dense<0.000000e+00> : vector<10x128xf32>
    %177 = tpu.matmul %175, %176, %cst_57 {dimension_numbers = #tpu.dot_dimension_numbers<[1], [0], [0], [1], [0, 0, 1, 1], [], []>} : vector<10x16xbf16>, vector<16x128xbf16>, vector<10x128xf32> -> vector<10x128xf32>
    %178 = arith.addf %155, %177 : vector<10x128xf32>
    %179 = vector.extract_strided_slice %11 {offsets = [0, 112], sizes = [10, 16], strides = [1, 1]} : vector<10x384xf32> to vector<10x16xf32>
    %180 = vector.extract_strided_slice %11 {offsets = [0, 240], sizes = [10, 16], strides = [1, 1]} : vector<10x384xf32> to vector<10x16xf32>
    %181 = vector.extract_strided_slice %11 {offsets = [0, 368], sizes = [10, 16], strides = [1, 1]} : vector<10x384xf32> to vector<10x16xf32>
    %182 = tpu.transpose %180, [1, 0] : vector<10x16xf32> -> vector<16x10xf32>
    %cst_58 = arith.constant dense<0.000000e+00> : vector<10x10xf32>
    %183 = tpu.matmul %179, %182, %cst_58 {dimension_numbers = #tpu.dot_dimension_numbers<[1], [0], [0], [1], [0, 0, 1, 1], [], []>} : vector<10x16xf32>, vector<16x10xf32>, vector<10x10xf32> -> vector<10x10xf32>
    %cst_59 = arith.constant 2.500000e-01 : f32
    %184 = vector.broadcast %cst_59 : f32 to vector<10x10xf32>
    %185 = arith.mulf %183, %184 : vector<10x10xf32>
    %186 = arith.addf %185, %12 : vector<10x10xf32>
    %cst_60 = arith.constant dense<0xFF800000> : vector<10xf32>
    %187 = vector.multi_reduction <maximumf>, %186, %cst_60 [1] : vector<10x10xf32> to vector<10xf32>
    %188 = vector.shape_cast %187 : vector<10xf32> to vector<10x1xf32>
    %189 = vector.broadcast %188 : vector<10x1xf32> to vector<10x10xf32>
    %190 = arith.subf %186, %189 : vector<10x10xf32>
    %191 = math.exp %190 : vector<10x10xf32>
    %cst_61 = arith.constant dense<0.000000e+00> : vector<10xf32>
    %192 = vector.multi_reduction <add>, %191, %cst_61 [1] : vector<10x10xf32> to vector<10xf32>
    %193 = vector.shape_cast %192 : vector<10xf32> to vector<10x1xf32>
    %194 = tpu.reciprocal %193 {approx = true} : vector<10x1xf32> -> vector<10x1xf32>
    %195 = vector.broadcast %194 : vector<10x1xf32> to vector<10x10xf32>
    %196 = arith.mulf %191, %195 : vector<10x10xf32>
    %cst_62 = arith.constant dense<0.000000e+00> : vector<10x16xf32>
    %197 = tpu.matmul %196, %181, %cst_62 {dimension_numbers = #tpu.dot_dimension_numbers<[1], [0], [0], [1], [0, 0, 1, 1], [], []>} : vector<10x10xf32>, vector<10x16xf32>, vector<10x16xf32> -> vector<10x16xf32>
    %198 = arith.truncf %197 : vector<10x16xf32> to vector<10x16xbf16>
    %199 = vector.extract_strided_slice %14 {offsets = [112, 0], sizes = [16, 128], strides = [1, 1]} : vector<128x128xbf16> to vector<16x128xbf16>
    %cst_63 = arith.constant dense<0.000000e+00> : vector<10x128xf32>
    %200 = tpu.matmul %198, %199, %cst_63 {dimension_numbers = #tpu.dot_dimension_numbers<[1], [0], [0], [1], [0, 0, 1, 1], [], []>} : vector<10x16xbf16>, vector<16x128xbf16>, vector<10x128xf32> -> vector<10x128xf32>
    %201 = arith.addf %178, %200 : vector<10x128xf32>
    %202 = arith.addf %3, %201 : vector<10x128xf32>
    %c0_64 = arith.constant 0 : index
    %c0_65 = arith.constant 0 : index
    %c0_66 = arith.constant 0 : index
    %203 = vector.load %arg7[%c0_64, %c0_65, %c0_66] : memref<1x1x128xf32, #tpu.memory_space<vmem>>, vector<1x1x128xf32>
    %204 = vector.shape_cast %203 : vector<1x1x128xf32> to vector<1x128xf32>
    %c0_67 = arith.constant 0 : index
    %c0_68 = arith.constant 0 : index
    %c0_69 = arith.constant 0 : index
    %205 = vector.load %arg8[%c0_67, %c0_68, %c0_69] : memref<1x1x128xf32, #tpu.memory_space<vmem>>, vector<1x1x128xf32>
    %206 = vector.shape_cast %205 : vector<1x1x128xf32> to vector<1x128xf32>
    %cst_70 = arith.constant dense<0.000000e+00> : vector<10xf32>
    %207 = vector.multi_reduction <add>, %202, %cst_70 [1] : vector<10x128xf32> to vector<10xf32>
    %208 = vector.shape_cast %207 : vector<10xf32> to vector<10x1xf32>
    %cst_71 = arith.constant 1.280000e+02 : f32
    %209 = vector.broadcast %cst_71 : f32 to vector<10x1xf32>
    %210 = arith.divf %208, %209 : vector<10x1xf32>
    %211 = vector.broadcast %210 : vector<10x1xf32> to vector<10x128xf32>
    %212 = arith.subf %202, %211 : vector<10x128xf32>
    %213 = vector.broadcast %210 : vector<10x1xf32> to vector<10x128xf32>
    %214 = arith.subf %202, %213 : vector<10x128xf32>
    %215 = arith.mulf %212, %214 : vector<10x128xf32>
    %cst_72 = arith.constant dense<0.000000e+00> : vector<10xf32>
    %216 = vector.multi_reduction <add>, %215, %cst_72 [1] : vector<10x128xf32> to vector<10xf32>
    %217 = vector.shape_cast %216 : vector<10xf32> to vector<10x1xf32>
    %cst_73 = arith.constant 1.280000e+02 : f32
    %218 = vector.broadcast %cst_73 : f32 to vector<10x1xf32>
    %219 = arith.divf %217, %218 : vector<10x1xf32>
    %220 = vector.broadcast %210 : vector<10x1xf32> to vector<10x128xf32>
    %221 = arith.subf %202, %220 : vector<10x128xf32>
    %cst_74 = arith.constant 9.99999974E-6 : f32
    %222 = vector.broadcast %cst_74 : f32 to vector<10x1xf32>
    %223 = arith.addf %219, %222 : vector<10x1xf32>
    %224 = math.rsqrt %223 : vector<10x1xf32>
    %225 = vector.broadcast %224 : vector<10x1xf32> to vector<10x128xf32>
    %226 = arith.mulf %221, %225 : vector<10x128xf32>
    %227 = vector.broadcast %204 : vector<1x128xf32> to vector<10x128xf32>
    %228 = arith.mulf %226, %227 : vector<10x128xf32>
    %229 = vector.broadcast %206 : vector<1x128xf32> to vector<10x128xf32>
    %230 = arith.addf %228, %229 : vector<10x128xf32>
    %231 = arith.truncf %230 : vector<10x128xf32> to vector<10x128xbf16>
    %c0_75 = arith.constant 0 : index
    %c0_76 = arith.constant 0 : index
    %c0_77 = arith.constant 0 : index
    %232 = vector.load %arg9[%c0_75, %c0_76, %c0_77] : memref<1x128x2048xbf16, #tpu.memory_space<vmem>>, vector<1x128x2048xbf16>
    %233 = vector.shape_cast %232 : vector<1x128x2048xbf16> to vector<128x2048xbf16>
    %cst_78 = arith.constant dense<0.000000e+00> : vector<10x2048xf32>
    %234 = tpu.matmul %231, %233, %cst_78 {dimension_numbers = #tpu.dot_dimension_numbers<[1], [0], [0], [1], [0, 0, 1, 1], [], []>} : vector<10x128xbf16>, vector<128x2048xbf16>, vector<10x2048xf32> -> vector<10x2048xf32>
    %c0_79 = arith.constant 0 : index
    %c0_80 = arith.constant 0 : index
    %c0_81 = arith.constant 0 : index
    %235 = vector.load %arg10[%c0_79, %c0_80, %c0_81] : memref<1x1x2048xf32, #tpu.memory_space<vmem>>, vector<1x1x2048xf32>
    %236 = vector.shape_cast %235 : vector<1x1x2048xf32> to vector<1x2048xf32>
    %237 = vector.broadcast %236 : vector<1x2048xf32> to vector<10x2048xf32>
    %238 = arith.addf %234, %237 : vector<10x2048xf32>
    %cst_82 = arith.constant 5.000000e-01 : f32
    %239 = vector.broadcast %cst_82 : f32 to vector<10x2048xf32>
    %240 = arith.mulf %239, %238 : vector<10x2048xf32>
    %cst_83 = arith.constant 0.707106769 : f32
    %241 = vector.broadcast %cst_83 : f32 to vector<10x2048xf32>
    %242 = arith.mulf %238, %241 : vector<10x2048xf32>
    %cst_84 = arith.constant 0.000000e+00 : f32
    %243 = vector.broadcast %cst_84 : f32 to vector<10x2048xf32>
    %244 = arith.cmpf oge, %242, %243 : vector<10x2048xf32>
    %cst_85 = arith.constant 1.000000e+00 : f32
    %cst_86 = arith.constant -1.000000e+00 : f32
    %245 = vector.broadcast %cst_85 : f32 to vector<10x2048xf32>
    %246 = vector.broadcast %cst_86 : f32 to vector<10x2048xf32>
    %247 = arith.select %244, %245, %246 : vector<10x2048xi1>, vector<10x2048xf32>
    %248 = math.absf %242 : vector<10x2048xf32>
    %cst_87 = arith.constant 0.327591091 : f32
    %249 = vector.broadcast %cst_87 : f32 to vector<10x2048xf32>
    %250 = arith.mulf %249, %248 : vector<10x2048xf32>
    %cst_88 = arith.constant 1.000000e+00 : f32
    %251 = vector.broadcast %cst_88 : f32 to vector<10x2048xf32>
    %252 = arith.addf %251, %250 : vector<10x2048xf32>
    %cst_89 = arith.constant 1.000000e+00 : f32
    %253 = vector.broadcast %cst_89 : f32 to vector<10x2048xf32>
    %254 = arith.divf %253, %252 : vector<10x2048xf32>
    %cst_90 = arith.constant 1.06140542 : f32
    %255 = vector.broadcast %cst_90 : f32 to vector<10x2048xf32>
    %256 = arith.mulf %255, %254 : vector<10x2048xf32>
    %cst_91 = arith.constant -1.45315206 : f32
    %257 = vector.broadcast %cst_91 : f32 to vector<10x2048xf32>
    %258 = arith.addf %256, %257 : vector<10x2048xf32>
    %259 = arith.mulf %258, %254 : vector<10x2048xf32>
    %cst_92 = arith.constant 1.42141378 : f32
    %260 = vector.broadcast %cst_92 : f32 to vector<10x2048xf32>
    %261 = arith.addf %259, %260 : vector<10x2048xf32>
    %262 = arith.mulf %261, %254 : vector<10x2048xf32>
    %cst_93 = arith.constant -0.284496725 : f32
    %263 = vector.broadcast %cst_93 : f32 to vector<10x2048xf32>
    %264 = arith.addf %262, %263 : vector<10x2048xf32>
    %265 = arith.mulf %264, %254 : vector<10x2048xf32>
    %cst_94 = arith.constant 0.254829586 : f32
    %266 = vector.broadcast %cst_94 : f32 to vector<10x2048xf32>
    %267 = arith.addf %265, %266 : vector<10x2048xf32>
    %268 = arith.mulf %267, %254 : vector<10x2048xf32>
    %cst_95 = arith.constant 0.000000e+00 : f32
    %269 = vector.broadcast %cst_95 : f32 to vector<10x2048xf32>
    %270 = arith.subf %269, %248 : vector<10x2048xf32>
    %271 = arith.mulf %270, %248 : vector<10x2048xf32>
    %272 = math.exp %271 : vector<10x2048xf32>
    %273 = arith.mulf %268, %272 : vector<10x2048xf32>
    %cst_96 = arith.constant 1.000000e+00 : f32
    %274 = vector.broadcast %cst_96 : f32 to vector<10x2048xf32>
    %275 = arith.subf %274, %273 : vector<10x2048xf32>
    %276 = arith.mulf %247, %275 : vector<10x2048xf32>
    %cst_97 = arith.constant 1.000000e+00 : f32
    %277 = vector.broadcast %cst_97 : f32 to vector<10x2048xf32>
    %278 = arith.addf %277, %276 : vector<10x2048xf32>
    %279 = arith.mulf %240, %278 : vector<10x2048xf32>
    %280 = arith.truncf %279 : vector<10x2048xf32> to vector<10x2048xbf16>
    %c0_98 = arith.constant 0 : index
    %c0_99 = arith.constant 0 : index
    %c0_100 = arith.constant 0 : index
    %281 = vector.load %arg11[%c0_98, %c0_99, %c0_100] : memref<1x2048x128xbf16, #tpu.memory_space<vmem>>, vector<1x2048x128xbf16>
    %282 = vector.shape_cast %281 : vector<1x2048x128xbf16> to vector<2048x128xbf16>
    %cst_101 = arith.constant dense<0.000000e+00> : vector<10x128xf32>
    %283 = tpu.matmul %280, %282, %cst_101 {dimension_numbers = #tpu.dot_dimension_numbers<[1], [0], [0], [1], [0, 0, 1, 1], [], []>} : vector<10x2048xbf16>, vector<2048x128xbf16>, vector<10x128xf32> -> vector<10x128xf32>
    %c0_102 = arith.constant 0 : index
    %c0_103 = arith.constant 0 : index
    %c0_104 = arith.constant 0 : index
    %284 = vector.load %arg12[%c0_102, %c0_103, %c0_104] : memref<1x1x128xf32, #tpu.memory_space<vmem>>, vector<1x1x128xf32>
    %285 = vector.shape_cast %284 : vector<1x1x128xf32> to vector<1x128xf32>
    %286 = vector.broadcast %285 : vector<1x128xf32> to vector<10x128xf32>
    %287 = arith.addf %283, %286 : vector<10x128xf32>
    %288 = arith.addf %230, %287 : vector<10x128xf32>
    %c0_105 = arith.constant 0 : index
    %c0_106 = arith.constant 0 : index
    %c0_107 = arith.constant 0 : index
    %289 = vector.load %arg13[%c0_105, %c0_106, %c0_107] : memref<1x1x128xf32, #tpu.memory_space<vmem>>, vector<1x1x128xf32>
    %290 = vector.shape_cast %289 : vector<1x1x128xf32> to vector<1x128xf32>
    %c0_108 = arith.constant 0 : index
    %c0_109 = arith.constant 0 : index
    %c0_110 = arith.constant 0 : index
    %291 = vector.load %arg14[%c0_108, %c0_109, %c0_110] : memref<1x1x128xf32, #tpu.memory_space<vmem>>, vector<1x1x128xf32>
    %292 = vector.shape_cast %291 : vector<1x1x128xf32> to vector<1x128xf32>
    %cst_111 = arith.constant dense<0.000000e+00> : vector<10xf32>
    %293 = vector.multi_reduction <add>, %288, %cst_111 [1] : vector<10x128xf32> to vector<10xf32>
    %294 = vector.shape_cast %293 : vector<10xf32> to vector<10x1xf32>
    %cst_112 = arith.constant 1.280000e+02 : f32
    %295 = vector.broadcast %cst_112 : f32 to vector<10x1xf32>
    %296 = arith.divf %294, %295 : vector<10x1xf32>
    %297 = vector.broadcast %296 : vector<10x1xf32> to vector<10x128xf32>
    %298 = arith.subf %288, %297 : vector<10x128xf32>
    %299 = vector.broadcast %296 : vector<10x1xf32> to vector<10x128xf32>
    %300 = arith.subf %288, %299 : vector<10x128xf32>
    %301 = arith.mulf %298, %300 : vector<10x128xf32>
    %cst_113 = arith.constant dense<0.000000e+00> : vector<10xf32>
    %302 = vector.multi_reduction <add>, %301, %cst_113 [1] : vector<10x128xf32> to vector<10xf32>
    %303 = vector.shape_cast %302 : vector<10xf32> to vector<10x1xf32>
    %cst_114 = arith.constant 1.280000e+02 : f32
    %304 = vector.broadcast %cst_114 : f32 to vector<10x1xf32>
    %305 = arith.divf %303, %304 : vector<10x1xf32>
    %306 = vector.broadcast %296 : vector<10x1xf32> to vector<10x128xf32>
    %307 = arith.subf %288, %306 : vector<10x128xf32>
    %cst_115 = arith.constant 9.99999974E-6 : f32
    %308 = vector.broadcast %cst_115 : f32 to vector<10x1xf32>
    %309 = arith.addf %305, %308 : vector<10x1xf32>
    %310 = math.rsqrt %309 : vector<10x1xf32>
    %311 = vector.broadcast %310 : vector<10x1xf32> to vector<10x128xf32>
    %312 = arith.mulf %307, %311 : vector<10x128xf32>
    %313 = vector.broadcast %290 : vector<1x128xf32> to vector<10x128xf32>
    %314 = arith.mulf %312, %313 : vector<10x128xf32>
    %315 = vector.broadcast %292 : vector<1x128xf32> to vector<10x128xf32>
    %316 = arith.addf %314, %315 : vector<10x128xf32>
    %c0_116 = arith.constant 0 : index
    %c0_117 = arith.constant 0 : index
    %317 = vector.load %arg15[%c0_116, %c0_117] : memref<10x128xf32, #tpu.memory_space<vmem>>, vector<10x128xf32>
    tpu.vector_store %arg15[%c0_116, %c0_117], %316 {strides = array<i32>} : memref<10x128xf32, #tpu.memory_space<vmem>>, vector<10x128xf32>,
    return
  }
  func.func @transform_0(%arg0: i32) -> (i32, i32) {
    %c0_i32 = arith.constant 0 : i32
    %c0_i32_0 = arith.constant 0 : i32
    %c0_i32_1 = arith.constant 0 : i32
    return %c0_i32, %c0_i32_0 : i32, i32
  }
  func.func @transform_1(%arg0: i32) -> (i32, i32) {
    %c0_i32 = arith.constant 0 : i32
    %c0_i32_0 = arith.constant 0 : i32
    %c0_i32_1 = arith.constant 0 : i32
    return %c0_i32, %c0_i32_0 : i32, i32
  }
  func.func @transform_2(%arg0: i32) -> (i32, i32, i32) {
    %c0_i32 = arith.constant 0 : i32
    %c0_i32_0 = arith.constant 0 : i32
    %c0_i32_1 = arith.constant 0 : i32
    return %arg0, %c0_i32, %c0_i32_0 : i32, i32, i32
  }
  func.func @transform_3(%arg0: i32) -> (i32, i32, i32) {
    %c0_i32 = arith.constant 0 : i32
    %c0_i32_0 = arith.constant 0 : i32
    %c0_i32_1 = arith.constant 0 : i32
    return %arg0, %c0_i32, %c0_i32_0 : i32, i32, i32
  }
  func.func @transform_4(%arg0: i32) -> (i32, i32, i32) {
    %c0_i32 = arith.constant 0 : i32
    %c0_i32_0 = arith.constant 0 : i32
    %c0_i32_1 = arith.constant 0 : i32
    return %arg0, %c0_i32, %c0_i32_0 : i32, i32, i32
  }
  func.func @transform_5(%arg0: i32) -> (i32, i32, i32) {
    %c0_i32 = arith.constant 0 : i32
    %c0_i32_0 = arith.constant 0 : i32
    %c0_i32_1 = arith.constant 0 : i32
    return %arg0, %c0_i32, %c0_i32_0 : i32, i32, i32
  }
  func.func @transform_6(%arg0: i32) -> (i32, i32, i32) {
    %c0_i32 = arith.constant 0 : i32
    %c0_i32_0 = arith.constant 0 : i32
    %c0_i32_1 = arith.constant 0 : i32
    return %arg0, %c0_i32, %c0_i32_0 : i32, i32, i32
  }
  func.func @transform_7(%arg0: i32) -> (i32, i32, i32) {
    %c0_i32 = arith.constant 0 : i32
    %c0_i32_0 = arith.constant 0 : i32
    %c0_i32_1 = arith.constant 0 : i32
    return %arg0, %c0_i32, %c0_i32_0 : i32, i32, i32
  }
  func.func @transform_8(%arg0: i32) -> (i32, i32, i32) {
    %c0_i32 = arith.constant 0 : i32
    %c0_i32_0 = arith.constant 0 : i32
    %c0_i32_1 = arith.constant 0 : i32
    return %arg0, %c0_i32, %c0_i32_0 : i32, i32, i32
  }
  func.func @transform_9(%arg0: i32) -> (i32, i32, i32) {
    %c0_i32 = arith.constant 0 : i32
    %c0_i32_0 = arith.constant 0 : i32
    %c0_i32_1 = arith.constant 0 : i32
    return %arg0, %c0_i32, %c0_i32_0 : i32, i32, i32
  }
  func.func @transform_10(%arg0: i32) -> (i32, i32, i32) {
    %c0_i32 = arith.constant 0 : i32
    %c0_i32_0 = arith.constant 0 : i32
    %c0_i32_1 = arith.constant 0 : i32
    return %arg0, %c0_i32, %c0_i32_0 : i32, i32, i32
  }
  func.func @transform_11(%arg0: i32) -> (i32, i32, i32) {
    %c0_i32 = arith.constant 0 : i32
    %c0_i32_0 = arith.constant 0 : i32
    %c0_i32_1 = arith.constant 0 : i32
    return %arg0, %c0_i32, %c0_i32_0 : i32, i32, i32
  }
  func.func @transform_12(%arg0: i32) -> (i32, i32, i32) {
    %c0_i32 = arith.constant 0 : i32
    %c0_i32_0 = arith.constant 0 : i32
    %c0_i32_1 = arith.constant 0 : i32
    return %arg0, %c0_i32, %c0_i32_0 : i32, i32, i32
  }
  func.func @transform_13(%arg0: i32) -> (i32, i32, i32) {
    %c0_i32 = arith.constant 0 : i32
    %c0_i32_0 = arith.constant 0 : i32
    %c0_i32_1 = arith.constant 0 : i32
    return %arg0, %c0_i32, %c0_i32_0 : i32, i32, i32
  }
  func.func @transform_14(%arg0: i32) -> (i32, i32) {
    %c0_i32 = arith.constant 0 : i32
    %c0_i32_0 = arith.constant 0 : i32
    %c0_i32_1 = arith.constant 0 : i32
    return %c0_i32, %c0_i32_0 : i32, i32
  }
}

module attributes {stable_mosaic.version = 11 : i64} {
  func.func @_joystick_kernel(%arg0: memref<2x8xf32, #tpu.memory_space<vmem>>, %arg1: memref<8x8xf32, #tpu.memory_space<vmem>>, %arg2: memref<1x8xf32, #tpu.memory_space<vmem>>, %arg3: memref<8x64xf32, #tpu.memory_space<vmem>>, %arg4: memref<1x64xf32, #tpu.memory_space<vmem>>, %arg5: memref<2x64xf32, #tpu.memory_space<vmem>>) attributes {dimension_semantics = [], scalar_prefetch = 0 : i64, scratch_operands = 0 : i64, tpu.core_type = #tpu.core_type<tc>} {
    %c0 = arith.constant 0 : index
    %c0_0 = arith.constant 0 : index
    %0 = vector.load %arg0[%c0, %c0_0] : memref<2x8xf32, #tpu.memory_space<vmem>>, vector<2x8xf32>
    %c0_1 = arith.constant 0 : index
    %c0_2 = arith.constant 0 : index
    %1 = vector.load %arg1[%c0_1, %c0_2] : memref<8x8xf32, #tpu.memory_space<vmem>>, vector<8x8xf32>
    %cst = arith.constant dense<0.000000e+00> : vector<2x8xf32>
    %2 = tpu.matmul %0, %1, %cst {dimension_numbers = #tpu.dot_dimension_numbers<[1], [0], [0], [1], [0, 0, 1, 1], [], []>} : vector<2x8xf32>, vector<8x8xf32>, vector<2x8xf32> -> vector<2x8xf32>
    %c0_3 = arith.constant 0 : index
    %c0_4 = arith.constant 0 : index
    %3 = vector.load %arg2[%c0_3, %c0_4] : memref<1x8xf32, #tpu.memory_space<vmem>>, vector<1x8xf32>
    %4 = vector.broadcast %3 : vector<1x8xf32> to vector<2x8xf32>
    %5 = arith.addf %2, %4 : vector<2x8xf32>
    %cst_5 = arith.constant 0.000000e+00 : f32
    %6 = vector.broadcast %cst_5 : f32 to vector<2x8xf32>
    %7 = arith.maximumf %5, %6 : vector<2x8xf32>
    %c0_6 = arith.constant 0 : index
    %c0_7 = arith.constant 0 : index
    %8 = vector.load %arg3[%c0_6, %c0_7] : memref<8x64xf32, #tpu.memory_space<vmem>>, vector<8x64xf32>
    %cst_8 = arith.constant dense<0.000000e+00> : vector<2x64xf32>
    %9 = tpu.matmul %7, %8, %cst_8 {dimension_numbers = #tpu.dot_dimension_numbers<[1], [0], [0], [1], [0, 0, 1, 1], [], []>} : vector<2x8xf32>, vector<8x64xf32>, vector<2x64xf32> -> vector<2x64xf32>
    %c0_9 = arith.constant 0 : index
    %c0_10 = arith.constant 0 : index
    %10 = vector.load %arg4[%c0_9, %c0_10] : memref<1x64xf32, #tpu.memory_space<vmem>>, vector<1x64xf32>
    %11 = vector.broadcast %10 : vector<1x64xf32> to vector<2x64xf32>
    %12 = arith.addf %9, %11 : vector<2x64xf32>
    %cst_11 = arith.constant 0.000000e+00 : f32
    %13 = vector.broadcast %cst_11 : f32 to vector<2x64xf32>
    %14 = arith.maximumf %12, %13 : vector<2x64xf32>
    %c0_12 = arith.constant 0 : index
    %c0_13 = arith.constant 0 : index
    %15 = vector.load %arg5[%c0_12, %c0_13] : memref<2x64xf32, #tpu.memory_space<vmem>>, vector<2x64xf32>
    tpu.vector_store %arg5[%c0_12, %c0_13], %14 {strides = array<i32>} : memref<2x64xf32, #tpu.memory_space<vmem>>, vector<2x64xf32>,
    return
  }
}

</mosaic_0001>

<bundles_post_ra>
// kernel: btsn_forward.4
= control target key start
LH: loop header
LB: loop body
LE: loop exit
PB: predicated region body
PF: predicated region fallthrough
CT: control target
= control target key end

     0   :  { %8 = vsyncpa [#allocation3], 0  ;;  %s855_s0 = inlined_call_operand.vmem [shape: f32[8,768], index: 0, kind: input, shape index: {}]   ;;  %s856_s1 = inlined_call_operand.hbm [shape: bf16[768,128], index: 1, kind: input, shape index: {}]   ;;  %s857_s2 = inlined_call_operand.hbm [shape: f32[1,128], index: 2, kind: input, shape index: {}]   ;;  %s858_s3 = inlined_call_operand.vmem [shape: f32[8,128], index: 3, kind: output, shape index: {}]  }
   0x1   :  { %9 = vsyncpa [#allocation5], 0  ;;  %s786_s12 = smov [#allocation2]   ;;  %s738_s16 = scalar_lea.hbm %s856_s1, 6144 }
   0x2   :  { %s17_s13 = sshll.u32 %s786_s12, 4  ;;  %p739_p0 = scmp.ne.s32.totalorder %s856_s1, %s738_s16  ;;  %s18_s13 = int_to_ptr.vmem [resolvable:$true] %s17_s13 }
   0x3   :  { %p742_p1 = scmp.lt.u32.totalorder %s738_s16, %s856_s1 }
   0x5   :  { %p744_p2 = pnand %p742_p1, %p739_p0 }
   0x7   :  { %747 = shalt.err (!%p744_p2)
}
   0x8   :  { %s748_s21 = scalar_lea.vmem %s18_s13, 6144  ;;  %p753_p4 = scmp.lt.s32.totalorder %s18_s13, %s18_s13 }
   0x9   :  { %p749_p3 = scmp.ne.s32.totalorder %s18_s13, %s748_s21  ;;  %p754_p5 = scmp.lt.s32.totalorder %s748_s21, %s748_s21 }
   0xb   :  { %p755_p6 = por %p754_p5, %p753_p4 }
   0xd   :  { %p756_p7 = pnand %p755_p6, %p749_p3 }
   0xf   :  { %759 = shalt.err (!%p756_p7)
}
  0x10   :  { %s787_s22 = smov 64   ;;  %s788_s23 = smov 4  }
  0x11   :  { %23 = dma.hbm_to_vmem [thread:$0]  %s856_s1, 6144, %s18_s13, [#allocation3], %s787_s22, %s787_s22, %s788_s23  }
  0x12   :  { %s789_s26 = smov [#allocation4]   ;;  %s760_s30 = scalar_lea.hbm %s857_s2, 16 }
  0x13   :  { %s30_s27 = sshll.u32 %s789_s26, 4  ;;  %p761_p8 = scmp.ne.s32.totalorder %s857_s2, %s760_s30  ;;  %s31_s27 = int_to_ptr.vmem [resolvable:$true] %s30_s27 }
  0x14   :  { %p764_p9 = scmp.lt.u32.totalorder %s760_s30, %s857_s2 }
  0x16   :  { %p766_p10 = pnand %p764_p9, %p761_p8 }
  0x18   :  { %769 = shalt.err (!%p766_p10)
}
  0x19   :  { %s770_s8 = scalar_lea.vmem %s31_s27, 16  ;;  %s774_s1 = scalar_lea.vmem %s31_s27, 32 }
  0x1a   :  { %p771_p11 = scmp.ne.s32.totalorder %s31_s27, %s770_s8  ;;  %p775_p12 = scmp.lt.s32.totalorder %s31_s27, %s31_s27 }
  0x1b   :  { %p776_p13 = scmp.lt.s32.totalorder %s774_s1, %s770_s8 }
  0x1d   :  { %p777_p0 = por %p776_p13, %p775_p12 }
  0x1f   :  { %p778_p1 = pnand %p777_p0, %p771_p11 }
  0x21   :  { %781 = shalt.err (!%p778_p1)
}
  0x22   :  { %33 = dma.hbm_to_vmem [thread:$0]  %s857_s2, 16, %s31_s27, [#allocation5]  }
  0x23   :  { %782 = dma.done.wait [#allocation3], 6144  }
  0x24   :  { %783 = vsyncadd [#allocation3], 4294961152 }
  0x25   :  { %784 = dma.done.wait [#allocation5], 16  }
  0x26   :  { %785 = vsyncadd [#allocation5], 4294967280  ;;  %v690_v0 = vld [vmem:[#allocation2 + $0x40] sm:$0xff]   ;;  %v694_v4 = vld [vmem:[#allocation2 + $0x48] sm:$0xff]  }
  0x27   :  { %v691_v1 = vld [vmem:[#allocation2] sm:$0xff]   ;;  %620 = vmatprep.subr.bf16.mxu0 %v690_v0  ;;  %v695_v5 = vld [vmem:[#allocation2 + $0x8] sm:$0xff]   ;;  %v698_v8 = vld [vmem:[#allocation2 + $0x50] sm:$0xff]  }
  0x28   :  { %v692_v2 = vld [vmem:[#allocation2 + $0xc0] sm:$0xff]   ;;  %621 = vmatpush3.bf16.msra.mxu0 %v691_v1  ;;  %v696_v6 = vld [vmem:[#allocation2 + $0xc8] sm:$0xff]   ;;  %v699_v9 = vld [vmem:[#allocation2 + $0x10] sm:$0xff]  }
  0x29   :  { %v693_v3 = vld [vmem:[#allocation2 + $0x80] sm:$0xff]   ;;  %642 = vmatprep.subr.bf16.mxu1 %v692_v2  ;;  %622 = vmatprep.subr.bf16.mxu0 %v694_v4  ;;  %v697_v7 = vld [vmem:[#allocation2 + $0x88] sm:$0xff]   ;;  %v700_v10 = vld [vmem:[#allocation2 + $0xd0] sm:$0xff]  }
  0x2a   :  { %643 = vmatpush3.bf16.msra.mxu1 %v693_v3  ;;  %v701_v11 = vld [vmem:[#allocation2 + $0x90] sm:$0xff]   ;;  %v702_v12 = vld [vmem:[#allocation2 + $0x58] sm:$0xff]   ;;  %v706_v16 = vld [vmem:[#allocation2 + $0x60] sm:$0xff]  }
  0x2b   :  { %644 = vmatprep.subr.bf16.mxu1 %v696_v6  ;;  %v703_v13 = vld [vmem:[#allocation2 + $0x18] sm:$0xff]   ;;  %v707_v17 = vld [vmem:[#allocation2 + $0x20] sm:$0xff]   ;;  %v710_v20 = vld [vmem:[#allocation2 + $0x68] sm:$0xff]  }
  0x2c   :  { %623 = vmatpush3.bf16.msra.mxu0 %v695_v5  ;;  %v704_v14 = vld [vmem:[#allocation2 + $0xd8] sm:$0xff]   ;;  %v708_v18 = vld [vmem:[#allocation2 + $0xe0] sm:$0xff]   ;;  %v711_v21 = vld [vmem:[#allocation2 + $0x28] sm:$0xff]  }
  0x2d   :  { %624 = vmatprep.subr.bf16.mxu0 %v698_v8  ;;  %v705_v15 = vld [vmem:[#allocation2 + $0x98] sm:$0xff]   ;;  %v709_v19 = vld [vmem:[#allocation2 + $0xa0] sm:$0xff]   ;;  %v712_v22 = vld [vmem:[#allocation2 + $0xe8] sm:$0xff]  }
  0x2e   :  { %645 = vmatpush3.bf16.msra.mxu1 %v697_v7  ;;  %v713_v23 = vld [vmem:[#allocation2 + $0xa8] sm:$0xff]   ;;  %v714_v24 = vld [vmem:[#allocation2 + $0x70] sm:$0xff]   ;;  %v718_v28 = vld [vmem:[#allocation2 + $0x78] sm:$0xff]  }
  0x2f   :  { %646 = vmatprep.subr.bf16.mxu1 %v700_v10  ;;  %v715_v25 = vld [vmem:[#allocation2 + $0x30] sm:$0xff]   ;;  %v719_v29 = vld [vmem:[#allocation2 + $0x38] sm:$0xff]   ;;  %v42_v31 = vld [vmem:[%s855_s0 + $0x8] sm:$0xff] }
  0x30   :  { %625 = vmatpush3.bf16.msra.mxu0 %v699_v9  ;;  %v716_v26 = vld [vmem:[#allocation2 + $0xf0] sm:$0xff]   ;;  %v720_v30 = vld [vmem:[#allocation2 + $0xf8] sm:$0xff]   ;;  %v48_v32 = vpack.c.bf16 %v42_v31, %v42_v31  ;;  %v41_v34 = vld [vmem:[%s855_s0] sm:$0xff] }
  0x31   :  { %626 = vmatprep.subr.bf16.mxu0 %v702_v12  ;;  %v717_v27 = vld [vmem:[#allocation2 + $0xb0] sm:$0xff]   ;;  %v721_v33 = vld [vmem:[#allocation2 + $0xb8] sm:$0xff]   ;;  %v47_v35 = vpack.c.bf16 %v41_v34, %v41_v34  ;;  %v722_v36 = vld [vmem:[#allocation2 + $0x140] sm:$0xff]  }
  0x32   :  { %647 = vmatpush3.bf16.msra.mxu1 %v701_v11  ;;  %v44_v37 = vld [vmem:[%s855_s0 + $0x18] sm:$0xff]  ;;  %476 = vmatprep.mubr.bf16.mxu0 %v48_v32  ;;  %v723_v39 = vld [vmem:[#allocation2 + $0x100] sm:$0xff]   ;;  %v43_v40 = vld [vmem:[%s855_s0 + $0x10] sm:$0xff] }
  0x33   :  { %648 = vmatprep.subr.bf16.mxu1 %v704_v14  ;;  %v50_v38 = vpack.c.bf16 %v44_v37, %v44_v37  ;;  %v49_v41 = vpack.c.bf16 %v43_v40, %v43_v40  ;;  %v724_v42 = vld [vmem:[#allocation2 + $0x148] sm:$0xff]   ;;  %v726_v44 = vld [vmem:[#allocation2 + $0x150] sm:$0xff]   ;;  %v728_v46 = vld [vmem:[#allocation2 + $0x158] sm:$0xff]  }
  0x34   :  { %627 = vmatpush3.bf16.msra.mxu0 %v703_v13  ;;  %v725_v43 = vld [vmem:[#allocation2 + $0x108] sm:$0xff]   ;;  %v727_v45 = vld [vmem:[#allocation2 + $0x110] sm:$0xff]   ;;  %v729_v47 = vld [vmem:[#allocation2 + $0x118] sm:$0xff]  }
  0x35   :  { %628 = vmatprep.subr.bf16.mxu0 %v706_v16  ;;  %516 = vmatprep.mubr.bf16.mxu1 %v50_v38  ;;  %v730_v48 = vld [vmem:[#allocation2 + $0x160] sm:$0xff]   ;;  %v732_v50 = vld [vmem:[#allocation2 + $0x168] sm:$0xff]   ;;  %v734_v54 = vld [vmem:[#allocation2 + $0x170] sm:$0xff]  }
  0x36   :  { %649 = vmatpush3.bf16.msra.mxu1 %v705_v15  ;;  %v731_v49 = vld [vmem:[#allocation2 + $0x120] sm:$0xff]   ;;  %v46_v51 = vld [vmem:[%s855_s0 + $0x28] sm:$0xff]  ;;  %v735_v55 = vld [vmem:[#allocation2 + $0x130] sm:$0xff]  }
  0x37   :  { %650 = vmatprep.subr.bf16.mxu1 %v708_v18  ;;  %v52_v52 = vpack.c.bf16 %v46_v51, %v46_v51  ;;  %v733_v53 = vld [vmem:[#allocation2 + $0x128] sm:$0xff]   ;;  %v736_v56 = vld [vmem:[#allocation2 + $0x178] sm:$0xff]   ;;  %v45_v58 = vld [vmem:[%s855_s0 + $0x20] sm:$0xff] }
  0x38   :  { %629 = vmatpush3.bf16.msra.mxu0 %v707_v17  ;;  %v737_v57 = vld [vmem:[#allocation2 + $0x138] sm:$0xff]   ;;  %v51_v59 = vpack.c.bf16 %v45_v58, %v45_v58  ;;  %v571_v61 = vld [vmem:[#allocation4] ss:$0 sm:$0xff] }
  0x39   :  { %630 = vmatprep.subr.bf16.mxu0 %v710_v20 }
  0x3a   :  { %651 = vmatpush3.bf16.msra.mxu1 %v709_v19 }
  0x3b   :  { %652 = vmatprep.subr.bf16.mxu1 %v712_v22 }
  0x3c   :  { %631 = vmatpush3.bf16.msra.mxu0 %v711_v21 }
  0x3d   :  { %632 = vmatprep.subr.bf16.mxu0 %v714_v24 }
  0x3e   :  { %653 = vmatpush3.bf16.msra.mxu1 %v713_v23 }
  0x3f   :  { %654 = vmatprep.subr.bf16.mxu1 %v716_v26 }
  0x40   :  { %633 = vmatpush3.bf16.msra.mxu0 %v715_v25 }
  0x41   :  { %634 = vmatprep.subr.bf16.mxu0 %v718_v28 }
  0x42   :  { %655 = vmatpush3.bf16.msra.mxu1 %v717_v27 }
  0x43   :  { %656 = vmatprep.subr.bf16.mxu1 %v720_v30 }
  0x44   :  { %635 = vmatpush3.bf16.msra.mxu0 %v719_v29 }
  0x45   :  { %664 = vmatprep.subr.bf16.mxu0 %v722_v36 }
  0x46   :  { %657 = vmatpush3.bf16.msra.mxu1 %v721_v33 }
  0x47   :  { %477 = vmatmul.mubr.bf16.vlgmr.msra.gmra.mrb[0].mxu0 %v47_v35 }
  0x48   :  { %665 = vmatpush3.bf16.msra.mxu0 %v723_v39  ;;  %556 = vmatprep.mubr.bf16.mxu0 %v52_v52 }
  0x49   :  { %517 = vmatmul.mubr.bf16.vlgmr.msra.gmra.mrb[0].mxu1 %v49_v41  ;;  %666 = vmatprep.subr.bf16.mxu0 %v724_v42 }
  0x4c   :  { %667 = vmatpush3.bf16.msra.mxu0 %v725_v43 }
  0x4d   :  { %668 = vmatprep.subr.bf16.mxu0 %v726_v44 }
  0x50   :  { %669 = vmatpush3.bf16.msra.mxu0 %v727_v45 }
  0x51   :  { %670 = vmatprep.subr.bf16.mxu0 %v728_v46 }
  0x54   :  { %671 = vmatpush3.bf16.msra.mxu0 %v729_v47 }
  0x55   :  { %672 = vmatprep.subr.bf16.mxu0 %v730_v48 }
  0x58   :  { %673 = vmatpush3.bf16.msra.mxu0 %v731_v49 }
  0x59   :  { %674 = vmatprep.subr.bf16.mxu0 %v732_v50 }
  0x5c   :  { %675 = vmatpush3.bf16.msra.mxu0 %v733_v53 }
  0x5d   :  { %676 = vmatprep.subr.bf16.mxu0 %v734_v54 }
  0x60   :  { %677 = vmatpush3.bf16.msra.mxu0 %v735_v55 }
  0x61   :  { %678 = vmatprep.subr.bf16.mxu0 %v736_v56 }
  0x64   :  { %679 = vmatpush3.bf16.msra.mxu0 %v737_v57 }
  0x67   :  { %557 = vmatmul.mubr.bf16.vlgmr.msra.gmra.mrb[4].mxu0 %v51_v59 }
 0x11a   :  { %v636_v60 = vpop.f32.mrb[0].mxu0 }
 0x11b   :  { %v637_v62 = vpop.f32.mrb[1].mxu0 }
 0x11c   :  { %v638_v63 = vadd.f32 %v637_v62, %v636_v60  ;;  %v639_v0 = vpop.f32.mrb[2].mxu0  ;;  %v658_v1 = vpop.f32.mrb[0].mxu1 }
 0x11d   :  { %v640_v2 = vpop.f32.mrb[3].mxu0  ;;  %v659_v4 = vpop.f32.mrb[1].mxu1 }
 0x11e   :  { %v479_v3 = vadd.f32 %v638_v63, %v571_v61  ;;  %v660_v5 = vadd.f32 %v659_v4, %v658_v1  ;;  %v661_v6 = vpop.f32.mrb[2].mxu1 }
 0x11f   :  { %v662_v7 = vpop.f32.mrb[3].mxu1 }
 0x120   :  { %v519_v8 = vadd.f32 %v660_v5, %v479_v3 }
 0x13a   :  { %v680_v9 = vpop.f32.mrb[4].mxu0 }
 0x13b   :  { %v681_v10 = vpop.f32.mrb[5].mxu0 }
 0x13c   :  { %v682_v11 = vadd.f32 %v681_v10, %v680_v9  ;;  %v683_v12 = vpop.f32.mrb[6].mxu0 }
 0x13d   :  { %v684_v13 = vpop.f32.mrb[7].mxu0 }
 0x13e   :  { %v559_v14 = vadd.f32 %v682_v11, %v519_v8 }
 0x140   :  { %564 = vst [vmem:[%s858_s3] sm:$0xff] %v559_v14 }
 0x141   :  { %569 = vsyncpa [#allocation3], 1 }
 0x142   :  { %570 = vsyncpa [#allocation5], 1 }

// kernel: btsn_forward.6
= control target key start
LH: loop header
LB: loop body
LE: loop exit
PB: predicated region body
PF: predicated region fallthrough
CT: control target
= control target key end

     0   :  { %vm24_vm0 = vcmask 1041408   ;;  %s379_s0 = inlined_call_operand.vmem [shape: f32[2,128], index: 0, kind: input, shape index: {}]   ;;  %s380_s1 = inlined_call_operand.vmem [shape: f32[1,128], index: 1, kind: input, shape index: {}]   ;;  %s381_s2 = inlined_call_operand.vmem [shape: f32[1,128], index: 2, kind: input, shape index: {}]   ;;  %s382_s3 = inlined_call_operand.vmem [shape: f32[128,64], index: 3, kind: input, shape index: {}]   ;;  %s383_s4 = inlined_call_operand.vmem [shape: f32[1,64], index: 4, kind: input, shape index: {}]   ;;  %s384_s5 = inlined_call_operand.hbm [shape: f32[2,64], index: 5, kind: output, shape index: {}]  }
   0x1   :  { %v21_v0 = vld [vmem:[%s379_s0] sm:$0x3] }
   0x2   :  { %10 = vsyncpa [#allocation3], 0  ;;  %v25_v1 = vsel %vm24_vm0, %v21_v0, 0.0  ;;  %v53_v2 = vld [vmem:[%s382_s3] sm:$0xff]  ;;  %v54_v3 = vld [vmem:[%s382_s3 + $0x8] sm:$0xff]  ;;  %v271_v5 = vmov 0.0|0.0  }
   0x3   :  { %26 = vadd.xlane.f32.xlu0 %v25_v1  ;;  %v55_v4 = vld [vmem:[%s382_s3 + $0x10] sm:$0xff]  ;;  %217 = vmatprep.subr.bf16.mxu0 %v271_v5  ;;  %v218_v6 = vpack.c.bf16 %v54_v3, %v53_v2  ;;  %v56_v7 = vld [vmem:[%s382_s3 + $0x18] sm:$0xff]  ;;  %v57_v9 = vld [vmem:[%s382_s3 + $0x20] sm:$0xff]  ;;  %vm272_vm1 = vmmov 0   ;;  %v273_v25 = vmov 0.0   ;;  %s274_s30 = smov [#allocation2]  }
   0x4   :  { %v221_v8 = vpack.c.bf16 %v56_v7, %v55_v4  ;;  %v58_v10 = vld [vmem:[%s382_s3 + $0x28] sm:$0xff]  ;;  %v59_v17 = vld [vmem:[%s382_s3 + $0x30] sm:$0xff]  ;;  %v60_v18 = vld [vmem:[%s382_s3 + $0x38] sm:$0xff]  ;;  %214 = vmatprep.mubr.msk.f32.mxu0 %vm272_vm1, %v273_v25  ;;  %s154_s6 = sshll.u32 %s274_s30, 4  ;;  %vm146_vm2 = vcmask 517120   ;;  %s155_s6 = int_to_ptr.vmem [resolvable:$true] %s154_s6 }
   0x5   :  { %219 = vmatpush3.bf16.msra.mxu0 %v218_v6  ;;  %v224_v11 = vpack.c.bf16 %v58_v10, %v57_v9  ;;  %v227_v19 = vpack.c.bf16 %v60_v18, %v59_v17  ;;  %v61_v20 = vld [vmem:[%s382_s3 + $0x40] sm:$0xff]  ;;  %v62_v21 = vld [vmem:[%s382_s3 + $0x48] sm:$0xff]  ;;  %v63_v23 = vld [vmem:[%s382_s3 + $0x50] sm:$0xff]  ;;  %p252_p1 = scmp.lt.s32.totalorder %s155_s6, %s155_s6 }
   0x6   :  { %220 = vmatprep.subr.bf16.mxu0 %v271_v5  ;;  %v230_v22 = vpack.c.bf16 %v62_v21, %v61_v20  ;;  %v64_v24 = vld [vmem:[%s382_s3 + $0x58] sm:$0xff]  ;;  %v65_v27 = vld [vmem:[%s382_s3 + $0x60] sm:$0xff]  ;;  %v66_v28 = vld [vmem:[%s382_s3 + $0x68] sm:$0xff] }
   0x7   :  { %v233_v26 = vpack.c.bf16 %v64_v24, %v63_v23  ;;  %v236_v29 = vpack.c.bf16 %v66_v28, %v65_v27  ;;  %v67_v30 = vld [vmem:[%s382_s3 + $0x70] sm:$0xff]  ;;  %v68_v31 = vld [vmem:[%s382_s3 + $0x78] sm:$0xff]  ;;  %v162_v37 = vld [vmem:[%s380_s1] ss:$0 sm:$0xff]  ;;  %s247_s1 = scalar_lea.vmem %s155_s6, 32 }
   0x8   :  { %v239_v32 = vpack.c.bf16 %v68_v31, %v67_v30  ;;  %v163_v39 = vld [vmem:[%s381_s2] ss:$0 sm:$0xff]  ;;  %p248_p0 = scmp.ne.s32.totalorder %s155_s6, %s247_s1  ;;  %p253_p2 = scmp.lt.s32.totalorder %s247_s1, %s247_s1 }
   0x9   :  { %222 = vmatpush3.bf16.msra.mxu0 %v221_v8  ;;  %v164_v42 = vld [vmem:[%s383_s4] ss:$0 sm:$0xff] }
   0xa   :  { %223 = vmatprep.subr.bf16.mxu0 %v271_v5  ;;  %p254_p3 = por %p253_p2, %p252_p1 }
   0xc   :  { %p255_p4 = pnand %p254_p3, %p248_p0 }
   0xd   :  { %225 = vmatpush3.bf16.msra.mxu0 %v224_v11 }
   0xe   :  { %226 = vmatprep.subr.bf16.mxu0 %v271_v5 }
  0x11   :  { %228 = vmatpush3.bf16.msra.mxu0 %v227_v19 }
  0x12   :  { %229 = vmatprep.subr.bf16.mxu0 %v271_v5 }
  0x15   :  { %231 = vmatpush3.bf16.msra.mxu0 %v230_v22 }
  0x16   :  { %232 = vmatprep.subr.bf16.mxu0 %v271_v5 }
  0x19   :  { %234 = vmatpush3.bf16.msra.mxu0 %v233_v26 }
  0x1a   :  { %235 = vmatprep.subr.bf16.mxu0 %v271_v5 }
  0x1d   :  { %237 = vmatpush3.bf16.msra.mxu0 %v236_v29 }
  0x1e   :  { %238 = vmatprep.subr.bf16.mxu0 %v271_v5 }
  0x21   :  { %240 = vmatpush3.bf16.msra.mxu0 %v239_v32 }
  0x90   :  { %v27_v12 = vpop.xlane.xlu0 %26 }
  0x91   :  { %v29_v13 = vmul.f32 0.0078125, %v27_v12 }
  0x93   :  { %v30_v14 = vsub.f32 %v21_v0, %v29_v13 }
  0x95   :  { %v31_v15 = vmul.f32 %v30_v14, %v30_v14 }
  0x97   :  { %v32_v16 = vsel %vm24_vm0, %v31_v15, 0.0 }
  0x98   :  { %33 = vadd.xlane.f32.xlu0 %v32_v16 }
 0x125   :  { %v34_v33 = vpop.xlane.xlu0 %33 }
 0x126   :  { %v35_v34 = vmul.f32 0.0078125, %v34_v33 }
 0x128   :  { %v36_v35 = vadd.f32 1e-06, %v35_v34 }
 0x12a   :  { %245 = vrsqrt.f32 %v36_v35 }
 0x134   :  { %v246_v36 = vpop.eup %245 }
 0x135   :  { %v38_v38 = vmul.f32 %v246_v36, %v30_v14 }
 0x137   :  { %v45_v40 = vmul.f32 %v162_v37, %v38_v38 }
 0x139   :  { %v52_v41 = vadd.f32 %v163_v39, %v45_v40 }
 0x13b   :  { %215 = vmatmul.mubr.f32.vlgmr.msra.gmra.mrb[0].mxu0 %v52_v41 }
 0x20e   :  { %v142_v43 = vpop.f32.mrb[0].mxu0 }
 0x20f   :  { %v143_v44 = vadd.f32 %v164_v42, %v142_v43  ;;  %v216_v45 = vpop.f32.mrb[1].mxu0 }
 0x211   :  { %147 = vst.msk [vmem:[#allocation2] sm:$0x3] %vm146_vm2, %v143_v44 }
 0x212   :  { %258 = shalt.err (!%p255_p4)
}
 0x213   :  { %s259_s8 = scalar_lea.hbm %s384_s5, 32 }
 0x214   :  { %p260_p5 = scmp.ne.s32.totalorder %s384_s5, %s259_s8  ;;  %p263_p6 = scmp.lt.u32.totalorder %s259_s8, %s384_s5 }
 0x216   :  { %p265_p7 = pnand %p263_p6, %p260_p5 }
 0x218   :  { %268 = shalt.err (!%p265_p7)
}
 0x219   :  { %157 = dma.vmem_to_hbm [thread:$0]  %s155_s6, 32, %s384_s5, [#allocation3]  }
 0x21a   :  { %269 = dma.done.wait [#allocation3], 32  }
 0x21b   :  { %270 = vsyncadd [#allocation3], 4294967264 }
 0x21c   :  { %161 = vsyncpa [#allocation3], 1 }

// kernel: btsn_forward.7
= control target key start
LH: loop header
LB: loop body
LE: loop exit
PB: predicated region body
PF: predicated region fallthrough
CT: control target
= control target key end

     0   :  { %vm30_vm0 = vcmask 64512   ;;  %v248_v2 = vmov 0.0   ;;  %vm249_vm1 = vmmov 0   ;;  %s310_s0 = inlined_call_operand.vmem [shape: f32[2,8], index: 0, kind: input, shape index: {}]   ;;  %s311_s1 = inlined_call_operand.vmem [shape: f32[8,8], index: 1, kind: input, shape index: {}]   ;;  %s312_s2 = inlined_call_operand.vmem [shape: f32[1,8], index: 2, kind: input, shape index: {}]   ;;  %s313_s3 = inlined_call_operand.vmem [shape: f32[8,64], index: 3, kind: input, shape index: {}]   ;;  %s314_s4 = inlined_call_operand.vmem [shape: f32[1,64], index: 4, kind: input, shape index: {}]   ;;  %s315_s5 = inlined_call_operand.hbm [shape: f32[2,64], index: 5, kind: output, shape index: {}]  }
   0x1   :  { %v22_v0 = vld [vmem:[%s311_s1] sm:$0xff]  ;;  %211 = vmatprep.subr.mxu0 %v248_v2  ;;  %213 = vmatprep.mubr.msk.f32.mxu0 %vm249_vm1, %v248_v2 }
   0x2   :  { %v21_v1 = vld [vmem:[%s310_s0] sm:$0x3] }
   0x3   :  { %10 = vsyncpa [#allocation3], 0  ;;  %212 = vmatpush3.msra.mxu0 %v22_v0  ;;  %216 = vmatprep.subr.mxu1 %v248_v2  ;;  %v105_v3 = vld [vmem:[%s313_s3] sm:$0xff]  ;;  %s250_s26 = smov [#allocation2]   ;;  %vm187_vm2 = vcmask 517120  }
   0x4   :  { %214 = vmatmul.mubr.msk.f32.vlgmr.msra.gmra.mrb[0].mxu0 %vm30_vm0, %v21_v1  ;;  %218 = vmatprep.mubr.msk.f32.mxu1 %vm249_vm1, %v248_v2  ;;  %v203_v4 = vld [vmem:[%s312_s2] ss:$0 sm:$0xff]  ;;  %s195_s27 = sshll.u32 %s250_s26, 4  ;;  %s196_s27 = int_to_ptr.vmem [resolvable:$true] %s195_s27 }
   0x5   :  { %217 = vmatpush3.msra.mxu1 %v105_v3  ;;  %v205_v9 = vld [vmem:[%s314_s4] ss:$0 sm:$0xff]  ;;  %s224_s2 = scalar_lea.vmem %s196_s27, 32  ;;  %p229_p1 = scmp.lt.s32.totalorder %s196_s27, %s196_s27 }
   0x6   :  { %p225_p0 = scmp.ne.s32.totalorder %s196_s27, %s224_s2  ;;  %p230_p2 = scmp.lt.s32.totalorder %s224_s2, %s224_s2 }
   0x8   :  { %p231_p3 = por %p230_p2, %p229_p1 }
   0xa   :  { %p232_p4 = pnand %p231_p3, %p225_p0 }
  0xd7   :  { %v100_v5 = vpop.f32.mrb[0].mxu0 }
  0xd8   :  { %v101_v6 = vadd.f32 %v203_v4, %v100_v5  ;;  %v215_v7 = vpop.f32.mrb[1].mxu0 }
  0xda   :  { %v104_v8 = vmax.f32 %v101_v6, 0.0 }
  0xdc   :  { %219 = vmatmul.mubr.msk.f32.vlgmr.msra.gmra.mrb[0].mxu1 %vm30_vm0, %v104_v8 }
 0x1af   :  { %v182_v10 = vpop.f32.mrb[0].mxu1 }
 0x1b0   :  { %v183_v11 = vadd.f32 %v205_v9, %v182_v10  ;;  %v220_v12 = vpop.f32.mrb[1].mxu1 }
 0x1b2   :  { %v186_v13 = vmax.f32 %v183_v11, 0.0 }
 0x1b4   :  { %188 = vst.msk [vmem:[#allocation2] sm:$0x3] %vm187_vm2, %v186_v13 }
 0x1b5   :  { %235 = shalt.err (!%p232_p4)
}
 0x1b6   :  { %s236_s4 = scalar_lea.hbm %s315_s5, 32 }
 0x1b7   :  { %p237_p5 = scmp.ne.s32.totalorder %s315_s5, %s236_s4  ;;  %p240_p6 = scmp.lt.u32.totalorder %s236_s4, %s315_s5 }
 0x1b9   :  { %p242_p7 = pnand %p240_p6, %p237_p5 }
 0x1bb   :  { %245 = shalt.err (!%p242_p7)
}
 0x1bc   :  { %198 = dma.vmem_to_hbm [thread:$0]  %s196_s27, 32, %s315_s5, [#allocation3]  }
 0x1bd   :  { %246 = dma.done.wait [#allocation3], 32  }
 0x1be   :  { %247 = vsyncadd [#allocation3], 4294967264 }
 0x1bf   :  { %202 = vsyncpa [#allocation3], 1 }

// kernel: btsn_forward.5
= control target key start
LH: loop header
LB: loop body
LE: loop exit
PB: predicated region body
PF: predicated region fallthrough
CT: control target
= control target key end

     0   :  { %s11112_s0 = inlined_call_operand.vmem [shape: f32[10,128], index: 0, kind: input, shape index: {}]   ;;  %s11113_s1 = inlined_call_operand.vmem [shape: f32[10,10], index: 1, kind: input, shape index: {}]   ;;  %s11114_s2 = inlined_call_operand.vmem [shape: bf16[6,128,384], index: 2, kind: input, shape index: {}]   ;;  %s11115_s3 = inlined_call_operand.hbm [shape: f32[6,1,384], index: 3, kind: input, shape index: {}]   ;;  %s11116_s4 = inlined_call_operand.hbm [shape: bf16[6,128,128], index: 4, kind: input, shape index: {}]   ;;  %s11117_s5 = inlined_call_operand.hbm [shape: f32[6,1,128], index: 5, kind: input, shape index: {}]   ;;  %s11118_s6 = inlined_call_operand.hbm [shape: f32[6,1,128], index: 6, kind: input, shape index: {}]   ;;  %s11119_s7 = inlined_call_operand.hbm [shape: f32[6,1,128], index: 7, kind: input, shape index: {}]   ;;  %s11120_s8 = inlined_call_operand.hbm [shape: bf16[6,128,2048], index: 8, kind: input, shape index: {}]   ;;  %s11121_s9 = inlined_call_operand.hbm [shape: f32[6,1,2048], index: 9, kind: input, shape index: {}]   ;;  %s11122_s10 = inlined_call_operand.hbm [shape: bf16[6,2048,128], index: 10, kind: input, shape index: {}]   ;;  %s11123_s11 = inlined_call_operand.hbm [shape: f32[6,1,128], index: 11, kind: input, shape index: {}]   ;;  %s11124_s12 = inlined_call_operand.hbm [shape: f32[6,1,128], index: 12, kind: input, shape index: {}]   ;;  %s11125_s13 = inlined_call_operand.hbm [shape: f32[6,1,128], index: 13, kind: input, shape index: {}]   ;;  %s11126_s14 = inlined_call_operand.vmem [shape: f32[10,128], index: 14, kind: output, shape index: {}]  }
   0x1   :  { %11161 = sst [smem:[#allocation42_spill]] %s11112_s0 }
   0x2   :  { %11162 = sst [smem:[#allocation43_spill]] %s11113_s1 }
   0x3   :  { %11163 = sst [smem:[#allocation44_spill]] %s11114_s2 }
   0x4   :  { %11164 = sst [smem:[#allocation45_spill]] %s11115_s3 }
   0x5   :  { %11165 = sst [smem:[#allocation46_spill]] %s11116_s4 }
   0x6   :  { %11166 = sst [smem:[#allocation47_spill]] %s11118_s6 }
   0x7   :  { %11167 = sst [smem:[#allocation48_spill]] %s11120_s8 }
   0x8   :  { %11168 = sst [smem:[#allocation49_spill]] %s11126_s14 }
   0x9   :  { %19 = vsyncpa [#allocation3], 0 }
   0xa   :  { %21 = vsyncpa [#allocation3 + $0x1], 0 }
   0xb   :  { %22 = vsyncpa [#allocation5], 0 }
   0xc   :  { %24 = vsyncpa [#allocation5 + $0x1], 0 }
   0xd   :  { %25 = vsyncpa [#allocation8], 0 }
   0xe   :  { %27 = vsyncpa [#allocation8 + $0x1], 0 }
   0xf   :  { %28 = vsyncpa [#allocation11], 0 }
  0x10   :  { %30 = vsyncpa [#allocation11 + $0x1], 0 }
  0x11   :  { %31 = vsyncpa [#allocation14], 0 }
  0x12   :  { %33 = vsyncpa [#allocation14 + $0x1], 0 }
  0x13   :  { %34 = vsyncpa [#allocation17], 0 }
  0x14   :  { %36 = vsyncpa [#allocation17 + $0x1], 0  ;;  %s8942_s29 = smov 0   ;;  %s8944_s30 = smov 0  }
  0x15   :  { %s8946_s15 = smov 0   ;;  %s8948_s16 = smov 0  }
  0x16 LB: > { %11169 = sst [smem:[#allocation25_spill]] %s8835_s15  ;;  %s8961_s17 = sadd.s32 4294967295, %s8839_s16   ;;  %s8839_s16 = sphi %s8948_s16, %s11250_s16   ;;  %s8835_s15 = sphi %s8946_s15, %s11252_s15   ;;  %s8831_s30 = sphi %s8944_s30, %s11254_s30   ;;  %s8827_s29 = sphi %s8942_s29, %s11253_s29  }
  0x17   : > { %11170 = sst [smem:[#allocation26_spill]] %s8961_s17  ;;  %s8964_s18 = sadd.s32 1, %s8839_s16  }
  0x18   : > { %11171 = sst [smem:[#allocation27_spill]] %s8964_s18  ;;  %s114_s19 = ssub.s32 %s8839_s16, %s8964_s18 }
  0x19   : > { %s117_s20 = sadd.s32 1, %s8835_s15  ;;  %p115_p0 = scmp.eq.s32.totalorder %s114_s19, 0 }
  0x1a   : > { %p124_p1 = scmp.ne.s32.totalorder %s8835_s15, %s8831_s30  ;;  %p125_p2 = scmp.eq.s32.totalorder %s8839_s16, 0 }
  0x1b   : > { %p130_p3 = scmp.ne.s32.totalorder %s8831_s30, %s8827_s29  ;;  %p131_p5 = scmp.eq.s32.totalorder %s8961_s17, 0 }
  0x1c   : > { %s8974_s21 = scalar_select %p115_p0, %s8835_s15, %s117_s20  }
  0x1d   : > { %p126_p4 = por %p125_p2, %p124_p1  ;;  %p7966_p6 = scmp.lt.s32.totalorder %s8839_s16, 6 }
  0x1e   : > { %11172 = sst [smem:[#allocation28_spill]] %s8974_s21  ;;  %p8978_p7 = por %p131_p5, %p130_p3 }
  0x1f   : > { %s8983_s23 = sand.u32 1, %s8835_s15   ;;  %p8985_p8 = pnand %p7966_p6, %p126_p4 }
  0x20   : > { %s11173_s22 = scalar_select %p8978_p7, 1, 0 }
  0x21   : > { %s11174_s24 = scalar_select %p8985_p8, 1, 0 }
  0x22   : > { %s8990_s25 = sand.u32 1, %s8839_s16   ;;  %s6976_s26 = sshll.u32 %s8983_s23, 6 }
  0x23   : > { %s7361_s27 = sshll.u32 %s8839_s16, 10  ;;  %s472_s28 = scalar_lea.vmem [#allocation4], %s6976_s26 }
  0x24   : > { %s479_s29 = sshll.u32 %s472_s28, 4  ;;  %s11175_s4 = sld [smem:[#allocation46_spill]]  ;;  %s8999_s29 = int_to_ptr.vmem [resolvable:$true] %s479_s29 }
  0x25   : > { %p9006_p10 = pneg %p8985_p8 }
  0x2a   : > { %s8997_s21 = scalar_lea.hbm %s11175_s4, %s7361_s27  ;;  %s8460_s28 = scalar_lea.hbm %s11175_s4, 6144 }
  0x2b   : > { %s8455_s18 = scalar_lea.hbm %s8997_s21, 1024  ;;  %p8461_p13 = scmp.lt.u32.totalorder %s8997_s21, %s11175_s4 }
  0x2c   : > { %p8456_p9 = scmp.ne.s32.totalorder %s8997_s21, %s8455_s18  ;;  %p8462_p0 = scmp.lt.u32.totalorder %s8460_s28, %s8455_s18 }
  0x2d   : > { %p8464_p2 = scmp.lt.u32.totalorder %s8455_s18, %s8997_s21 }
  0x2e   : > { %p8458_p11 = pnand %p9006_p10, %p8456_p9  ;;  %p8463_p1 = por %p8462_p0, %p8461_p13 }
  0x30   : > { %p8459_p12 = pneg %p8458_p11  ;;  %p8465_p3 = por %p8464_p2, %p8463_p1 }
  0x32   : > { %p8466_p4 = pnand %p8465_p3, %p8459_p12 }
  0x34   : > { %8469 = shalt.err (!%p8466_p4)
}
  0x35   : > { %s8470_s15 = scalar_lea.vmem %s8999_s29, 1024  ;;  %s8841_s26 = smov [#allocation4]  }
  0x36   : > { %p8471_p5 = scmp.ne.s32.totalorder %s8999_s29, %s8470_s15  ;;  %s8475_s27 = sshll.u32 %s8841_s26, 4  ;;  %s8476_s27 = int_to_ptr.vmem [resolvable:$false] %s8475_s27 }
  0x37   : > { %s8477_s19 = scalar_lea.vmem %s8476_s27, 2048  ;;  %p8478_p11 = scmp.lt.s32.totalorder %s8999_s29, %s8476_s27 }
  0x38   : > { %p8473_p6 = pnand %p8471_p5, %p9006_p10  ;;  %p8479_p7 = scmp.lt.s32.totalorder %s8477_s19, %s8470_s15 }
  0x3a   : > { %p8474_p9 = pneg %p8473_p6  ;;  %p8480_p13 = por %p8479_p7, %p8478_p11 }
  0x3c   : > { %p8481_p0 = pnand %p8480_p13, %p8474_p9 }
  0x3e   : > { %8484 = shalt.err (!%p8481_p0)
}
  0x3f   : > { %s11135_s18 = smov 64   ;;  %s11134_s28 = smov 4  }
  0x40   : > { %s11177_s15 = scalar_lea.sflag [#allocation5], %s8990_s25  ;;  %p6994_p7 = scmp.ge.s32.totalorder %s8839_s16, 1 }
  0x41   : > { %7938 = dma.hbm_to_vmem [thread:$0]  (!%p8985_p8), %s8997_s21, 1024, %s8999_s29, %s11177_s15, %s11135_s18, %s11135_s18, %s11134_s28  }
  0x42   : > { %p650_p12 = scmp.lt.s32.totalorder %s8839_s16, 7  ;;  %s9037_s20 = sshll.u32 %s8839_s16, 4 }
  0x43   : > { %s11179_s6 = sld [smem:[#allocation47_spill]]  ;;  %s509_s14 = scalar_lea.vmem [#allocation7], %s8983_s23 }
  0x44   : > { %p9039_p1 = pnand %p6994_p7, %p650_p12  ;;  %s516_s21 = sshll.u32 %s509_s14, 4  ;;  %s517_s21 = int_to_ptr.vmem [resolvable:$true] %s516_s21 }
  0x46   : > { %s11178_s26 = scalar_select %p9039_p1, 1, 0 }
  0x49   : > { %s9047_s4 = scalar_lea.hbm %s11179_s6, %s9037_s20  ;;  %s8490_s0 = scalar_lea.hbm %s11179_s6, 96 }
  0x4a   : > { %s8485_s15 = scalar_lea.hbm %s9047_s4, 16  ;;  %p8491_p5 = scmp.lt.u32.totalorder %s9047_s4, %s11179_s6 }
  0x4b   : > { %p8486_p2 = scmp.ne.s32.totalorder %s9047_s4, %s8485_s15  ;;  %p8492_p6 = scmp.lt.u32.totalorder %s8490_s0, %s8485_s15 }
  0x4c   : > { %p8494_p11 = scmp.lt.u32.totalorder %s8485_s15, %s9047_s4 }
  0x4d   : > { %p8488_p3 = pnand %p8486_p2, %p9006_p10  ;;  %p8493_p9 = por %p8492_p6, %p8491_p5 }
  0x4f   : > { %p8489_p4 = pneg %p8488_p3  ;;  %p8495_p13 = por %p8494_p11, %p8493_p9 }
  0x51   : > { %p8496_p0 = pnand %p8495_p13, %p8489_p4 }
  0x53   : > { %8499 = shalt.err (!%p8496_p0)
}
  0x54   : > { %s8500_s14 = scalar_lea.vmem %s517_s21, 16  ;;  %s8844_s29 = smov [#allocation7]  }
  0x55   : > { %p8501_p7 = scmp.ne.s32.totalorder %s517_s21, %s8500_s14  ;;  %s8505_s2 = sshll.u32 %s8844_s29, 4  ;;  %s8506_s2 = int_to_ptr.vmem [resolvable:$false] %s8505_s2 }
  0x56   : > { %s8507_s18 = scalar_lea.vmem %s8506_s2, 32  ;;  %p8508_p3 = scmp.lt.s32.totalorder %s517_s21, %s8506_s2 }
  0x57   : > { %p8503_p12 = pnand %p8501_p7, %p9006_p10  ;;  %p8509_p1 = scmp.lt.s32.totalorder %s8507_s18, %s8500_s14 }
  0x59   : > { %p8504_p2 = pneg %p8503_p12  ;;  %p8510_p8 = por %p8509_p1, %p8508_p3 }
  0x5b   : > { %p8511_p5 = pnand %p8510_p8, %p8504_p2 }
  0x5d   : > { %8514 = shalt.err (!%p8511_p5)
}
  0x5e   : > { %p11180_p6 = scmp.ne.s32.totalorder %s11174_s24, 0  ;;  %s11181_s0 = scalar_lea.sflag [#allocation8], %s8990_s25 }
  0x5f   : > { %s6982_s28 = sshll.u32 %s8983_s23, 10  ;;  %s7362_s29 = sshll.u32 %s8839_s16, 14 }
  0x60   : > { %7944 = dma.hbm_to_vmem [thread:$0]  (!%p11180_p6), %s9047_s4, 16, %s517_s21, %s11181_s0  }
  0x61   : > { %s11182_s8 = sld [smem:[#allocation48_spill]]  ;;  %s544_s19 = scalar_lea.vmem [#allocation10], %s6982_s28 }
  0x62   : > { %s551_s14 = sshll.u32 %s544_s19, 4  ;;  %s11144_s18 = scalar_lea.sflag [#allocation11], %s8990_s25  ;;  %s9081_s14 = int_to_ptr.vmem [resolvable:$true] %s551_s14 }
  0x67   : > { %s9077_s27 = scalar_lea.hbm %s11182_s8, %s7362_s29  ;;  %s8520_s0 = scalar_lea.hbm %s11182_s8, 98304 }
  0x68   : > { %s8515_s6 = scalar_lea.hbm %s9077_s27, 16384  ;;  %p8521_p9 = scmp.lt.u32.totalorder %s9077_s27, %s11182_s8 }
  0x69   : > { %p8516_p8 = scmp.ne.s32.totalorder %s9077_s27, %s8515_s6  ;;  %p8522_p11 = scmp.lt.u32.totalorder %s8520_s0, %s8515_s6 }
  0x6a   : > { %p8524_p0 = scmp.lt.u32.totalorder %s8515_s6, %s9077_s27 }
  0x6b   : > { %p8518_p1 = pnand %p8516_p8, %p9006_p10  ;;  %p8523_p13 = por %p8522_p11, %p8521_p9 }
  0x6d   : > { %p8519_p4 = pneg %p8518_p1  ;;  %p8525_p7 = por %p8524_p0, %p8523_p13 }
  0x6f   : > { %p8526_p12 = pnand %p8525_p7, %p8519_p4 }
  0x71   : > { %8529 = shalt.err (!%p8526_p12)
}
  0x72   : > { %s8530_s19 = scalar_lea.vmem %s9081_s14, 16384  ;;  %s8845_s4 = smov [#allocation10]  }
  0x73   : > { %p8531_p2 = scmp.ne.s32.totalorder %s9081_s14, %s8530_s19  ;;  %s8535_s21 = sshll.u32 %s8845_s4, 4  ;;  %s8536_s21 = int_to_ptr.vmem [resolvable:$false] %s8535_s21 }
  0x74   : > { %s8537_s2 = scalar_lea.vmem %s8536_s21, 32768  ;;  %p8538_p8 = scmp.lt.s32.totalorder %s9081_s14, %s8536_s21 }
  0x75   : > { %p8533_p3 = pnand %p8531_p2, %p9006_p10  ;;  %p8539_p1 = scmp.lt.s32.totalorder %s8537_s2, %s8530_s19 }
  0x77   : > { %p8534_p5 = pneg %p8533_p3  ;;  %p8540_p9 = por %p8539_p1, %p8538_p8 }
  0x79   : > { %p8541_p11 = pnand %p8540_p9, %p8534_p5 }
  0x7b   : > { %8544 = shalt.err (!%p8541_p11)
}
  0x7c   : > { %s8846_s6 = smov 1024   ;;  %s11183_s0 = smov 64  }
  0x7d   : > { %7950 = dma.hbm_to_vmem [thread:$0]  (!%p11180_p6), %s9077_s27, 16384, %s9081_s14, %s11144_s18, %s8846_s6, %s8846_s6, %s11183_s0  }
  0x7e   : > { %s9113_s19 = scalar_lea.hbm %s11122_s10, %s7362_s29  ;;  %s584_s21 = scalar_lea.vmem [#allocation13], %s6982_s28 }
  0x7f   : > { %s591_s2 = sshll.u32 %s584_s21, 4  ;;  %s11143_s8 = scalar_lea.sflag [#allocation14], %s8990_s25  ;;  %s9117_s2 = int_to_ptr.vmem [resolvable:$true] %s591_s2 }
  0x80   : > { %s8545_s17 = scalar_lea.hbm %s9113_s19, 16384  ;;  %s8550_s29 = scalar_lea.hbm %s11122_s10, 98304 }
  0x81   : > { %p8546_p4 = scmp.ne.s32.totalorder %s9113_s19, %s8545_s17  ;;  %p8551_p7 = scmp.lt.u32.totalorder %s9113_s19, %s11122_s10 }
  0x82   : > { %p8552_p12 = scmp.lt.u32.totalorder %s8550_s29, %s8545_s17  ;;  %p8554_p3 = scmp.lt.u32.totalorder %s8545_s17, %s9113_s19 }
  0x83   : > { %p8548_p13 = pnand %p8546_p4, %p9006_p10 }
  0x84   : > { %p8553_p2 = por %p8552_p12, %p8551_p7 }
  0x85   : > { %p8549_p0 = pneg %p8548_p13 }
  0x86   : > { %p8555_p5 = por %p8554_p3, %p8553_p2 }
  0x88   : > { %p8556_p8 = pnand %p8555_p5, %p8549_p0 }
  0x8a   : > { %8559 = shalt.err (!%p8556_p8)
}
  0x8b   : > { %s8560_s28 = scalar_lea.vmem %s9117_s2, 16384  ;;  %s8847_s4 = smov [#allocation13]  }
  0x8c   : > { %p8561_p1 = scmp.ne.s32.totalorder %s9117_s2, %s8560_s28  ;;  %s8565_s21 = sshll.u32 %s8847_s4, 4  ;;  %s8566_s21 = int_to_ptr.vmem [resolvable:$false] %s8565_s21 }
  0x8d   : > { %s8567_s27 = scalar_lea.vmem %s8566_s21, 32768  ;;  %p8568_p4 = scmp.lt.s32.totalorder %s9117_s2, %s8566_s21 }
  0x8e   : > { %p8563_p9 = pnand %p8561_p1, %p9006_p10  ;;  %p8569_p13 = scmp.lt.s32.totalorder %s8567_s27, %s8560_s28 }
  0x90   : > { %p8564_p11 = pneg %p8563_p9  ;;  %p8570_p7 = por %p8569_p13, %p8568_p4 }
  0x92   : > { %p8571_p12 = pnand %p8570_p7, %p8564_p11 }
  0x94   : > { %8574 = shalt.err (!%p8571_p12)
}
  0x95   : > { %s11184_s17 = smov 4   ;;  %s9150_s6 = scalar_lea.hbm %s11124_s12, %s9037_s20 }
  0x96   : > { %7956 = dma.hbm_to_vmem [thread:$0]  (!%p11180_p6), %s9113_s19, 16384, %s9117_s2, %s11143_s8, %s11183_s0, %s11183_s0, %s11184_s17  }
  0x97   : > { %s621_s15 = scalar_lea.vmem [#allocation16], %s8983_s23  ;;  %s11146_s4 = scalar_lea.sflag [#allocation17], %s8990_s25 }
  0x98   : > { %s628_s28 = sshll.u32 %s621_s15, 4  ;;  %s8575_s21 = scalar_lea.hbm %s9150_s6, 16  ;;  %s629_s28 = int_to_ptr.vmem [resolvable:$true] %s628_s28 }
  0x99   : > { %p8576_p0 = scmp.ne.s32.totalorder %s9150_s6, %s8575_s21  ;;  %s8580_s19 = scalar_lea.hbm %s11124_s12, 96 }
  0x9a   : > { %p8581_p5 = scmp.lt.u32.totalorder %s9150_s6, %s11124_s12  ;;  %p8582_p8 = scmp.lt.u32.totalorder %s8580_s19, %s8575_s21 }
  0x9b   : > { %p8578_p2 = pnand %p8576_p0, %p9006_p10  ;;  %p8584_p9 = scmp.lt.u32.totalorder %s8575_s21, %s9150_s6 }
  0x9c   : > { %p8583_p1 = por %p8582_p8, %p8581_p5 }
  0x9d   : > { %p8579_p3 = pneg %p8578_p2 }
  0x9e   : > { %p8585_p11 = por %p8584_p9, %p8583_p1 }
  0xa0   : > { %p8586_p4 = pnand %p8585_p11, %p8579_p3 }
  0xa2   : > { %8589 = shalt.err (!%p8586_p4)
}
  0xa3   : > { %s8590_s14 = scalar_lea.vmem %s629_s28, 16  ;;  %s8848_s29 = smov [#allocation16]  }
  0xa4   : > { %p8591_p13 = scmp.ne.s32.totalorder %s629_s28, %s8590_s14  ;;  %s8595_s15 = sshll.u32 %s8848_s29, 4  ;;  %s8596_s15 = int_to_ptr.vmem [resolvable:$false] %s8595_s15 }
  0xa5   : > { %s8597_s27 = scalar_lea.vmem %s8596_s15, 32  ;;  %p8598_p0 = scmp.lt.s32.totalorder %s629_s28, %s8596_s15 }
  0xa6   : > { %p8593_p7 = pnand %p8591_p13, %p9006_p10  ;;  %p8599_p2 = scmp.lt.s32.totalorder %s8597_s27, %s8590_s14 }
  0xa8   : > { %p8594_p12 = pneg %p8593_p7  ;;  %p8600_p6 = por %p8599_p2, %p8598_p0 }
  0xaa   : > { %p8601_p5 = pnand %p8600_p6, %p8594_p12 }
  0xac   : > { %8604 = shalt.err (!%p8601_p5)
}
  0xad   : > { %p11185_p8 = scmp.ne.s32.totalorder %s11174_s24, 0  ;;  %s7906_s21 = smul.u32 3, %s8983_s23 }
  0xae   : > { %s7907_s0 = smul.u32 48, %s8839_s16  ;;  %s9179_s17 = scalar_lea.hbm %s11117_s5, %s9037_s20 }
  0xaf   : > { %7962 = dma.hbm_to_vmem [thread:$0]  (!%p11185_p8), %s9150_s6, 16, %s629_s28, %s11146_s4  }
  0xb0   : > { %s492_s14 = scalar_lea.vmem [#allocation6], %s8983_s23  ;;  %s11186_s3 = sld [smem:[#allocation45_spill]] }
  0xb1   : > { %s499_s29 = sshll.u32 %s492_s14, 4  ;;  %s453_s18 = scalar_lea.vmem [#allocation2], %s7906_s21  ;;  %s9189_s29 = int_to_ptr.vmem [resolvable:$true] %s499_s29 }
  0xb2   : > { %s461_s6 = sshll.u32 %s453_s18, 4  ;;  %s450_s28 = scalar_lea.sflag [#allocation3], %s8983_s23  ;;  %s9187_s6 = int_to_ptr.vmem [resolvable:$true] %s461_s6 }
  0xb6   : > { %s9185_s8 = scalar_lea.hbm %s11186_s3, %s7907_s0  ;;  %s8610_s0 = scalar_lea.hbm %s11186_s3, 288 }
  0xb7   : > { %s8605_s19 = scalar_lea.hbm %s9185_s8, 48  ;;  %p8611_p9 = scmp.lt.u32.totalorder %s9185_s8, %s11186_s3 }
  0xb8   : > { %p8606_p6 = scmp.ne.s32.totalorder %s9185_s8, %s8605_s19  ;;  %p8612_p11 = scmp.lt.u32.totalorder %s8610_s0, %s8605_s19 }
  0xb9   : > { %p8614_p13 = scmp.lt.u32.totalorder %s8605_s19, %s9185_s8 }
  0xba   : > { %p8608_p3 = pnand %p8606_p6, %p9006_p10  ;;  %p8613_p4 = por %p8612_p11, %p8611_p9 }
  0xbc   : > { %p8609_p1 = pneg %p8608_p3  ;;  %p8615_p7 = por %p8614_p13, %p8613_p4 }
  0xbe   : > { %p8616_p12 = pnand %p8615_p7, %p8609_p1 }
  0xc0   : > { %8619 = shalt.err (!%p8616_p12)
}
  0xc1   : > { %s8620_s18 = scalar_lea.vmem %s9187_s6, 48  ;;  %s8849_s21 = smov [#allocation2]  }
  0xc2   : > { %p8621_p0 = scmp.ne.s32.totalorder %s9187_s6, %s8620_s18  ;;  %s8625_s2 = sshll.u32 %s8849_s21, 4  ;;  %s8626_s2 = int_to_ptr.vmem [resolvable:$false] %s8625_s2 }
  0xc3   : > { %s8627_s14 = scalar_lea.vmem %s8626_s2, 96  ;;  %p8628_p6 = scmp.lt.s32.totalorder %s9187_s6, %s8626_s2 }
  0xc4   : > { %p8623_p2 = pnand %p8621_p0, %p9006_p10  ;;  %p8629_p3 = scmp.lt.s32.totalorder %s8627_s14, %s8620_s18 }
  0xc6   : > { %p8624_p5 = pneg %p8623_p2  ;;  %p8630_p9 = por %p8629_p3, %p8628_p6 }
  0xc8   : > { %p8631_p11 = pnand %p8630_p9, %p8624_p5 }
  0xca   : > { %8634 = shalt.err (!%p8631_p11)
}
  0xcb   : > { %7935 = dma.hbm_to_vmem [thread:$0]  (!%p11185_p8), %s9185_s8, 48, %s9187_s6, %s450_s28  }
  0xcc   : > { %s8635_s19 = scalar_lea.hbm %s9179_s17, 16  ;;  %s8640_s27 = scalar_lea.hbm %s11117_s5, 96 }
  0xcd   : > { %p8636_p1 = scmp.ne.s32.totalorder %s9179_s17, %s8635_s19  ;;  %p8641_p7 = scmp.lt.u32.totalorder %s9179_s17, %s11117_s5 }
  0xce   : > { %p8642_p12 = scmp.lt.u32.totalorder %s8640_s27, %s8635_s19  ;;  %p8644_p2 = scmp.lt.u32.totalorder %s8635_s19, %s9179_s17 }
  0xcf   : > { %p8638_p4 = pnand %p8636_p1, %p9006_p10 }
  0xd0   : > { %p8643_p0 = por %p8642_p12, %p8641_p7 }
  0xd1   : > { %p8639_p13 = pneg %p8638_p4 }
  0xd2   : > { %p8645_p5 = por %p8644_p2, %p8643_p0 }
  0xd4   : > { %p8646_p6 = pnand %p8645_p5, %p8639_p13 }
  0xd6   : > { %8649 = shalt.err (!%p8646_p6)
}
  0xd7   : > { %s8650_s8 = scalar_lea.vmem %s9189_s29, 16  ;;  %s8850_s6 = smov [#allocation6]  }
  0xd8   : > { %p8651_p3 = scmp.ne.s32.totalorder %s9189_s29, %s8650_s8  ;;  %s8655_s28 = sshll.u32 %s8850_s6, 4  ;;  %s8656_s28 = int_to_ptr.vmem [resolvable:$false] %s8655_s28 }
  0xd9   : > { %s8657_s2 = scalar_lea.vmem %s8656_s28, 32  ;;  %p8658_p1 = scmp.lt.s32.totalorder %s9189_s29, %s8656_s28 }
  0xda   : > { %p8653_p9 = pnand %p8651_p3, %p9006_p10  ;;  %p8659_p4 = scmp.lt.s32.totalorder %s8657_s2, %s8650_s8 }
  0xdc   : > { %p8654_p11 = pneg %p8653_p9  ;;  %p8660_p7 = por %p8659_p4, %p8658_p1 }
  0xde   : > { %p8661_p12 = pnand %p8660_p7, %p8654_p11 }
  0xe0   : > { %8664 = shalt.err (!%p8661_p12)
}
  0xe1   : > { %s11187_s14 = scalar_lea.sflag [#allocation5], %s8990_s25  ;;  %s9240_s15 = scalar_lea.hbm %s11119_s7, %s9037_s20 }
  0xe2   : > { %7941 = dma.hbm_to_vmem [thread:$0]  (!%p11185_p8), %s9179_s17, 16, %s9189_s29, %s11187_s14  }
  0xe3   : > { %s526_s27 = scalar_lea.vmem [#allocation9], %s8983_s23  ;;  %s6985_s21 = sshll.u32 %s8983_s23, 4 }
  0xe4   : > { %s533_s18 = sshll.u32 %s526_s27, 4  ;;  %s8665_s8 = scalar_lea.hbm %s9240_s15, 16  ;;  %s534_s18 = int_to_ptr.vmem [resolvable:$true] %s533_s18 }
  0xe5   : > { %p8666_p13 = scmp.ne.s32.totalorder %s9240_s15, %s8665_s8  ;;  %s8670_s29 = scalar_lea.hbm %s11119_s7, 96 }
  0xe6   : > { %p8671_p5 = scmp.lt.u32.totalorder %s9240_s15, %s11119_s7  ;;  %p8672_p6 = scmp.lt.u32.totalorder %s8670_s29, %s8665_s8 }
  0xe7   : > { %p8668_p0 = pnand %p8666_p13, %p9006_p10  ;;  %p8674_p9 = scmp.lt.u32.totalorder %s8665_s8, %s9240_s15 }
  0xe8   : > { %p8673_p3 = por %p8672_p6, %p8671_p5 }
  0xe9   : > { %p8669_p2 = pneg %p8668_p0 }
  0xea   : > { %p8675_p11 = por %p8674_p9, %p8673_p3 }
  0xec   : > { %p8676_p1 = pnand %p8675_p11, %p8669_p2 }
  0xee   : > { %8679 = shalt.err (!%p8676_p1)
}
  0xef   : > { %s8680_s14 = scalar_lea.vmem %s534_s18, 16  ;;  %s8851_s19 = smov [#allocation9]  }
  0xf0   : > { %p8681_p4 = scmp.ne.s32.totalorder %s534_s18, %s8680_s14  ;;  %s8685_s0 = sshll.u32 %s8851_s19, 4  ;;  %s8686_s0 = int_to_ptr.vmem [resolvable:$false] %s8685_s0 }
  0xf1   : > { %s8687_s27 = scalar_lea.vmem %s8686_s0, 32  ;;  %p8688_p13 = scmp.lt.s32.totalorder %s534_s18, %s8686_s0 }
  0xf2   : > { %p8683_p7 = pnand %p8681_p4, %p9006_p10  ;;  %p8689_p0 = scmp.lt.s32.totalorder %s8687_s27, %s8680_s14 }
  0xf4   : > { %p8684_p12 = pneg %p8683_p7  ;;  %p8690_p8 = por %p8689_p0, %p8688_p13 }
  0xf6   : > { %p8691_p5 = pnand %p8690_p8, %p8684_p12 }
  0xf8   : > { %8694 = shalt.err (!%p8691_p5)
}
  0xf9   : > { %p11188_p6 = scmp.ne.s32.totalorder %s11174_s24, 0  ;;  %s11189_s8 = scalar_lea.sflag [#allocation8], %s8990_s25 }
  0xfa   : > { %s7363_s6 = sshll.u32 %s8839_s16, 8  ;;  %s565_s17 = scalar_lea.vmem [#allocation12], %s6985_s21 }
  0xfb   : > { %7947 = dma.hbm_to_vmem [thread:$0]  (!%p11188_p6), %s9240_s15, 16, %s534_s18, %s11189_s8  }
  0xfc   : > { %s573_s29 = sshll.u32 %s565_s17, 4  ;;  %s571_s14 = scalar_lea.hbm %s11121_s9, %s7363_s6  ;;  %s574_s29 = int_to_ptr.vmem [resolvable:$true] %s573_s29 }
  0xfd   : > { %s8695_s19 = scalar_lea.hbm %s571_s14, 256  ;;  %s8700_s4 = scalar_lea.hbm %s11121_s9, 1536 }
  0xfe   : > { %p8696_p8 = scmp.ne.s32.totalorder %s571_s14, %s8695_s19  ;;  %p8701_p9 = scmp.lt.u32.totalorder %s571_s14, %s11121_s9 }
  0xff   : > { %p8702_p11 = scmp.lt.u32.totalorder %s8700_s4, %s8695_s19  ;;  %p8704_p4 = scmp.lt.u32.totalorder %s8695_s19, %s571_s14 }
 0x100   : > { %p8698_p2 = pnand %p8696_p8, %p9006_p10 }
 0x101   : > { %p8703_p1 = por %p8702_p11, %p8701_p9 }
 0x102   : > { %p8699_p3 = pneg %p8698_p2 }
 0x103   : > { %p8705_p7 = por %p8704_p4, %p8703_p1 }
 0x105   : > { %p8706_p12 = pnand %p8705_p7, %p8699_p3 }
 0x107   : > { %8709 = shalt.err (!%p8706_p12)
}
 0x108   : > { %s8710_s16 = scalar_lea.vmem %s574_s29, 256  ;;  %s8852_s18 = smov [#allocation12]  }
 0x109   : > { %p8711_p13 = scmp.ne.s32.totalorder %s574_s29, %s8710_s16  ;;  %s8715_s21 = sshll.u32 %s8852_s18, 4  ;;  %s8716_s21 = int_to_ptr.vmem [resolvable:$false] %s8715_s21 }
 0x10a   : > { %s8717_s8 = scalar_lea.vmem %s8716_s21, 512  ;;  %p8718_p8 = scmp.lt.s32.totalorder %s574_s29, %s8716_s21 }
 0x10b   : > { %p8713_p0 = pnand %p8711_p13, %p9006_p10  ;;  %p8719_p2 = scmp.lt.s32.totalorder %s8717_s8, %s8710_s16 }
 0x10d   : > { %p8714_p5 = pneg %p8713_p0  ;;  %p8720_p6 = por %p8719_p2, %p8718_p8 }
 0x10f   : > { %p8721_p9 = pnand %p8720_p6, %p8714_p5 }
 0x111   : > { %8724 = shalt.err (!%p8721_p9)
}
 0x112   : > { %p11190_p11 = scmp.ne.s32.totalorder %s11174_s24, 0  ;;  %s11191_s3 = scalar_lea.sflag [#allocation11], %s8990_s25 }
 0x113   : > { %s9287_s17 = scalar_lea.hbm %s11123_s11, %s9037_s20  ;;  %s604_s28 = scalar_lea.vmem [#allocation15], %s8983_s23 }
 0x114   : > { %7953 = dma.hbm_to_vmem [thread:$0]  (!%p11190_p11), %s571_s14, 256, %s574_s29, %s11191_s3  }
 0x115   : > { %s611_s2 = sshll.u32 %s604_s28, 4  ;;  %s9294_s27 = scalar_lea.hbm %s11125_s13, %s9037_s20  ;;  %s612_s2 = int_to_ptr.vmem [resolvable:$true] %s611_s2 }
 0x116   : > { %s8725_s15 = scalar_lea.hbm %s9287_s17, 16  ;;  %s8730_s16 = scalar_lea.hbm %s11123_s11, 96 }
 0x117   : > { %p8726_p6 = scmp.ne.s32.totalorder %s9287_s17, %s8725_s15  ;;  %p8731_p4 = scmp.lt.u32.totalorder %s9287_s17, %s11123_s11 }
 0x118   : > { %p8732_p7 = scmp.lt.u32.totalorder %s8730_s16, %s8725_s15  ;;  %p8734_p13 = scmp.lt.u32.totalorder %s8725_s15, %s9287_s17 }
 0x119   : > { %p8728_p3 = pnand %p8726_p6, %p9006_p10 }
 0x11a   : > { %p8733_p12 = por %p8732_p7, %p8731_p4 }
 0x11b   : > { %p8729_p1 = pneg %p8728_p3 }
 0x11c   : > { %p8735_p0 = por %p8734_p13, %p8733_p12 }
 0x11e   : > { %p8736_p5 = pnand %p8735_p0, %p8729_p1 }
 0x120   : > { %8739 = shalt.err (!%p8736_p5)
}
 0x121   : > { %s8740_s20 = scalar_lea.vmem %s612_s2, 16  ;;  %s8853_s8 = smov [#allocation15]  }
 0x122   : > { %p8741_p8 = scmp.ne.s32.totalorder %s612_s2, %s8740_s20  ;;  %s8745_s3 = sshll.u32 %s8853_s8, 4  ;;  %s8746_s3 = int_to_ptr.vmem [resolvable:$false] %s8745_s3 }
 0x123   : > { %s8747_s4 = scalar_lea.vmem %s8746_s3, 32  ;;  %p8748_p6 = scmp.lt.s32.totalorder %s612_s2, %s8746_s3 }
 0x124   : > { %p8743_p2 = pnand %p8741_p8, %p9006_p10  ;;  %p8749_p3 = scmp.lt.s32.totalorder %s8747_s4, %s8740_s20 }
 0x126   : > { %p8744_p9 = pneg %p8743_p2  ;;  %p8750_p11 = por %p8749_p3, %p8748_p6 }
 0x128   : > { %p8751_p4 = pnand %p8750_p11, %p8744_p9 }
 0x12a   : > { %8754 = shalt.err (!%p8751_p4)
}
 0x12b   : > { %p11192_p7 = scmp.ne.s32.totalorder %s11174_s24, 0  ;;  %s11193_s6 = scalar_lea.sflag [#allocation14], %s8990_s25 }
 0x12c   : > { %s638_s28 = scalar_lea.vmem [#allocation18], %s8983_s23  ;;  %s8755_s0 = scalar_lea.hbm %s9294_s27, 16 }
 0x12d   : > { %7959 = dma.hbm_to_vmem [thread:$0]  (!%p11192_p7), %s9287_s17, 16, %s612_s2, %s11193_s6  }
 0x12e   : > { %s645_s19 = sshll.u32 %s638_s28, 4  ;;  %p8756_p1 = scmp.ne.s32.totalorder %s9294_s27, %s8755_s0  ;;  %s646_s19 = int_to_ptr.vmem [resolvable:$true] %s645_s19 }
 0x12f   : > { %s8760_s14 = scalar_lea.hbm %s11125_s13, 96  ;;  %p8761_p13 = scmp.lt.u32.totalorder %s9294_s27, %s11125_s13 }
 0x130   : > { %p8758_p11 = pnand %p8756_p1, %p9006_p10  ;;  %p8762_p0 = scmp.lt.u32.totalorder %s8760_s14, %s8755_s0 }
 0x131   : > { %p8764_p8 = scmp.lt.u32.totalorder %s8755_s0, %s9294_s27 }
 0x132   : > { %p8759_p12 = pneg %p8758_p11  ;;  %p8763_p5 = por %p8762_p0, %p8761_p13 }
 0x134   : > { %p8765_p2 = por %p8764_p8, %p8763_p5 }
 0x136   : > { %p8766_p9 = pnand %p8765_p2, %p8759_p12 }
 0x138   : > { %8769 = shalt.err (!%p8766_p9)
}
 0x139   : > { %s8770_s23 = scalar_lea.vmem %s646_s19, 16  ;;  %s8854_s17 = smov [#allocation18]  }
 0x13a   : > { %p8771_p6 = scmp.ne.s32.totalorder %s646_s19, %s8770_s23  ;;  %s8775_s2 = sshll.u32 %s8854_s17, 4  ;;  %s8776_s2 = int_to_ptr.vmem [resolvable:$false] %s8775_s2 }
 0x13b   : > { %s8777_s21 = scalar_lea.vmem %s8776_s2, 32  ;;  %p8778_p1 = scmp.lt.s32.totalorder %s646_s19, %s8776_s2 }
 0x13c   : > { %p8773_p3 = pnand %p8771_p6, %p9006_p10  ;;  %p8779_p11 = scmp.lt.s32.totalorder %s8777_s21, %s8770_s23 }
 0x13e   : > { %p8774_p4 = pneg %p8773_p3  ;;  %p8780_p7 = por %p8779_p11, %p8778_p1 }
 0x140   : > { %p8781_p0 = pnand %p8780_p7, %p8774_p4 }
 0x142   : > { %8784 = shalt.err (!%p8781_p0)
}
 0x143   : > { %p11194_p13 = scmp.ne.s32.totalorder %s11174_s24, 0  ;;  %s11195_s20 = scalar_lea.sflag [#allocation17], %s8990_s25 }
 0x144   : > { %p11196_p12 = scmp.ne.s32.totalorder %s11178_s26, 0 }
 0x145   : > { %7965 = dma.hbm_to_vmem [thread:$0]  (!%p11194_p13), %s9294_s27, 16, %s646_s19, %s11195_s20  }
 0x146   : > { %654 = sbr.rel (%p11196_p12) target bundleno = 6713 (0x1a39), region = 76 }
 0x14d   : > { %s9338_s1 = sand.u32 1, %s8831_s30   ;;  %p11197_p10 = scmp.ne.s32.totalorder %s11173_s22, 0 }
 0x14e   : > { %s7908_s8 = smul.u32 3, %s9338_s1  ;;  %s657_s3 = scalar_lea.sflag [#allocation3], %s9338_s1 }
 0x150   : > { %s9342_s4 = scalar_lea.vmem [#allocation2], %s7908_s8 }
 0x151   : > { %8802 = dma.done.wait (%p11197_p10), %s657_s3, 48  }
 0x152   : > { %8804 = vsyncadd (%p11197_p10), %s657_s3, 4294967248  ;;  %s11198_s24 = sld [smem:[#allocation26_spill]]  ;;  %s6995_s26 = sshll.u32 %s9338_s1, 6 }
 0x153   : > { %s9350_s6 = scalar_lea.vmem [#allocation4], %s6995_s26 }
 0x158   : > { %s665_s25 = sand.u32 1, %s11198_s24  }
 0x159   : > { %s666_s27 = scalar_lea.sflag [#allocation5], %s665_s25 }
 0x15a   : > { %8806 = dma.done.wait (%p11197_p10), %s666_s27, 1040  }
 0x15b   : > { %8808 = vsyncadd (%p11197_p10), %s666_s27, 4294966256  ;;  %s677_s28 = scalar_lea.vmem [#allocation6], %s9338_s1  ;;  %s683_s19 = scalar_lea.sflag [#allocation8], %s665_s25 }
 0x15c   : > { %8810 = dma.done.wait (%p11197_p10), %s683_s19, 32  }
 0x15d   : > { %8812 = vsyncadd (%p11197_p10), %s683_s19, 4294967264  ;;  %s6996_s15 = sshll.u32 %s9338_s1, 10  ;;  %s699_s14 = scalar_lea.sflag [#allocation11], %s665_s25 }
 0x15e   : > { %s9364_s16 = scalar_lea.vmem [#allocation10], %s6996_s15 }
 0x15f   : > { %8814 = dma.done.wait (%p11197_p10), %s699_s14, 16640  }
 0x160   : > { %8816 = vsyncadd (%p11197_p10), %s699_s14, 4294950656  ;;  %s6997_s18 = sshll.u32 %s9338_s1, 4  ;;  %s717_s17 = scalar_lea.sflag [#allocation14], %s665_s25 }
 0x161   : > { %s9371_s23 = scalar_lea.vmem [#allocation12], %s6997_s18  ;;  %s9373_s2 = scalar_lea.vmem [#allocation13], %s6996_s15 }
 0x162   : > { %8818 = dma.done.wait (%p11197_p10), %s717_s17, 16400  }
 0x163   : > { %8820 = vsyncadd (%p11197_p10), %s717_s17, 4294950896  ;;  %s734_s20 = scalar_lea.sflag [#allocation17], %s665_s25 }
 0x164   : > { %8822 = dma.done.wait (%p11197_p10), %s734_s20, 32  }
 0x165   : > { %8824 = vsyncadd (%p11197_p10), %s734_s20, 4294967264  ;;  %p833_p7 = scmp.lt.s32.totalorder %s11198_s24, 5  ;;  %s11199_s15 = sld [smem:[#allocation44_spill]] }
 0x166   : > { %s744_s18 = scalar_lea.vmem [#allocation18], %s9338_s1  ;;  %p7000_p5 = scmp.ne.s32.totalorder %s11198_s24, 0 }
 0x167   : > { %s834_s3 = scalar_select %p833_p7, %s11198_s24, 5 }
 0x168   : > { %842 = sbr.rel (%p7000_p5) target bundleno = 368 (0x170), region = 124  ;;  %s11200_s8 = sld [smem:[#allocation42_spill]] (!%p7000_p5) }
 0x169   : > { %s7909_s26 = smul.u32 192, %s834_s3  ;;  %s11201_s3 = sld [smem:[#allocation49_spill]] (!%p7000_p5) }
 0x16b   : > { %s9390_s14 = scalar_lea.vmem %s11199_s15, %s7909_s26 }
 0x16e   : > { %v843_v0 = vld [vmem:[%s11200_s8] sm:$0xff] (!%p7000_p5)  ;;  %v844_v1 = vld [vmem:[%s11200_s8 + $0x8] sm:$0x3] (!%p7000_p5) }
 0x16f   : > { %845 = vst [vmem:[%s11201_s3] sm:$0xff] %v843_v0  ;;  %846 = vst [vmem:[%s11201_s3 + $0x8] sm:$0x3] %v844_v1 }
 0x170 PF: > { %v8084_v2 = vld [vmem:[%s9390_s14 + $0x4] ss:$12 sps:$4 sm:$0xff]   ;;  %v8086_v3 = vld [vmem:[%s9390_s14] ss:$12 sps:$4 sm:$0xff]   ;;  %v8855_v4 = vmov 0   ;;  %s11202_s29 = sld [smem:[#allocation49_spill]]  ;;  %v884_v22 = vlaneseq }
 0x171   : > { %1059 = vmatprep.mubr.bf16.mxu0 %v8855_v4  ;;  %1027 = vmatprep.subr.bf16.mxu0 %v8084_v2  ;;  %v8087_v5 = vld [vmem:[%s9390_s14 + $0x1c] ss:$12 sps:$4 sm:$0xff]   ;;  %v8089_v6 = vld [vmem:[%s9390_s14 + $0x18] ss:$12 sps:$4 sm:$0xff]   ;;  %v8090_v7 = vld [vmem:[%s9390_s14 + $0x34] ss:$12 sps:$4 sm:$0xff]  }
 0x172   : > { %1028 = vmatpush1.bf16.msra.mxu0 %v8086_v3  ;;  %v8092_v8 = vld [vmem:[%s9390_s14 + $0x30] ss:$12 sps:$4 sm:$0xff]   ;;  %v8093_v9 = vld [vmem:[%s9390_s14 + $0x4c] ss:$12 sps:$4 sm:$0xff]   ;;  %v8095_v10 = vld [vmem:[%s9390_s14 + $0x48] ss:$12 sps:$4 sm:$0xff]  }
 0x173   : > { %1029 = vmatprep.subr.bf16.mxu0 %v8087_v5  ;;  %v8096_v11 = vld [vmem:[%s9390_s14 + $0x64] ss:$12 sps:$4 sm:$0xff]   ;;  %v8098_v12 = vld [vmem:[%s9390_s14 + $0x60] ss:$12 sps:$4 sm:$0xff]   ;;  %v8099_v13 = vld [vmem:[%s9390_s14 + $0x7c] ss:$12 sps:$4 sm:$0xff]  }
 0x174   : > { %v8101_v14 = vld [vmem:[%s9390_s14 + $0x78] ss:$12 sps:$4 sm:$0xff]   ;;  %v8102_v15 = vld [vmem:[%s9390_s14 + $0x94] ss:$12 sps:$4 sm:$0xff]   ;;  %v8104_v16 = vld [vmem:[%s9390_s14 + $0x90] ss:$12 sps:$4 sm:$0xff]  }
 0x175   : > { %v8105_v17 = vld [vmem:[%s9390_s14 + $0xac] ss:$12 sps:$4 sm:$0xff]   ;;  %v8107_v18 = vld [vmem:[%s9390_s14 + $0xa8] ss:$12 sps:$4 sm:$0xff]   ;;  %v9429_v23 = vshrl.u32 %v884_v22, 7  ;;  %v8856_v25 = vmov 0.0  }
 0x176   : > { %1030 = vmatpush1.bf16.msra.mxu0 %v8089_v6  ;;  %v847_v19 = vld [vmem:[%s11202_s29] sm:$0xff]  ;;  %v848_v20 = vld [vmem:[%s11202_s29 + $0x8] sm:$0x3]  ;;  %7630 = vmatprep.subr.bf16.mxu1 %v8856_v25  ;;  %vm8857_vm0 = vmmov 0   ;;  %vm1130_vm1 = vcmask 130048   ;;  %s11206_s25 = sld [smem:[#allocation43_spill]] }
 0x177   : > { %1031 = vmatprep.subr.bf16.mxu0 %v8090_v7  ;;  %v849_v21 = vpack.c.bf16 %v848_v20, %v847_v19  ;;  %11203 = vst [vmem:[#allocation29_spill] sm:$0xff] %v9429_v23  ;;  %v8108_v24 = vld [vmem:[%s9390_s14 + $0x8] ss:$12 sps:$4 sm:$0xff]   ;;  %7646 = vmatprep.mubr.msk.bf16.mxu1 %vm8857_vm0, %v8856_v25  ;;  %v8109_v26 = vld [vmem:[%s9390_s14 + $0x20] ss:$12 sps:$4 sm:$0xff]   ;;  %v9438_v27 = vsub.s32 0, %v9429_v23  ;;  %vm9459_vm2 = vmpackc.low %vm1130_vm1, %vm1130_vm1 }
 0x178   : > { %7631 = vmatpush3.bf16.msra.mxu1 %v8108_v24  ;;  %v882_v28 = vld [vmem:[%s9342_s4] sm:$0x7]  ;;  %v9443_v30 = vsub.s32 1, %v9429_v23  ;;  %v8111_v34 = vld [vmem:[%s9390_s14 + $0x50] ss:$12 sps:$4 sm:$0xff]   ;;  %s8858_s4 = smov 112  }
 0x179   : > { %7632 = vmatprep.subr.bf16.mxu1 %v8856_v25  ;;  %v8110_v29 = vld [vmem:[%s9390_s14 + $0x38] ss:$12 sps:$4 sm:$0xff]   ;;  %v887_v31 = vrot.slane %v882_v28, %v9438_v27  ;;  %v8112_v41 = vld [vmem:[%s9390_s14 + $0x68] ss:$12 sps:$4 sm:$0xff]   ;;  %v8113_v45 = vld [vmem:[%s9390_s14 + $0x80] ss:$12 sps:$4 sm:$0xff]  }
 0x17a   : > { %1032 = vmatpush1.bf16.msra.mxu0 %v8092_v8  ;;  %v891_v33 = vrot.slane %v882_v28, %v9443_v30  ;;  %v8114_v46 = vld [vmem:[%s9390_s14 + $0x98] ss:$12 sps:$4 sm:$0xff]   ;;  %v8115_v48 = vld [vmem:[%s9390_s14 + $0xb0] ss:$12 sps:$4 sm:$0xff]   ;;  %vm1222_vm3 = vcmask 80896   ;;  %vm1226_vm4 = vcmask 74752  }
 0x17b   : > { %1033 = vmatprep.subr.bf16.mxu0 %v8093_v9  ;;  %v9498_v59 = vsub.s32 2, %v9429_v23  ;;  %vm1252_vm5 = vcmask 1041408   ;;  %vm8859_vm6 = vmmov 1   ;;  %s8860_s14 = smov 96   ;;  %s8861_s20 = smov 80  }
 0x17c   : > { %7633 = vmatpush3.bf16.msra.mxu1 %v8109_v26  ;;  %v9486_v51 = vld [vmem:[%s11206_s25] sm:$0xff]  ;;  %v9491_v54 = vld [vmem:[%s11206_s25 + $0x8] sm:$0x3]  ;;  %vm9505_vm7 = vmpackc.low %vm1252_vm5, %vm8859_vm6  ;;  %s8863_s3 = smov 48   ;;  %s8864_s27 = smov 32  }
 0x17d   : > { %7634 = vmatprep.subr.bf16.mxu1 %v8856_v25  ;;  %v895_v61 = vrot.slane %v882_v28, %v9498_v59  ;;  %s8865_s24 = smov 16   ;;  %s11210_s19 = scalar_lea.vmem [#allocation9], %s9338_s1 }
 0x17e   : > { %1034 = vmatpush1.bf16.msra.mxu0 %v8095_v10 }
 0x17f   : > { %1035 = vmatprep.subr.bf16.mxu0 %v8096_v11 }
 0x180   : > { %7635 = vmatpush3.bf16.msra.mxu1 %v8110_v29 }
 0x181   : > { %7636 = vmatprep.subr.bf16.mxu1 %v8856_v25 }
 0x182   : > { %1036 = vmatpush1.bf16.msra.mxu0 %v8098_v12 }
 0x183   : > { %1037 = vmatprep.subr.bf16.mxu0 %v8099_v13 }
 0x184   : > { %7637 = vmatpush3.bf16.msra.mxu1 %v8111_v34 }
 0x185   : > { %7638 = vmatprep.subr.bf16.mxu1 %v8856_v25 }
 0x186   : > { %1038 = vmatpush1.bf16.msra.mxu0 %v8101_v14 }
 0x187   : > { %1039 = vmatprep.subr.bf16.mxu0 %v8102_v15 }
 0x188   : > { %7639 = vmatpush3.bf16.msra.mxu1 %v8112_v41 }
 0x189   : > { %7640 = vmatprep.subr.bf16.mxu1 %v8856_v25 }
 0x18a   : > { %1040 = vmatpush1.bf16.msra.mxu0 %v8104_v16 }
 0x18b   : > { %1041 = vmatprep.subr.bf16.mxu0 %v8105_v17 }
 0x18c   : > { %7641 = vmatpush3.bf16.msra.mxu1 %v8113_v45 }
 0x18d   : > { %7642 = vmatprep.subr.bf16.mxu1 %v8856_v25 }
 0x18e   : > { %1042 = vmatpush1.bf16.msra.mxu0 %v8107_v18 }
 0x190   : > { %7643 = vmatpush3.bf16.msra.mxu1 %v8114_v46 }
 0x191   : > { %1060 = vmatmul.mubr.bf16.vlgmr.msra.gmra.mrb[0].mxu0 %v849_v21  ;;  %7644 = vmatprep.subr.bf16.mxu1 %v8856_v25 }
 0x194   : > { %7645 = vmatpush3.bf16.msra.mxu1 %v8115_v48 }
 0x197   : > { %7647 = vmatmul.mubr.bf16.vlgmr.msra.gmra.mrb[0].mxu1 %v849_v21 }
 0x264   : > { %v1061_v32 = vpop.f32.mrb[0].mxu0 }
 0x265   : > { %v9450_v35 = vadd.f32 %v1061_v32, %v887_v31  ;;  %v1063_v36 = vpop.f32.mrb[1].mxu0  ;;  %v8116_v32 = vld [vmem:[%s9350_s6] sm:$0xff]  }
 0x266   : > { %v1065_v37 = vpop.f32.mrb[2].mxu0  ;;  %v1064_v39 = vadd.f32 %v1063_v36, %v891_v33 }
 0x267   : > { %v1067_v38 = vpop.f32.mrb[3].mxu0  ;;  %1390 = vrot.lane.b32.xlu1 %v9450_v35, %s8858_s4  ;;  %7654 = vmatprep.mubr.msk.f32.mxu0 %vm1130_vm1, %v9450_v35  ;;  %v9475_v47 = vadd.f32 %v1065_v37, %v887_v31 }
 0x268   : > { %v1068_v40 = vadd.f32 %v1067_v38, %v891_v33 }
 0x26a   : > { %v7810_v43 = vpack.c.bf16 %v1068_v40, %v1064_v39  ;;  %v9464_v44 = vpack.i.bf16 %v1068_v40, %v1064_v39  ;;  %v1104_v60 = vpop.f32.mrb[0].mxu1 }
 0x26b   : > { %v7648_v62 = vpop.f32.mrb[1].mxu1  ;;  %v9501_v0 = vadd.f32 %v1104_v60, %v895_v61 }
 0x26c   : > { %7812 = vmatprep.subr.msk.bf16.mxu0 %vm9459_vm2, %v7810_v43  ;;  %v1107_v63 = vpop.f32.mrb[2].mxu1 }
 0x26d   : > { %7815 = vmatpush3.bf16.xpose.msk.msra.mxu0 %vm9459_vm2, %v7810_v43  ;;  %v1108_v1 = vadd.f32 %v1107_v63, %v895_v61  ;;  %v7649_v2 = vpop.f32.mrb[3].mxu1 }
 0x26e   : > { %7664 = vmatprep.subr.bf16.mxu0 %v8856_v25 }
 0x26f   : > { %v7816_v3 = vpack.c.bf16 %v1108_v1, %v9501_v0  ;;  %v9537_v48 = vpack.i.bf16 %v1108_v1, %v9501_v0 }
 0x271   : > { %7818 = vmatprep.subr.msk.bf16.mxu1 %vm9505_vm7, %v7816_v3 }
 0x272   : > { %7821 = vmatpush3.bf16.msk.msra.mxu1 %vm9505_vm7, %v7816_v3 }
 0x274   : > { %7655 = vmatmul.mubr.msk.f32.vlgmr.msra.gmra.mrb[4].mxu0 %vm1130_vm1, %v9475_v47 }
 0x275   : > { %7666 = vmatprep.mubr.msk.bf16.mxu0 %vm8857_vm0, %v8856_v25  ;;  %7665 = vmatpush3.bf16.msra.mxu0 %v8116_v32 }
 0x2d9   : > { %v1391_v20 = vpop.permute.xlu1 %1390 }
 0x347   : > { %v7656_v49 = vpop.f32.mrb[4].mxu0 }
 0x348   : > { %v1209_v50 = vpop.f32.mrb[5].mxu0  ;;  %v1219_v52 = vmul.f32 0.25, %v7656_v49 }
 0x349   : > { %v1218_v53 = vmul.f32 0.25, %v1209_v50 }
 0x34a   : > { %v1221_v57 = vadd.f32 %v1219_v52, %v9491_v54 }
 0x34b   : > { %v1220_v55 = vadd.f32 %v1218_v53, %v9486_v51 }
 0x34c   : > { %v1227_v58 = vsel %vm1226_vm4, %v1221_v57, -inf }
 0x34d   : > { %v1223_v56 = vsel %vm1222_vm3, %v1220_v55, -inf }
 0x34e   : > { %1224 = vmax.xlane.f32.xlu0 %v1223_v56 }
 0x352   : > { %1228 = vmax.xlane.f32.xlu0 %v1227_v58 }
 0x368   : > { %8015 = vrot.lane.b32.xlu0 %v9464_v44, %s8858_s4 }
 0x3db   : > { %v1225_v6 = vpop.xlane.xlu0 %1224 }
 0x3dc   : > { %v1230_v7 = vsub.f32 %v1220_v55, %v1225_v6 }
 0x3de   : > { %v1232_v10 = vmul.f32 1.442695, %v1230_v7 }
 0x3df   : > { %v1229_v8 = vpop.xlane.xlu0 %1228 }
 0x3e0   : > { %v1231_v9 = vsub.f32 %v1221_v57, %v1229_v8 }
 0x3e2   : > { %v1234_v11 = vmul.f32 1.442695, %v1231_v9 }
 0x3e3   : > { %v8016_v12 = vpop.permute.xlu0 %8015 }
 0x3e4   : > { %8252 = vpow2.f32 %v1234_v11  ;;  %v8018_v13 = vunpack.i.h.bf16 %v8016_v12  ;;  %v8017_v14 = vunpack.i.l.bf16 %v8016_v12 }
 0x3e5   : > { %8254 = vpow2.f32 %v1232_v10 }
 0x3e6   : > { %v7822_v15 = vpack.c.bf16 %v8018_v13, %v8017_v14 }
 0x3e8   : > { %7824 = vmatprep.subr.msk.bf16.mxu1 %vm9459_vm2, %v7822_v15 }
 0x3ee   : > { %v8253_v16 = vpop.eup %8252 }
 0x3ef   : > { %v1239_v17 = vsel %vm1226_vm4, %v8253_v16, 0.0  ;;  %v8255_v18 = vpop.eup %8254 }
 0x3f0   : > { %1240 = vadd.xlane.f32.xlu1 %v1239_v17  ;;  %v1236_v19 = vsel %vm1222_vm3, %v8255_v18, 0.0 }
 0x3f4   : > { %1237 = vadd.xlane.f32.xlu1 %v1236_v19 }
 0x405   : > { %1392 = vrot.lane.b32.xlu1 %v9475_v47, %s8858_s4 }
 0x47d   : > { %v1241_v21 = vpop.xlane.xlu1 %1240 }
 0x47e   : > { %8256 = vrcp.f32 %v1241_v21 }
 0x481   : > { %v1238_v22 = vpop.xlane.xlu1 %1237 }
 0x482   : > { %8258 = vrcp.f32 %v1238_v22 }
 0x485   : > { %v1393_v31 = vpop.permute.xlu1 %1392 }
 0x488   : > { %v8257_v24 = vpop.eup %8256 }
 0x489   : > { %v1245_v29 = vmul.f32 %v8257_v24, %v8253_v16 }
 0x48c   : > { %v8259_v26 = vpop.eup %8258 }
 0x48d   : > { %v1244_v28 = vmul.f32 %v8259_v26, %v8255_v18 }
 0x48f   : > { %7661 = vmatprep.mubr.msk.f32.mxu1 %vm1222_vm3, %v1244_v28 }
 0x490   : > { %7662 = vmatmul.mubr.msk.f32.vlgmr.msra.gmra.mrb[4].mxu1 %vm1222_vm3, %v1245_v29 }
 0x491   : > { %7827 = vmatpush3.bf16.xpose.msk.msra.mxu1 %vm9459_vm2, %v7822_v15  ;;  %7674 = vmatprep.mubr.msk.f32.mxu1 %vm1130_vm1, %v1391_v20  ;;  %v8117_v20 = vld [vmem:[%s9350_s6 + $0x8] sm:$0xff]  }
 0x492   : > { %7684 = vmatprep.subr.bf16.mxu1 %v8856_v25 }
 0x498   : > { %7675 = vmatmul.mubr.msk.f32.vlgmr.msra.gmra.mrb[6].mxu1 %vm1130_vm1, %v1393_v31 }
 0x499   : > { %7686 = vmatprep.mubr.msk.bf16.mxu1 %vm8857_vm0, %v8856_v25  ;;  %7685 = vmatpush3.bf16.msra.mxu1 %v8117_v20 }
 0x563   : > { %v7663_v33 = vpop.f32.mrb[4].mxu1 }
 0x564   : > { %v1322_v34 = vpop.f32.mrb[5].mxu1 }
 0x565   : > { %v1331_v36 = vpack.c.bf16 %v7663_v33, %v1322_v34 }
 0x567   : > { %7667 = vmatmul.mubr.msk.bf16.vlgmr.msra.gmra.mrb[8].mxu0 %vm1130_vm1, %v1331_v36 }
 0x56b   : > { %v7676_v37 = vpop.f32.mrb[6].mxu1 }
 0x56c   : > { %v1482_v38 = vmul.f32 0.25, %v7676_v37  ;;  %v1472_v39 = vpop.f32.mrb[7].mxu1 }
 0x56d   : > { %v1481_v40 = vmul.f32 0.25, %v1472_v39 }
 0x56e   : > { %v1484_v41 = vadd.f32 %v1482_v38, %v9491_v54 }
 0x56f   : > { %v1483_v43 = vadd.f32 %v1481_v40, %v9486_v51 }
 0x570   : > { %v1488_v45 = vsel %vm1226_vm4, %v1484_v41, -inf }
 0x571   : > { %1489 = vmax.xlane.f32.xlu0 %v1488_v45  ;;  %v1485_v46 = vsel %vm1222_vm3, %v1483_v43, -inf }
 0x572   : > { %1486 = vmax.xlane.f32.xlu1 %v1485_v46 }
 0x583   : > { %8020 = vrot.lane.b32.xlu1 %v9537_v48, %s8858_s4  ;;  %s11209_s4 = scalar_lea.vmem [#allocation7], %s9338_s1 }
 0x587   : > { %1649 = vrot.lane.b32.xlu1 %v9450_v35, %s8860_s14 }
 0x58b   : > { %1651 = vrot.lane.b32.xlu1 %v9475_v47, %s8860_s14 }
 0x5fe   : > { %v1490_v49 = vpop.xlane.xlu0 %1489 }
 0x5ff   : > { %v1492_v50 = vsub.f32 %v1484_v41, %v1490_v49  ;;  %v1487_v52 = vpop.xlane.xlu1 %1486 }
 0x600   : > { %v1491_v53 = vsub.f32 %v1483_v43, %v1487_v52 }
 0x601   : > { %v1495_v55 = vmul.f32 1.442695, %v1492_v50 }
 0x602   : > { %v1493_v56 = vmul.f32 1.442695, %v1491_v53 }
 0x603   : > { %8260 = vpow2.f32 %v1495_v55  ;;  %v8021_v57 = vpop.permute.xlu1 %8020 }
 0x604   : > { %v8023_v58 = vunpack.i.h.bf16 %v8021_v57  ;;  %v8022_v60 = vunpack.i.l.bf16 %v8021_v57  ;;  %8262 = vpow2.f32 %v1493_v56  ;;  %v7034_v57 = vld [vmem:[%s677_s28] ss:$0 sm:$0xff]  ;;  %s8862_s28 = smov 64  }
 0x606   : > { %v7828_v61 = vpack.c.bf16 %v8023_v58, %v8022_v60 }
 0x607   : > { %v1650_v18 = vpop.permute.xlu1 %1649 }
 0x608   : > { %7830 = vmatprep.subr.msk.bf16.mxu0 %vm9505_vm7, %v7828_v61 }
 0x609   : > { %7833 = vmatpush3.bf16.msk.msra.mxu0 %vm9505_vm7, %v7828_v61 }
 0x60b   : > { %v1652_v19 = vpop.permute.xlu1 %1651 }
 0x60d   : > { %v8261_v62 = vpop.eup %8260 }
 0x60e   : > { %v1500_v63 = vsel %vm1226_vm4, %v8261_v62, 0.0  ;;  %v8263_v0 = vpop.eup %8262 }
 0x60f   : > { %1501 = vadd.xlane.f32.xlu0 %v1500_v63  ;;  %v1497_v1 = vsel %vm1222_vm3, %v8263_v0, 0.0 }
 0x613   : > { %1498 = vadd.xlane.f32.xlu0 %v1497_v1 }
 0x629   : > { %8025 = vrot.lane.b32.xlu0 %v9464_v44, %s8860_s14 }
 0x63a   : > { %v9553_v2 = vpop.f32.mrb[8].mxu0 }
 0x63b   : > { %v7668_v3 = vpop.f32.mrb[9].mxu0  ;;  %v1388_v58 = vadd.f32 %v7034_v57, %v9553_v2 }
 0x63c   : > { %v9555_v6 = vpop.f32.mrb[10].mxu0 }
 0x63d   : > { %v7669_v7 = vpop.f32.mrb[11].mxu0  ;;  %v1389_v61 = vadd.f32 %v7034_v57, %v9555_v6 }
 0x69c   : > { %v1502_v8 = vpop.xlane.xlu0 %1501 }
 0x69d   : > { %8264 = vrcp.f32 %v1502_v8 }
 0x6a0   : > { %v1499_v9 = vpop.xlane.xlu0 %1498 }
 0x6a1   : > { %8266 = vrcp.f32 %v1499_v9 }
 0x6a4   : > { %v8026_v10 = vpop.permute.xlu0 %8025 }
 0x6a5   : > { %v8028_v11 = vunpack.i.h.bf16 %v8026_v10  ;;  %v8027_v12 = vunpack.i.l.bf16 %v8026_v10 }
 0x6a7   : > { %v7834_v13 = vpack.c.bf16 %v8028_v11, %v8027_v12  ;;  %v8265_v14 = vpop.eup %8264 }
 0x6a8   : > { %v1506_v17 = vmul.f32 %v8265_v14, %v8261_v62 }
 0x6a9   : > { %7836 = vmatprep.subr.msk.bf16.mxu0 %vm9459_vm2, %v7834_v13 }
 0x6ab   : > { %v8267_v15 = vpop.eup %8266 }
 0x6ac   : > { %v1505_v16 = vmul.f32 %v8267_v15, %v8263_v0 }
 0x6ae   : > { %7681 = vmatprep.mubr.msk.f32.mxu0 %vm1222_vm3, %v1505_v16 }
 0x6af   : > { %7682 = vmatmul.mubr.msk.f32.vlgmr.msra.gmra.mrb[6].mxu0 %vm1222_vm3, %v1506_v17  ;;  %v8118_v17 = vld [vmem:[%s9350_s6 + $0x10] sm:$0xff]  }
 0x6b0   : > { %7839 = vmatpush3.bf16.xpose.msk.msra.mxu0 %vm9459_vm2, %v7834_v13  ;;  %7694 = vmatprep.mubr.msk.f32.mxu0 %vm1130_vm1, %v1650_v18 }
 0x6b1   : > { %7704 = vmatprep.subr.bf16.mxu0 %v8856_v25 }
 0x6b7   : > { %7695 = vmatmul.mubr.msk.f32.vlgmr.msra.gmra.mrb[12].mxu0 %vm1130_vm1, %v1652_v19 }
 0x6b8   : > { %7706 = vmatprep.mubr.msk.bf16.mxu0 %vm8857_vm0, %v8856_v25  ;;  %7705 = vmatpush3.bf16.msra.mxu0 %v8118_v17 }
 0x782   : > { %v7683_v21 = vpop.f32.mrb[6].mxu0 }
 0x783   : > { %v1587_v22 = vpop.f32.mrb[7].mxu0 }
 0x784   : > { %v1596_v24 = vpack.c.bf16 %v7683_v21, %v1587_v22 }
 0x786   : > { %7687 = vmatmul.mubr.msk.bf16.vlgmr.msra.gmra.mrb[8].mxu1 %vm1130_vm1, %v1596_v24 }
 0x78a   : > { %v7696_v26 = vpop.f32.mrb[12].mxu0 }
 0x78b   : > { %v1741_v28 = vmul.f32 0.25, %v7696_v26  ;;  %v1731_v29 = vpop.f32.mrb[13].mxu0 }
 0x78c   : > { %v1740_v31 = vmul.f32 0.25, %v1731_v29 }
 0x78d   : > { %v1743_v32 = vadd.f32 %v1741_v28, %v9491_v54 }
 0x78e   : > { %v1742_v33 = vadd.f32 %v1740_v31, %v9486_v51 }
 0x78f   : > { %v1747_v34 = vsel %vm1226_vm4, %v1743_v32, -inf }
 0x790   : > { %1748 = vmax.xlane.f32.xlu0 %v1747_v34  ;;  %v1744_v36 = vsel %vm1222_vm3, %v1742_v33, -inf }
 0x791   : > { %1745 = vmax.xlane.f32.xlu1 %v1744_v36 }
 0x7a2   : > { %8030 = vrot.lane.b32.xlu1 %v9537_v48, %s8860_s14 }
 0x7a6   : > { %1907 = vrot.lane.b32.xlu1 %v9450_v35, %s8861_s20 }
 0x7aa   : > { %1909 = vrot.lane.b32.xlu1 %v9475_v47, %s8861_s20 }
 0x81d   : > { %v1749_v37 = vpop.xlane.xlu0 %1748 }
 0x81e   : > { %v1751_v38 = vsub.f32 %v1743_v32, %v1749_v37  ;;  %v1746_v39 = vpop.xlane.xlu1 %1745 }
 0x81f   : > { %v1750_v40 = vsub.f32 %v1742_v33, %v1746_v39 }
 0x820   : > { %v1754_v41 = vmul.f32 1.442695, %v1751_v38 }
 0x821   : > { %v1752_v43 = vmul.f32 1.442695, %v1750_v40 }
 0x822   : > { %8268 = vpow2.f32 %v1754_v41  ;;  %v8031_v45 = vpop.permute.xlu1 %8030 }
 0x823   : > { %v8033_v46 = vunpack.i.h.bf16 %v8031_v45  ;;  %v8032_v49 = vunpack.i.l.bf16 %v8031_v45  ;;  %8270 = vpow2.f32 %v1752_v43 }
 0x825   : > { %v7840_v50 = vpack.c.bf16 %v8033_v46, %v8032_v49 }
 0x826   : > { %v1908_v15 = vpop.permute.xlu1 %1907 }
 0x827   : > { %7842 = vmatprep.subr.msk.bf16.mxu1 %vm9505_vm7, %v7840_v50 }
 0x828   : > { %7845 = vmatpush3.bf16.msk.msra.mxu1 %vm9505_vm7, %v7840_v50 }
 0x82a   : > { %v1910_v16 = vpop.permute.xlu1 %1909 }
 0x82c   : > { %v8269_v52 = vpop.eup %8268 }
 0x82d   : > { %v1759_v53 = vsel %vm1226_vm4, %v8269_v52, 0.0  ;;  %v8271_v55 = vpop.eup %8270 }
 0x82e   : > { %1760 = vadd.xlane.f32.xlu0 %v1759_v53  ;;  %v1756_v56 = vsel %vm1222_vm3, %v8271_v55, 0.0 }
 0x832   : > { %1757 = vadd.xlane.f32.xlu0 %v1756_v56 }
 0x848   : > { %8035 = vrot.lane.b32.xlu0 %v9464_v44, %s8861_s20 }
 0x859   : > { %v1640_v60 = vpop.f32.mrb[8].mxu1 }
 0x85a   : > { %v9592_v62 = vadd.f32 %v1640_v60, %v1388_v58  ;;  %v7688_v63 = vpop.f32.mrb[9].mxu1 }
 0x85b   : > { %v1643_v0 = vpop.f32.mrb[10].mxu1 }
 0x85c   : > { %v9594_v1 = vadd.f32 %v1643_v0, %v1389_v61  ;;  %v7689_v3 = vpop.f32.mrb[11].mxu1 }
 0x8bb   : > { %v1761_v7 = vpop.xlane.xlu0 %1760 }
 0x8bc   : > { %8272 = vrcp.f32 %v1761_v7 }
 0x8bf   : > { %v1758_v8 = vpop.xlane.xlu0 %1757 }
 0x8c0   : > { %8274 = vrcp.f32 %v1758_v8 }
 0x8c3   : > { %v8036_v9 = vpop.permute.xlu0 %8035 }
 0x8c4   : > { %v8038_v10 = vunpack.i.h.bf16 %v8036_v9  ;;  %v8037_v11 = vunpack.i.l.bf16 %v8036_v9 }
 0x8c6   : > { %v7846_v12 = vpack.c.bf16 %v8038_v10, %v8037_v11  ;;  %v8273_v2 = vpop.eup %8272 }
 0x8c7   : > { %v1765_v14 = vmul.f32 %v8273_v2, %v8269_v52  ;;  %v8119_v2 = vld [vmem:[%s9350_s6 + $0x18] sm:$0xff]  }
 0x8c8   : > { %7848 = vmatprep.subr.msk.bf16.mxu1 %vm9459_vm2, %v7846_v12 }
 0x8ca   : > { %v8275_v6 = vpop.eup %8274 }
 0x8cb   : > { %v1764_v13 = vmul.f32 %v8275_v6, %v8271_v55 }
 0x8cd   : > { %7701 = vmatprep.mubr.msk.f32.mxu1 %vm1222_vm3, %v1764_v13 }
 0x8ce   : > { %7702 = vmatmul.mubr.msk.f32.vlgmr.msra.gmra.mrb[12].mxu1 %vm1222_vm3, %v1765_v14 }
 0x8cf   : > { %7851 = vmatpush3.bf16.xpose.msk.msra.mxu1 %vm9459_vm2, %v7846_v12  ;;  %7714 = vmatprep.mubr.msk.f32.mxu1 %vm1130_vm1, %v1908_v15 }
 0x8d0   : > { %7724 = vmatprep.subr.bf16.mxu1 %v8856_v25 }
 0x8d6   : > { %7715 = vmatmul.mubr.msk.f32.vlgmr.msra.gmra.mrb[14].mxu1 %vm1130_vm1, %v1910_v16 }
 0x8d7   : > { %7726 = vmatprep.mubr.msk.bf16.mxu1 %vm8857_vm0, %v8856_v25  ;;  %7725 = vmatpush3.bf16.msra.mxu1 %v8119_v2 }
 0x9a1   : > { %v7703_v18 = vpop.f32.mrb[12].mxu1 }
 0x9a2   : > { %v1845_v19 = vpop.f32.mrb[13].mxu1 }
 0x9a3   : > { %v1854_v20 = vpack.c.bf16 %v7703_v18, %v1845_v19 }
 0x9a5   : > { %7707 = vmatmul.mubr.msk.bf16.vlgmr.msra.gmra.mrb[16].mxu0 %vm1130_vm1, %v1854_v20 }
 0x9a9   : > { %v7716_v21 = vpop.f32.mrb[14].mxu1 }
 0x9aa   : > { %v1999_v22 = vmul.f32 0.25, %v7716_v21  ;;  %v1989_v24 = vpop.f32.mrb[15].mxu1 }
 0x9ab   : > { %v1998_v26 = vmul.f32 0.25, %v1989_v24 }
 0x9ac   : > { %v2001_v28 = vadd.f32 %v1999_v22, %v9491_v54 }
 0x9ad   : > { %v2000_v29 = vadd.f32 %v1998_v26, %v9486_v51 }
 0x9ae   : > { %v2005_v31 = vsel %vm1226_vm4, %v2001_v28, -inf }
 0x9af   : > { %2006 = vmax.xlane.f32.xlu0 %v2005_v31  ;;  %v2002_v32 = vsel %vm1222_vm3, %v2000_v29, -inf }
 0x9b0   : > { %2003 = vmax.xlane.f32.xlu1 %v2002_v32 }
 0x9c1   : > { %8040 = vrot.lane.b32.xlu1 %v9537_v48, %s8861_s20 }
 0x9c5   : > { %2165 = vrot.lane.b32.xlu1 %v9450_v35, %s8862_s28 }
 0x9c9   : > { %2167 = vrot.lane.b32.xlu1 %v9475_v47, %s8862_s28 }
 0xa3c   : > { %v2007_v33 = vpop.xlane.xlu0 %2006 }
 0xa3d   : > { %v2009_v34 = vsub.f32 %v2001_v28, %v2007_v33  ;;  %v2004_v36 = vpop.xlane.xlu1 %2003 }
 0xa3e   : > { %v2008_v37 = vsub.f32 %v2000_v29, %v2004_v36 }
 0xa3f   : > { %v2012_v38 = vmul.f32 1.442695, %v2009_v34 }
 0xa40   : > { %v2010_v39 = vmul.f32 1.442695, %v2008_v37 }
 0xa41   : > { %8276 = vpow2.f32 %v2012_v38  ;;  %v8041_v40 = vpop.permute.xlu1 %8040 }
 0xa42   : > { %v8043_v41 = vunpack.i.h.bf16 %v8041_v40  ;;  %v8042_v43 = vunpack.i.l.bf16 %v8041_v40  ;;  %8278 = vpow2.f32 %v2010_v39 }
 0xa44   : > { %v7852_v45 = vpack.c.bf16 %v8043_v41, %v8042_v43 }
 0xa46   : > { %7854 = vmatprep.subr.msk.bf16.mxu0 %vm9505_vm7, %v7852_v45 }
 0xa47   : > { %7857 = vmatpush3.bf16.msk.msra.mxu0 %vm9505_vm7, %v7852_v45 }
 0xa4b   : > { %v8277_v46 = vpop.eup %8276 }
 0xa4c   : > { %v2017_v49 = vsel %vm1226_vm4, %v8277_v46, 0.0  ;;  %v8279_v50 = vpop.eup %8278 }
 0xa4d   : > { %2018 = vadd.xlane.f32.xlu0 %v2017_v49  ;;  %v2014_v52 = vsel %vm1222_vm3, %v8279_v50, 0.0 }
 0xa51   : > { %2015 = vadd.xlane.f32.xlu0 %v2014_v52 }
 0xa67   : > { %8045 = vrot.lane.b32.xlu0 %v9464_v44, %s8862_s28 }
 0xa78   : > { %v1898_v53 = vpop.f32.mrb[16].mxu0 }
 0xa79   : > { %v9628_v55 = vadd.f32 %v1898_v53, %v9592_v62  ;;  %v7708_v56 = vpop.f32.mrb[17].mxu0 }
 0xa7a   : > { %v1901_v57 = vpop.f32.mrb[18].mxu0 }
 0xa7b   : > { %v9631_v58 = vadd.f32 %v1901_v57, %v9594_v1  ;;  %v7709_v60 = vpop.f32.mrb[19].mxu0  ;;  %v2166_v1 = vpop.permute.xlu1 %2165 }
 0xa7f   : > { %v2168_v12 = vpop.permute.xlu1 %2167 }
 0xada   : > { %v2019_v61 = vpop.xlane.xlu0 %2018 }
 0xadb   : > { %8280 = vrcp.f32 %v2019_v61 }
 0xade   : > { %v2016_v63 = vpop.xlane.xlu0 %2015 }
 0xadf   : > { %8282 = vrcp.f32 %v2016_v63 }
 0xae2   : > { %v8046_v0 = vpop.permute.xlu0 %8045 }
 0xae3   : > { %v8048_v3 = vunpack.i.h.bf16 %v8046_v0  ;;  %v8047_v7 = vunpack.i.l.bf16 %v8046_v0 }
 0xae5   : > { %v7858_v8 = vpack.c.bf16 %v8048_v3, %v8047_v7  ;;  %v8281_v62 = vpop.eup %8280 }
 0xae6   : > { %v2023_v11 = vmul.f32 %v8281_v62, %v8277_v46  ;;  %v8120_v62 = vld [vmem:[%s9350_s6 + $0x20] sm:$0xff]  }
 0xae7   : > { %7860 = vmatprep.subr.msk.bf16.mxu0 %vm9459_vm2, %v7858_v8 }
 0xae9   : > { %v8283_v9 = vpop.eup %8282 }
 0xaea   : > { %v2022_v10 = vmul.f32 %v8283_v9, %v8279_v50 }
 0xaec   : > { %7721 = vmatprep.mubr.msk.f32.mxu0 %vm1222_vm3, %v2022_v10 }
 0xaed   : > { %7722 = vmatmul.mubr.msk.f32.vlgmr.msra.gmra.mrb[14].mxu0 %vm1222_vm3, %v2023_v11 }
 0xaee   : > { %7863 = vmatpush3.bf16.xpose.msk.msra.mxu0 %vm9459_vm2, %v7858_v8  ;;  %7734 = vmatprep.mubr.msk.f32.mxu0 %vm1130_vm1, %v2166_v1 }
 0xaef   : > { %7744 = vmatprep.subr.bf16.mxu0 %v8856_v25 }
 0xaf5   : > { %7735 = vmatmul.mubr.msk.f32.vlgmr.msra.gmra.mrb[20].mxu0 %vm1130_vm1, %v2168_v12 }
 0xaf6   : > { %7746 = vmatprep.mubr.msk.bf16.mxu0 %vm8857_vm0, %v8856_v25  ;;  %7745 = vmatpush3.bf16.msra.mxu0 %v8120_v62 }
 0xbc0   : > { %v7723_v6 = vpop.f32.mrb[14].mxu0 }
 0xbc1   : > { %v2103_v13 = vpop.f32.mrb[15].mxu0 }
 0xbc2   : > { %v2112_v14 = vpack.c.bf16 %v7723_v6, %v2103_v13 }
 0xbc4   : > { %7727 = vmatmul.mubr.msk.bf16.vlgmr.msra.gmra.mrb[16].mxu1 %vm1130_vm1, %v2112_v14 }
 0xbc8   : > { %v7736_v15 = vpop.f32.mrb[20].mxu0 }
 0xbc9   : > { %v2257_v16 = vmul.f32 0.25, %v7736_v15  ;;  %v2247_v17 = vpop.f32.mrb[21].mxu0 }
 0xbca   : > { %v2256_v18 = vmul.f32 0.25, %v2247_v17 }
 0xbcb   : > { %v2259_v19 = vadd.f32 %v2257_v16, %v9491_v54 }
 0xbcc   : > { %v2258_v20 = vadd.f32 %v2256_v18, %v9486_v51 }
 0xbcd   : > { %v2263_v21 = vsel %vm1226_vm4, %v2259_v19, -inf }
 0xbce   : > { %2264 = vmax.xlane.f32.xlu0 %v2263_v21  ;;  %v2260_v22 = vsel %vm1222_vm3, %v2258_v20, -inf }
 0xbcf   : > { %2261 = vmax.xlane.f32.xlu1 %v2260_v22 }
 0xbe0   : > { %8050 = vrot.lane.b32.xlu1 %v9537_v48, %s8862_s28 }
 0xbe4   : > { %2423 = vrot.lane.b32.xlu1 %v9450_v35, %s8863_s3 }
 0xbe8   : > { %2425 = vrot.lane.b32.xlu1 %v9475_v47, %s8863_s3 }
 0xc5b   : > { %v2265_v24 = vpop.xlane.xlu0 %2264 }
 0xc5c   : > { %v2267_v26 = vsub.f32 %v2259_v19, %v2265_v24  ;;  %v2262_v28 = vpop.xlane.xlu1 %2261 }
 0xc5d   : > { %v2266_v29 = vsub.f32 %v2258_v20, %v2262_v28 }
 0xc5e   : > { %v2270_v31 = vmul.f32 1.442695, %v2267_v26 }
 0xc5f   : > { %v2268_v32 = vmul.f32 1.442695, %v2266_v29 }
 0xc60   : > { %8284 = vpow2.f32 %v2270_v31  ;;  %v8051_v33 = vpop.permute.xlu1 %8050 }
 0xc61   : > { %v8053_v34 = vunpack.i.h.bf16 %v8051_v33  ;;  %v8052_v36 = vunpack.i.l.bf16 %v8051_v33  ;;  %8286 = vpow2.f32 %v2268_v32 }
 0xc63   : > { %v7864_v37 = vpack.c.bf16 %v8053_v34, %v8052_v36 }
 0xc65   : > { %7866 = vmatprep.subr.msk.bf16.mxu1 %vm9505_vm7, %v7864_v37 }
 0xc66   : > { %7869 = vmatpush3.bf16.msk.msra.mxu1 %vm9505_vm7, %v7864_v37 }
 0xc6a   : > { %v8285_v38 = vpop.eup %8284 }
 0xc6b   : > { %v2275_v39 = vsel %vm1226_vm4, %v8285_v38, 0.0  ;;  %v8287_v40 = vpop.eup %8286 }
 0xc6c   : > { %2276 = vadd.xlane.f32.xlu0 %v2275_v39  ;;  %v2272_v41 = vsel %vm1222_vm3, %v8287_v40, 0.0 }
 0xc70   : > { %2273 = vadd.xlane.f32.xlu0 %v2272_v41 }
 0xc86   : > { %8055 = vrot.lane.b32.xlu0 %v9464_v44, %s8863_s3 }
 0xc97   : > { %v2156_v43 = vpop.f32.mrb[16].mxu1 }
 0xc98   : > { %v9665_v45 = vadd.f32 %v2156_v43, %v9628_v55  ;;  %v7728_v46 = vpop.f32.mrb[17].mxu1 }
 0xc99   : > { %v2159_v49 = vpop.f32.mrb[18].mxu1 }
 0xc9a   : > { %v9668_v50 = vadd.f32 %v2159_v49, %v9631_v58  ;;  %v7729_v52 = vpop.f32.mrb[19].mxu1  ;;  %v2424_v58 = vpop.permute.xlu1 %2423 }
 0xc9e   : > { %v2426_v8 = vpop.permute.xlu1 %2425 }
 0xcf9   : > { %v2277_v53 = vpop.xlane.xlu0 %2276 }
 0xcfa   : > { %8288 = vrcp.f32 %v2277_v53 }
 0xcfd   : > { %v2274_v56 = vpop.xlane.xlu0 %2273 }
 0xcfe   : > { %8290 = vrcp.f32 %v2274_v56 }
 0xd01   : > { %v8056_v57 = vpop.permute.xlu0 %8055 }
 0xd02   : > { %v8058_v60 = vunpack.i.h.bf16 %v8056_v57  ;;  %v8057_v61 = vunpack.i.l.bf16 %v8056_v57 }
 0xd04   : > { %v7870_v63 = vpack.c.bf16 %v8058_v60, %v8057_v61  ;;  %v8289_v55 = vpop.eup %8288 }
 0xd05   : > { %v2281_v7 = vmul.f32 %v8289_v55, %v8285_v38  ;;  %v8121_v55 = vld [vmem:[%s9350_s6 + $0x28] sm:$0xff]  }
 0xd06   : > { %7872 = vmatprep.subr.msk.bf16.mxu1 %vm9459_vm2, %v7870_v63 }
 0xd08   : > { %v8291_v0 = vpop.eup %8290 }
 0xd09   : > { %v2280_v3 = vmul.f32 %v8291_v0, %v8287_v40 }
 0xd0b   : > { %7741 = vmatprep.mubr.msk.f32.mxu1 %vm1222_vm3, %v2280_v3 }
 0xd0c   : > { %7742 = vmatmul.mubr.msk.f32.vlgmr.msra.gmra.mrb[20].mxu1 %vm1222_vm3, %v2281_v7 }
 0xd0d   : > { %7875 = vmatpush3.bf16.xpose.msk.msra.mxu1 %vm9459_vm2, %v7870_v63  ;;  %7754 = vmatprep.mubr.msk.f32.mxu1 %vm1130_vm1, %v2424_v58 }
 0xd0e   : > { %7764 = vmatprep.subr.bf16.mxu1 %v8856_v25 }
 0xd14   : > { %7755 = vmatmul.mubr.msk.f32.vlgmr.msra.gmra.mrb[22].mxu1 %vm1130_vm1, %v2426_v8 }
 0xd15   : > { %7766 = vmatprep.mubr.msk.bf16.mxu1 %vm8857_vm0, %v8856_v25  ;;  %7765 = vmatpush3.bf16.msra.mxu1 %v8121_v55 }
 0xddf   : > { %v7743_v9 = vpop.f32.mrb[20].mxu1 }
 0xde0   : > { %v2361_v10 = vpop.f32.mrb[21].mxu1 }
 0xde1   : > { %v2370_v11 = vpack.c.bf16 %v7743_v9, %v2361_v10 }
 0xde3   : > { %7747 = vmatmul.mubr.msk.bf16.vlgmr.msra.gmra.mrb[24].mxu0 %vm1130_vm1, %v2370_v11 }
 0xde7   : > { %v7756_v1 = vpop.f32.mrb[22].mxu1 }
 0xde8   : > { %v2515_v12 = vmul.f32 0.25, %v7756_v1  ;;  %v2505_v2 = vpop.f32.mrb[23].mxu1 }
 0xde9   : > { %v2514_v6 = vmul.f32 0.25, %v2505_v2 }
 0xdea   : > { %v2517_v13 = vadd.f32 %v2515_v12, %v9491_v54 }
 0xdeb   : > { %v2516_v14 = vadd.f32 %v2514_v6, %v9486_v51 }
 0xdec   : > { %v2521_v15 = vsel %vm1226_vm4, %v2517_v13, -inf }
 0xded   : > { %2522 = vmax.xlane.f32.xlu0 %v2521_v15  ;;  %v2518_v16 = vsel %vm1222_vm3, %v2516_v14, -inf }
 0xdee   : > { %2519 = vmax.xlane.f32.xlu1 %v2518_v16 }
 0xdff   : > { %8060 = vrot.lane.b32.xlu1 %v9537_v48, %s8863_s3 }
 0xe03   : > { %2681 = vrot.lane.b32.xlu1 %v9450_v35, %s8864_s27 }
 0xe07   : > { %2683 = vrot.lane.b32.xlu1 %v9475_v47, %s8864_s27 }
 0xe7a   : > { %v2523_v17 = vpop.xlane.xlu0 %2522 }
 0xe7b   : > { %v2525_v18 = vsub.f32 %v2517_v13, %v2523_v17  ;;  %v2520_v19 = vpop.xlane.xlu1 %2519 }
 0xe7c   : > { %v2524_v20 = vsub.f32 %v2516_v14, %v2520_v19 }
 0xe7d   : > { %v2528_v21 = vmul.f32 1.442695, %v2525_v18 }
 0xe7e   : > { %v2526_v22 = vmul.f32 1.442695, %v2524_v20 }
 0xe7f   : > { %8292 = vpow2.f32 %v2528_v21  ;;  %v8061_v24 = vpop.permute.xlu1 %8060 }
 0xe80   : > { %v8063_v26 = vunpack.i.h.bf16 %v8061_v24  ;;  %v8062_v28 = vunpack.i.l.bf16 %v8061_v24  ;;  %8294 = vpow2.f32 %v2526_v22 }
 0xe82   : > { %v7876_v29 = vpack.c.bf16 %v8063_v26, %v8062_v28 }
 0xe84   : > { %7878 = vmatprep.subr.msk.bf16.mxu0 %vm9505_vm7, %v7876_v29 }
 0xe85   : > { %7881 = vmatpush3.bf16.msk.msra.mxu0 %vm9505_vm7, %v7876_v29 }
 0xe89   : > { %v8293_v31 = vpop.eup %8292 }
 0xe8a   : > { %v2533_v32 = vsel %vm1226_vm4, %v8293_v31, 0.0  ;;  %v8295_v33 = vpop.eup %8294 }
 0xe8b   : > { %2534 = vadd.xlane.f32.xlu0 %v2533_v32  ;;  %v2530_v34 = vsel %vm1222_vm3, %v8295_v33, 0.0 }
 0xe8f   : > { %2531 = vadd.xlane.f32.xlu0 %v2530_v34 }
 0xea5   : > { %8065 = vrot.lane.b32.xlu0 %v9464_v44, %s8864_s27 }
 0xeb6   : > { %v2414_v36 = vpop.f32.mrb[24].mxu0 }
 0xeb7   : > { %v9702_v37 = vadd.f32 %v2414_v36, %v9665_v45  ;;  %v7748_v38 = vpop.f32.mrb[25].mxu0 }
 0xeb8   : > { %v2417_v39 = vpop.f32.mrb[26].mxu0 }
 0xeb9   : > { %v9705_v40 = vadd.f32 %v2417_v39, %v9668_v50  ;;  %v7749_v41 = vpop.f32.mrb[27].mxu0  ;;  %v2682_v50 = vpop.permute.xlu1 %2681 }
 0xebd   : > { %v2684_v63 = vpop.permute.xlu1 %2683 }
 0xf18   : > { %v2535_v43 = vpop.xlane.xlu0 %2534 }
 0xf19   : > { %8296 = vrcp.f32 %v2535_v43 }
 0xf1c   : > { %v2532_v46 = vpop.xlane.xlu0 %2531 }
 0xf1d   : > { %8298 = vrcp.f32 %v2532_v46 }
 0xf20   : > { %v8066_v49 = vpop.permute.xlu0 %8065 }
 0xf21   : > { %v8068_v52 = vunpack.i.h.bf16 %v8066_v49  ;;  %v8067_v53 = vunpack.i.l.bf16 %v8066_v49 }
 0xf23   : > { %v7882_v56 = vpack.c.bf16 %v8068_v52, %v8067_v53  ;;  %v8297_v45 = vpop.eup %8296  ;;  %v8122_v52 = vld [vmem:[%s9350_s6 + $0x30] sm:$0xff]  }
 0xf24   : > { %v2539_v61 = vmul.f32 %v8297_v45, %v8293_v31 }
 0xf25   : > { %7884 = vmatprep.subr.msk.bf16.mxu0 %vm9459_vm2, %v7882_v56 }
 0xf27   : > { %v8299_v57 = vpop.eup %8298 }
 0xf28   : > { %v2538_v60 = vmul.f32 %v8299_v57, %v8295_v33 }
 0xf2a   : > { %7761 = vmatprep.mubr.msk.f32.mxu0 %vm1222_vm3, %v2538_v60 }
 0xf2b   : > { %7762 = vmatmul.mubr.msk.f32.vlgmr.msra.gmra.mrb[22].mxu0 %vm1222_vm3, %v2539_v61 }
 0xf2c   : > { %7887 = vmatpush3.bf16.xpose.msk.msra.mxu0 %vm9459_vm2, %v7882_v56  ;;  %7774 = vmatprep.mubr.msk.f32.mxu0 %vm1130_vm1, %v2682_v50 }
 0xf2d   : > { %7784 = vmatprep.subr.bf16.mxu0 %v8856_v25 }
 0xf33   : > { %7775 = vmatmul.mubr.msk.f32.vlgmr.msra.gmra.mrb[28].mxu0 %vm1130_vm1, %v2684_v63 }
 0xf34   : > { %7786 = vmatprep.mubr.msk.bf16.mxu0 %vm8857_vm0, %v8856_v25  ;;  %7785 = vmatpush3.bf16.msra.mxu0 %v8122_v52  ;;  %v3259_v52 = vld [vmem:[%s9364_s16 + $0x80] sm:$0xff] }
 0xffe   : > { %v7763_v0 = vpop.f32.mrb[22].mxu0 }
 0xfff   : > { %v2619_v3 = vpop.f32.mrb[23].mxu0 }
0x1000   : > { %v2628_v7 = vpack.c.bf16 %v7763_v0, %v2619_v3 }
0x1002   : > { %7767 = vmatmul.mubr.msk.bf16.vlgmr.msra.gmra.mrb[24].mxu1 %vm1130_vm1, %v2628_v7 }
0x1006   : > { %v7776_v58 = vpop.f32.mrb[28].mxu0 }
0x1007   : > { %v2773_v8 = vmul.f32 0.25, %v7776_v58  ;;  %v2763_v62 = vpop.f32.mrb[29].mxu0 }
0x1008   : > { %v2772_v9 = vmul.f32 0.25, %v2763_v62 }
0x1009   : > { %v2775_v10 = vadd.f32 %v2773_v8, %v9491_v54 }
0x100a   : > { %v2774_v11 = vadd.f32 %v2772_v9, %v9486_v51 }
0x100b   : > { %v2779_v1 = vsel %vm1226_vm4, %v2775_v10, -inf }
0x100c   : > { %2780 = vmax.xlane.f32.xlu0 %v2779_v1  ;;  %v2776_v12 = vsel %vm1222_vm3, %v2774_v11, -inf }
0x100d   : > { %2777 = vmax.xlane.f32.xlu1 %v2776_v12 }
0x101e   : > { %8070 = vrot.lane.b32.xlu1 %v9537_v48, %s8864_s27 }
0x1022   : > { %2939 = vrot.lane.b32.xlu1 %v9450_v35, %s8865_s24 }
0x1026   : > { %2941 = vrot.lane.b32.xlu1 %v9475_v47, %s8865_s24 }
0x1099   : > { %v2781_v2 = vpop.xlane.xlu0 %2780 }
0x109a   : > { %v2783_v6 = vsub.f32 %v2775_v10, %v2781_v2  ;;  %v2778_v13 = vpop.xlane.xlu1 %2777 }
0x109b   : > { %v2782_v14 = vsub.f32 %v2774_v11, %v2778_v13 }
0x109c   : > { %v2786_v15 = vmul.f32 1.442695, %v2783_v6 }
0x109d   : > { %v2784_v16 = vmul.f32 1.442695, %v2782_v14 }
0x109e   : > { %8300 = vpow2.f32 %v2786_v15  ;;  %v8071_v17 = vpop.permute.xlu1 %8070 }
0x109f   : > { %v8073_v18 = vunpack.i.h.bf16 %v8071_v17  ;;  %v8072_v19 = vunpack.i.l.bf16 %v8071_v17  ;;  %8302 = vpow2.f32 %v2784_v16 }
0x10a1   : > { %v7888_v20 = vpack.c.bf16 %v8073_v18, %v8072_v19 }
0x10a3   : > { %7890 = vmatprep.subr.msk.bf16.mxu1 %vm9505_vm7, %v7888_v20 }
0x10a4   : > { %7893 = vmatpush3.bf16.msk.msra.mxu1 %vm9505_vm7, %v7888_v20 }
0x10a8   : > { %v8301_v35 = vpop.eup %8300 }
0x10a9   : > { %v2791_v47 = vsel %vm1226_vm4, %v8301_v35, 0.0  ;;  %v8303_v21 = vpop.eup %8302 }
0x10aa   : > { %2792 = vadd.xlane.f32.xlu0 %v2791_v47  ;;  %v2788_v22 = vsel %vm1222_vm3, %v8303_v21, 0.0  ;;  %v8123_v47 = vld [vmem:[%s9350_s6 + $0x38] sm:$0xff]  }
0x10ae   : > { %2789 = vadd.xlane.f32.xlu0 %v2788_v22 }
0x10c4   : > { %8075 = vrot.lane.b32.xlu0 %v9464_v44, %s8865_s24 }
0x10d5   : > { %v2672_v24 = vpop.f32.mrb[24].mxu1 }
0x10d6   : > { %v9739_v26 = vadd.f32 %v2672_v24, %v9702_v37  ;;  %v7768_v28 = vpop.f32.mrb[25].mxu1 }
0x10d7   : > { %v2675_v29 = vpop.f32.mrb[26].mxu1 }
0x10d8   : > { %v9742_v31 = vadd.f32 %v2675_v29, %v9705_v40  ;;  %v7769_v32 = vpop.f32.mrb[27].mxu1  ;;  %v2940_v40 = vpop.permute.xlu1 %2939 }
0x10dc   : > { %v2942_v49 = vpop.permute.xlu1 %2941 }
0x1137   : > { %v2793_v33 = vpop.xlane.xlu0 %2792 }
0x1138   : > { %8304 = vrcp.f32 %v2793_v33 }
0x113b   : > { %v2790_v34 = vpop.xlane.xlu0 %2789 }
0x113c   : > { %8306 = vrcp.f32 %v2790_v34  ;;  %v8452_v34 = vld [vmem:[%s11202_s29 + $0x8] sm:$0x3] }
0x113f   : > { %v8076_v36 = vpop.permute.xlu0 %8075 }
0x1140   : > { %v8078_v38 = vunpack.i.h.bf16 %v8076_v36  ;;  %v8077_v39 = vunpack.i.l.bf16 %v8076_v36 }
0x1142   : > { %v7894_v41 = vpack.c.bf16 %v8078_v38, %v8077_v39  ;;  %v8305_v44 = vpop.eup %8304  ;;  %v8453_v39 = vld [vmem:[%s11202_s29] sm:$0xff] }
0x1143   : > { %v2797_v46 = vmul.f32 %v8305_v44, %v8301_v35  ;;  %v3243_v44 = vld [vmem:[%s9364_s16] sm:$0xff] }
0x1144   : > { %7896 = vmatprep.subr.msk.bf16.mxu1 %vm9459_vm2, %v7894_v41 }
0x1146   : > { %v8307_v37 = vpop.eup %8306 }
0x1147   : > { %v2796_v43 = vmul.f32 %v8307_v37, %v8303_v21  ;;  %v3251_v37 = vld [vmem:[%s9364_s16 + $0x40] sm:$0xff] }
0x1149   : > { %7781 = vmatprep.mubr.msk.f32.mxu1 %vm1222_vm3, %v2796_v43  ;;  %v3244_v43 = vld [vmem:[%s9364_s16 + $0x8] sm:$0xff] }
0x114a   : > { %7782 = vmatmul.mubr.msk.f32.vlgmr.msra.gmra.mrb[28].mxu1 %vm1222_vm3, %v2797_v46  ;;  %v7100_v46 = vcombine.low %v3243_v44, %v3251_v37 }
0x114b   : > { %7899 = vmatpush3.bf16.xpose.msk.msra.mxu1 %vm9459_vm2, %v7894_v41  ;;  %7794 = vmatprep.mubr.msk.f32.mxu1 %vm1130_vm1, %v2940_v40  ;;  %v7101_v40 = vcombine.high %v3243_v44, %v3251_v37  ;;  %v3340_v44 = vld [vmem:[%s9364_s16 + $0x308] sm:$0xff] }
0x114c   : > { %7804 = vmatprep.subr.bf16.mxu1 %v8856_v25 }
0x1152   : > { %7795 = vmatmul.mubr.msk.f32.vlgmr.msra.gmra.mrb[30].mxu1 %vm1130_vm1, %v2942_v49  ;;  %v3252_v49 = vld [vmem:[%s9364_s16 + $0x48] sm:$0xff] }
0x1153   : > { %7806 = vmatprep.mubr.msk.bf16.mxu1 %vm8857_vm0, %v8856_v25  ;;  %7805 = vmatpush3.bf16.msra.mxu1 %v8123_v47 }
0x121d   : > { %v7783_v53 = vpop.f32.mrb[28].mxu1 }
0x121e   : > { %v2877_v56 = vpop.f32.mrb[29].mxu1 }
0x121f   : > { %v2886_v45 = vpack.c.bf16 %v7783_v53, %v2877_v56  ;;  %v3267_v53 = vld [vmem:[%s9364_s16 + $0xc0] sm:$0xff]  ;;  %v7102_v56 = vcombine.low %v3244_v43, %v3252_v49 }
0x1221   : > { %7787 = vmatmul.mubr.msk.bf16.vlgmr.msra.gmra.mrb[32].mxu0 %vm1130_vm1, %v2886_v45  ;;  %v7103_v45 = vcombine.high %v3244_v43, %v3252_v49  ;;  %v3348_v43 = vld [vmem:[%s9364_s16 + $0x348] sm:$0xff] }
0x1222   : > { %v7199_v49 = vcombine.high %v3340_v44, %v3348_v43 }
0x1223   : > { %4138 = vmatprep.subr.bf16.mxu1 %v7103_v45 }
0x1225   : > { %v7796_v57 = vpop.f32.mrb[30].mxu1 }
0x1226   : > { %v3031_v42 = vmul.f32 0.25, %v7796_v57  ;;  %v3021_v60 = vpop.f32.mrb[31].mxu1  ;;  %v7117_v57 = vcombine.high %v3259_v52, %v3267_v53 }
0x1227   : > { %v3030_v61 = vmul.f32 0.25, %v3021_v60  ;;  %v3268_v60 = vld [vmem:[%s9364_s16 + $0xc8] sm:$0xff] }
0x1228   : > { %v3033_v50 = vadd.f32 %v3031_v42, %v9491_v54  ;;  %v3260_v42 = vld [vmem:[%s9364_s16 + $0x88] sm:$0xff] }
0x1229   : > { %v3032_v63 = vadd.f32 %v3030_v61, %v9486_v51  ;;  %v7119_v61 = vcombine.high %v3260_v42, %v3268_v60 }
0x122a   : > { %v3037_v55 = vsel %vm1226_vm4, %v3033_v50, -inf }
0x122b   : > { %3038 = vmax.xlane.f32.xlu0 %v3037_v55  ;;  %v3034_v25 = vsel %vm1222_vm3, %v3032_v63, -inf }
0x122c   : > { %3035 = vmax.xlane.f32.xlu1 %v3034_v25 }
0x123d   : > { %8080 = vrot.lane.b32.xlu1 %v9537_v48, %s8865_s24 }
0x12b8   : > { %v3039_v0 = vpop.xlane.xlu0 %3038 }
0x12b9   : > { %v3041_v3 = vsub.f32 %v3033_v50, %v3039_v0  ;;  %v3036_v7 = vpop.xlane.xlu1 %3035  ;;  %v7116_v50 = vcombine.low %v3259_v52, %v3267_v53  ;;  %v3355_v52 = vld [vmem:[%s9364_s16 + $0x380] sm:$0xff] }
0x12ba   : > { %v3040_v58 = vsub.f32 %v3032_v63, %v3036_v7  ;;  %v7118_v63 = vcombine.low %v3260_v42, %v3268_v60  ;;  %v3363_v53 = vld [vmem:[%s9364_s16 + $0x3c0] sm:$0xff] }
0x12bb   : > { %v3044_v8 = vmul.f32 1.442695, %v3041_v3  ;;  %v7213_v45 = vcombine.high %v3355_v52, %v3363_v53  ;;  %v7212_v42 = vcombine.low %v3355_v52, %v3363_v53 }
0x12bc   : > { %v3042_v62 = vmul.f32 1.442695, %v3040_v58 }
0x12bd   : > { %v8081_v9 = vpop.permute.xlu1 %8080 }
0x12be   : > { %8308 = vpow2.f32 %v3042_v62  ;;  %v8083_v54 = vunpack.i.h.bf16 %v8081_v9  ;;  %v8082_v10 = vunpack.i.l.bf16 %v8081_v9 }
0x12bf   : > { %8310 = vpow2.f32 %v3044_v8 }
0x12c0   : > { %v7900_v51 = vpack.c.bf16 %v8083_v54, %v8082_v10  ;;  %v3275_v54 = vld [vmem:[%s9364_s16 + $0x100] sm:$0xff] }
0x12c1   : > { %v3283_v10 = vld [vmem:[%s9364_s16 + $0x140] sm:$0xff] }
0x12c2   : > { %7902 = vmatprep.subr.msk.bf16.mxu0 %vm9505_vm7, %v7900_v51 }
0x12c3   : > { %7905 = vmatpush3.bf16.msk.msra.mxu0 %vm9505_vm7, %v7900_v51  ;;  %v3276_v51 = vld [vmem:[%s9364_s16 + $0x108] sm:$0xff] }
0x12c4   : > { %4095 = vmatprep.subr.bf16.mxu0 %v7101_v40  ;;  %v7198_v40 = vcombine.low %v3340_v44, %v3348_v43  ;;  %v3309_v43 = vld [vmem:[%s9364_s16 + $0x210] sm:$0xff] }
0x12c8   : > { %v8309_v11 = vpop.eup %8308 }
0x12c9   : > { %v3046_v48 = vsel %vm1222_vm3, %v8309_v11, 0.0  ;;  %v8311_v1 = vpop.eup %8310 }
0x12ca   : > { %3047 = vadd.xlane.f32.xlu0 %v3046_v48  ;;  %v3049_v12 = vsel %vm1226_vm4, %v8311_v1, 0.0  ;;  %v3284_v48 = vld [vmem:[%s9364_s16 + $0x148] sm:$0xff] }
0x12ce   : > { %3050 = vadd.xlane.f32.xlu0 %v3049_v12  ;;  %v7134_v12 = vcombine.low %v3276_v51, %v3284_v48 }
0x12f4   : > { %v2930_v2 = vpop.f32.mrb[32].mxu0 }
0x12f5   : > { %v2937_v6 = vadd.f32 %v2930_v2, %v9739_v26  ;;  %v7788_v13 = vpop.f32.mrb[33].mxu0  ;;  %v7135_v2 = vcombine.high %v3276_v51, %v3284_v48 }
0x12f6   : > { %v2933_v14 = vpop.f32.mrb[34].mxu0  ;;  %v3299_v13 = vld [vmem:[%s9364_s16 + $0x1c0] sm:$0xff] }
0x12f7   : > { %v2938_v15 = vadd.f32 %v2933_v14, %v9742_v31  ;;  %v7789_v16 = vpop.f32.mrb[35].mxu0  ;;  %v3292_v14 = vld [vmem:[%s9364_s16 + $0x188] sm:$0xff] }
0x12f8   : > { %v3300_v16 = vld [vmem:[%s9364_s16 + $0x1c8] sm:$0xff] }
0x1357   : > { %v3048_v17 = vpop.xlane.xlu0 %3047 }
0x1358   : > { %8312 = vrcp.f32 %v3048_v17 }
0x135b   : > { %v3051_v5 = vpop.xlane.xlu0 %3050 }
0x135c   : > { %8314 = vrcp.f32 %v3051_v5  ;;  %v7150_v5 = vcombine.low %v3292_v14, %v3300_v16 }
0x1362   : > { %v8313_v18 = vpop.eup %8312 }
0x1363   : > { %v3054_v19 = vmul.f32 %v8313_v18, %v8309_v11  ;;  %v7133_v11 = vcombine.high %v3275_v54, %v3283_v10  ;;  %v7151_v18 = vcombine.high %v3292_v14, %v3300_v16 }
0x1365   : > { %7801 = vmatprep.mubr.msk.f32.mxu0 %vm1222_vm3, %v3054_v19  ;;  %v3307_v19 = vld [vmem:[%s9364_s16 + $0x200] sm:$0xff] }
0x1366   : > { %v8315_v20 = vpop.eup %8314 }
0x1367   : > { %v3055_v35 = vmul.f32 %v8315_v20, %v8311_v1  ;;  %v7132_v1 = vcombine.low %v3275_v54, %v3283_v10  ;;  %v3315_v20 = vld [vmem:[%s9364_s16 + $0x240] sm:$0xff] }
0x1368   : > { %v7165_v47 = vcombine.high %v3307_v19, %v3315_v20 }
0x1369   : > { %7802 = vmatmul.mubr.msk.f32.vlgmr.msra.gmra.mrb[30].mxu0 %vm1222_vm3, %v3055_v35  ;;  %v3308_v35 = vld [vmem:[%s9364_s16 + $0x208] sm:$0xff] }
0x136a   : > { %4127 = vmatprep.mubr.bf16.mxu0 %v8855_v4  ;;  %4096 = vmatpush1.bf16.msra.mxu0 %v7100_v46 }
0x136b   : > { %4097 = vmatprep.subr.bf16.mxu0 %v7117_v57  ;;  %v3364_v57 = vld [vmem:[%s9364_s16 + $0x3c8] sm:$0xff] }
0x136e   : > { %4098 = vmatpush1.bf16.msra.mxu0 %v7116_v50  ;;  %v3245_v50 = vld [vmem:[%s9364_s16 + $0x10] sm:$0xff] }
0x136f   : > { %4099 = vmatprep.subr.bf16.mxu0 %v7133_v11 }
0x1372   : > { %4100 = vmatpush1.bf16.msra.mxu0 %v7132_v1 }
0x143c   : > { %v7803_v21 = vpop.f32.mrb[30].mxu0 }
0x143d   : > { %v3135_v22 = vpop.f32.mrb[31].mxu0 }
0x143e   : > { %v3144_v24 = vpack.c.bf16 %v7803_v21, %v3135_v22  ;;  %v3316_v21 = vld [vmem:[%s9364_s16 + $0x248] sm:$0xff]  ;;  %v7164_v22 = vcombine.low %v3307_v19, %v3315_v20  ;;  %v3270_v19 = vld [vmem:[%s9364_s16 + $0xd8] sm:$0xff] }
0x1440   : > { %7807 = vmatmul.mubr.msk.bf16.vlgmr.msra.gmra.mrb[32].mxu1 %vm1130_vm1, %v3144_v24  ;;  %v7166_v24 = vcombine.low %v3308_v35, %v3316_v21 }
0x1441   : > { %4170 = vmatprep.mubr.bf16.mxu1 %v8855_v4  ;;  %4139 = vmatpush1.bf16.msra.mxu1 %v7102_v56  ;;  %v3356_v56 = vld [vmem:[%s9364_s16 + $0x388] sm:$0xff] }
0x1442   : > { %4140 = vmatprep.subr.bf16.mxu1 %v7119_v61  ;;  %v7214_v60 = vcombine.low %v3356_v56, %v3364_v57  ;;  %v7215_v61 = vcombine.high %v3356_v56, %v3364_v57  ;;  %v3325_v57 = vld [vmem:[%s9364_s16 + $0x290] sm:$0xff] }
0x1445   : > { %4141 = vmatpush1.bf16.msra.mxu1 %v7118_v63  ;;  %v3253_v63 = vld [vmem:[%s9364_s16 + $0x50] sm:$0xff] }
0x1446   : > { %4142 = vmatprep.subr.bf16.mxu1 %v7135_v2  ;;  %v7098_v2 = vld [vmem:[%s11209_s4] ss:$0 sm:$0xff] }
0x1449   : > { %4143 = vmatpush1.bf16.msra.mxu1 %v7134_v12 }
0x144a   : > { %4144 = vmatprep.subr.bf16.mxu1 %v7151_v18  ;;  %v3262_v18 = vld [vmem:[%s9364_s16 + $0x98] sm:$0xff] }
0x144d   : > { %4145 = vmatpush1.bf16.msra.mxu1 %v7150_v5  ;;  %v3269_v5 = vld [vmem:[%s9364_s16 + $0xd0] sm:$0xff] }
0x1513   : > { %v3188_v26 = vpop.f32.mrb[32].mxu1 }
0x1514   : > { %v3195_v28 = vadd.f32 %v3188_v26, %v2937_v6  ;;  %v7808_v29 = vpop.f32.mrb[33].mxu1  ;;  %v3291_v6 = vld [vmem:[%s9364_s16 + $0x180] sm:$0xff]  ;;  %v7167_v26 = vcombine.high %v3308_v35, %v3316_v21  ;;  %v7123_v21 = vcombine.high %v3262_v18, %v3270_v19 }
0x1515   : > { %v3191_v31 = vpop.f32.mrb[34].mxu1  ;;  %v7148_v17 = vcombine.low %v3291_v6, %v3299_v13  ;;  %v3331_v29 = vld [vmem:[%s9364_s16 + $0x2c0] sm:$0xff] }
0x1516   : > { %v3196_v32 = vadd.f32 %v3191_v31, %v2938_v15  ;;  %v7809_v33 = vpop.f32.mrb[35].mxu1  ;;  %v3197_v41 = vadd.f32 %v8453_v39, %v3195_v28  ;;  %v7149_v15 = vcombine.high %v3291_v6, %v3299_v13  ;;  %4146 = vmatprep.subr.bf16.mxu1 %v7167_v26  ;;  %v3323_v28 = vld [vmem:[%s9364_s16 + $0x280] sm:$0xff]  ;;  %v3324_v31 = vld [vmem:[%s9364_s16 + $0x288] sm:$0xff]  ;;  %v3286_v26 = vld [vmem:[%s9364_s16 + $0x158] sm:$0xff] }
0x1517   : > { %4147 = vmatpush1.bf16.msra.mxu1 %v7166_v24  ;;  %v3332_v33 = vld [vmem:[%s9364_s16 + $0x2c8] sm:$0xff]  ;;  %v3339_v39 = vld [vmem:[%s9364_s16 + $0x300] sm:$0xff]  ;;  %v3278_v24 = vld [vmem:[%s9364_s16 + $0x118] sm:$0xff] }
0x1518   : > { %v3198_v36 = vadd.f32 %v8452_v34, %v3196_v32  ;;  %4101 = vmatprep.subr.bf16.mxu0 %v7149_v15  ;;  %v7181_v32 = vcombine.high %v3323_v28, %v3331_v29  ;;  %v7180_v34 = vcombine.low %v3323_v28, %v3331_v29  ;;  %v7099_v15 = vld [vmem:[%s11210_s19] ss:$0 sm:$0xff]  ;;  %v7122_v29 = vcombine.low %v3262_v18, %v3270_v19 }
0x1519   : > { %4102 = vmatpush1.bf16.msra.mxu0 %v7148_v17  ;;  %v3261_v17 = vld [vmem:[%s9364_s16 + $0x90] sm:$0xff] }
0x151a   : > { %v3203_v38 = vsel %vm1252_vm5, %v3198_v36, 0.0  ;;  %4103 = vmatprep.subr.bf16.mxu0 %v7165_v47  ;;  %v7121_v47 = vcombine.high %v3261_v17, %v3269_v5  ;;  %v7120_v28 = vcombine.low %v3261_v17, %v3269_v5  ;;  %v3248_v17 = vld [vmem:[%s9364_s16 + $0x28] sm:$0xff] }
0x151b   : > { %3204 = vadd.xlane.f32.xlu0 %v3203_v38  ;;  %v7183_v38 = vcombine.high %v3324_v31, %v3332_v33  ;;  %v3256_v5 = vld [vmem:[%s9364_s16 + $0x68] sm:$0xff] }
0x151d   : > { %4104 = vmatpush1.bf16.msra.mxu0 %v7164_v22  ;;  %4148 = vmatprep.subr.bf16.mxu1 %v7183_v38  ;;  %v3285_v22 = vld [vmem:[%s9364_s16 + $0x150] sm:$0xff]  ;;  %v3302_v38 = vld [vmem:[%s9364_s16 + $0x1d8] sm:$0xff] }
0x151e   : > { %4105 = vmatprep.subr.bf16.mxu0 %v7181_v32  ;;  %v7139_v32 = vcombine.high %v3278_v24, %v3286_v26 }
0x151f   : > { %3201 = vadd.xlane.f32.xlu0 %v3197_v41 }
0x1521   : > { %4106 = vmatpush1.bf16.msra.mxu0 %v7180_v34  ;;  %v3301_v34 = vld [vmem:[%s9364_s16 + $0x1d0] sm:$0xff] }
0x15a8   : > { %v3205_v55 = vpop.xlane.xlu0 %3204 }
0x15a9   : > { %v3208_v25 = vmul.f32 0.0078125, %v3205_v55  ;;  %v3246_v55 = vld [vmem:[%s9364_s16 + $0x18] sm:$0xff] }
0x15ab   : > { %v9792_v7 = vsub.f32 %v3198_v36, %v3208_v25  ;;  %v7182_v36 = vcombine.low %v3324_v31, %v3332_v33  ;;  %v7105_v25 = vcombine.high %v3245_v50, %v3253_v63  ;;  %v3293_v33 = vld [vmem:[%s9364_s16 + $0x190] sm:$0xff] }
0x15ac   : > { %v3202_v0 = vpop.xlane.xlu0 %3201  ;;  %v7153_v44 = vcombine.high %v3293_v33, %v3301_v34  ;;  %v7152_v52 = vcombine.low %v3293_v33, %v3301_v34  ;;  %v3279_v33 = vld [vmem:[%s9364_s16 + $0x120] sm:$0xff] }
0x15ad   : > { %v3207_v3 = vmul.f32 0.0078125, %v3202_v0  ;;  %v3212_v62 = vmul.f32 %v9792_v7, %v9792_v7  ;;  %4149 = vmatpush1.bf16.msra.mxu1 %v7182_v36  ;;  %v3254_v0 = vld [vmem:[%s9364_s16 + $0x58] sm:$0xff]  ;;  %v3287_v34 = vld [vmem:[%s9364_s16 + $0x160] sm:$0xff] }
0x15ae   : > { %4150 = vmatprep.subr.bf16.mxu1 %v7199_v49  ;;  %v3294_v36 = vld [vmem:[%s9364_s16 + $0x198] sm:$0xff] }
0x15af   : > { %v9794_v58 = vsub.f32 %v3197_v41, %v3207_v3  ;;  %v3215_v9 = vsel %vm1252_vm5, %v3212_v62, 0.0  ;;  %v3347_v41 = vld [vmem:[%s9364_s16 + $0x340] sm:$0xff]  ;;  %v7104_v3 = vcombine.low %v3245_v50, %v3253_v63  ;;  %v7107_v62 = vcombine.high %v3246_v55, %v3254_v0  ;;  %v3318_v49 = vld [vmem:[%s9364_s16 + $0x258] sm:$0xff] }
0x15b0   : > { %v7197_v37 = vcombine.high %v3339_v39, %v3347_v41  ;;  %v7196_v46 = vcombine.low %v3339_v39, %v3347_v41  ;;  %v7138_v41 = vcombine.low %v3278_v24, %v3286_v26  ;;  %v7154_v53 = vcombine.low %v3294_v36, %v3302_v38  ;;  %v3264_v24 = vld [vmem:[%s9364_s16 + $0xa8] sm:$0xff] }
0x15b1   : > { %v3211_v8 = vmul.f32 %v9794_v58, %v9794_v58  ;;  %4151 = vmatpush1.bf16.msra.mxu1 %v7198_v40  ;;  %v3310_v40 = vld [vmem:[%s9364_s16 + $0x218] sm:$0xff]  ;;  %v3272_v26 = vld [vmem:[%s9364_s16 + $0xe8] sm:$0xff] }
0x15b2   : > { %4107 = vmatprep.subr.bf16.mxu0 %v7197_v37  ;;  %4152 = vmatprep.subr.bf16.mxu1 %v7215_v61  ;;  %v7155_v37 = vcombine.high %v3294_v36, %v3302_v38  ;;  %v3334_v61 = vld [vmem:[%s9364_s16 + $0x2d8] sm:$0xff]  ;;  %v7170_v63 = vcombine.low %v3310_v40, %v3318_v49  ;;  %v3280_v36 = vld [vmem:[%s9364_s16 + $0x128] sm:$0xff] }
0x15b3   : > { %3213 = vadd.xlane.f32.xlu0 %v3211_v8  ;;  %4108 = vmatpush1.bf16.msra.mxu0 %v7196_v46  ;;  %v7106_v8 = vcombine.low %v3246_v55, %v3254_v0  ;;  %v3317_v46 = vld [vmem:[%s9364_s16 + $0x250] sm:$0xff]  ;;  %v3288_v38 = vld [vmem:[%s9364_s16 + $0x168] sm:$0xff] }
0x15b4   : > { %4109 = vmatprep.subr.bf16.mxu0 %v7213_v45  ;;  %v7169_v56 = vcombine.high %v3309_v43, %v3317_v46  ;;  %v7171_v45 = vcombine.high %v3310_v40, %v3318_v49  ;;  %v7168_v50 = vcombine.low %v3309_v43, %v3317_v46  ;;  %v3341_v0 = vld [vmem:[%s9364_s16 + $0x310] sm:$0xff]  ;;  %v3295_v43 = vld [vmem:[%s9364_s16 + $0x1a0] sm:$0xff]  ;;  %v3296_v40 = vld [vmem:[%s9364_s16 + $0x1a8] sm:$0xff] }
0x15b5   : > { %4153 = vmatpush1.bf16.msra.mxu1 %v7214_v60  ;;  %v3326_v60 = vld [vmem:[%s9364_s16 + $0x298] sm:$0xff]  ;;  %v3303_v46 = vld [vmem:[%s9364_s16 + $0x1e0] sm:$0xff]  ;;  %v3304_v49 = vld [vmem:[%s9364_s16 + $0x1e8] sm:$0xff] }
0x15b6   : > { %4224 = vmatprep.subr.bf16.mxu1 %v7107_v62  ;;  %v3350_v62 = vld [vmem:[%s9364_s16 + $0x358] sm:$0xff] }
0x15b7   : > { %3216 = vadd.xlane.f32.xlu0 %v3215_v9  ;;  %4110 = vmatpush1.bf16.msra.mxu0 %v7212_v42  ;;  %v3333_v42 = vld [vmem:[%s9364_s16 + $0x2d0] sm:$0xff] }
0x15b8   : > { %4181 = vmatprep.subr.bf16.mxu0 %v7105_v25  ;;  %v7185_v55 = vcombine.high %v3325_v57, %v3333_v42  ;;  %v7187_v25 = vcombine.high %v3326_v60, %v3334_v61 }
0x1640   : > { %v3214_v9 = vpop.xlane.xlu0 %3213 }
0x1641   : > { %v3218_v54 = vmul.f32 0.0078125, %v3214_v9  ;;  %v7184_v9 = vcombine.low %v3325_v57, %v3333_v42  ;;  %v3311_v57 = vld [vmem:[%s9364_s16 + $0x220] sm:$0xff] }
0x1642   : > { %v3319_v42 = vld [vmem:[%s9364_s16 + $0x260] sm:$0xff] }
0x1643   : > { %v3220_v10 = vadd.f32 1e-05, %v3218_v54  ;;  %v7186_v54 = vcombine.low %v3326_v60, %v3334_v61  ;;  %v3312_v60 = vld [vmem:[%s9364_s16 + $0x228] sm:$0xff] }
0x1644   : > { %v3217_v51 = vpop.xlane.xlu0 %3216  ;;  %v3320_v61 = vld [vmem:[%s9364_s16 + $0x268] sm:$0xff] }
0x1645   : > { %8316 = vrsqrt.f32 %v3220_v10  ;;  %v3219_v11 = vmul.f32 0.0078125, %v3217_v51 }
0x1647   : > { %v3221_v48 = vadd.f32 1e-05, %v3219_v11  ;;  %v3357_v11 = vld [vmem:[%s9364_s16 + $0x390] sm:$0xff] }
0x1649   : > { %8318 = vrsqrt.f32 %v3221_v48  ;;  %v3365_v48 = vld [vmem:[%s9364_s16 + $0x3d0] sm:$0xff] }
0x164a   : > { %v7216_v18 = vcombine.low %v3357_v11, %v3365_v48 }
0x164f   : > { %v8317_v1 = vpop.eup %8316 }
0x1650   : > { %v3224_v12 = vmul.f32 %v8317_v1, %v9794_v58  ;;  %v3358_v1 = vld [vmem:[%s9364_s16 + $0x398] sm:$0xff] }
0x1652   : > { %v3232_v13 = vmul.f32 %v7098_v2, %v3224_v12  ;;  %v3366_v12 = vld [vmem:[%s9364_s16 + $0x3d8] sm:$0xff] }
0x1653   : > { %v8319_v6 = vpop.eup %8318  ;;  %v7218_v19 = vcombine.low %v3358_v1, %v3366_v12 }
0x1654   : > { %v3225_v14 = vmul.f32 %v8319_v6, %v9792_v7  ;;  %v9839_v20 = vadd.f32 %v7099_v15, %v3232_v13  ;;  %v3277_v7 = vld [vmem:[%s9364_s16 + $0x110] sm:$0xff]  ;;  %v7217_v13 = vcombine.high %v3357_v11, %v3365_v48  ;;  %v3343_v11 = vld [vmem:[%s9364_s16 + $0x320] sm:$0xff] }
0x1655   : > { %v7137_v31 = vcombine.high %v3277_v7, %v3285_v22  ;;  %v7136_v39 = vcombine.low %v3277_v7, %v3285_v22  ;;  %v3263_v7 = vld [vmem:[%s9364_s16 + $0xa0] sm:$0xff] }
0x1656   : > { %v3233_v16 = vmul.f32 %v7098_v2, %v3225_v14  ;;  %11211 = vst [vmem:[#allocation30_spill] sm:$0xff] %v9839_v20  ;;  %v7219_v14 = vcombine.high %v3358_v1, %v3366_v12  ;;  %v3271_v22 = vld [vmem:[%s9364_s16 + $0xe0] sm:$0xff]  ;;  %v3344_v1 = vld [vmem:[%s9364_s16 + $0x328] sm:$0xff] }
0x1657   : > { %v3351_v48 = vld [vmem:[%s9364_s16 + $0x360] sm:$0xff]  ;;  %v3352_v12 = vld [vmem:[%s9364_s16 + $0x368] sm:$0xff] }
0x1658   : > { %v9841_v58 = vadd.f32 %v7099_v15, %v3233_v16  ;;  %v3247_v15 = vld [vmem:[%s9364_s16 + $0x20] sm:$0xff] }
0x1659   : > { %v3255_v16 = vld [vmem:[%s9364_s16 + $0x60] sm:$0xff] }
0x165a   : > { %11212 = vst [vmem:[#allocation31_spill] sm:$0xff] %v9841_v58  ;;  %v9845_v35 = vpack.c.bf16 %v9841_v58, %v9839_v20 }
0x165c   : > { %4128 = vmatmul.mubr.bf16.vlgmr.msra.gmra.mrb[36].mxu0 %v9845_v35  ;;  %4171 = vmatmul.mubr.bf16.vlgmr.msra.gmra.mrb[36].mxu1 %v9845_v35 }
0x165d   : > { %4182 = vmatpush1.bf16.msra.mxu0 %v7104_v3  ;;  %4225 = vmatpush1.bf16.msra.mxu1 %v7106_v8  ;;  %v3349_v3 = vld [vmem:[%s9364_s16 + $0x350] sm:$0xff]  ;;  %v3342_v8 = vld [vmem:[%s9364_s16 + $0x318] sm:$0xff] }
0x165e   : > { %4183 = vmatprep.subr.bf16.mxu0 %v7121_v47  ;;  %4226 = vmatprep.subr.bf16.mxu1 %v7123_v21  ;;  %v7201_v10 = vcombine.high %v3341_v0, %v3349_v3  ;;  %v7203_v51 = vcombine.high %v3342_v8, %v3350_v62  ;;  %v7200_v2 = vcombine.low %v3341_v0, %v3349_v3  ;;  %v3327_v0 = vld [vmem:[%s9364_s16 + $0x2a0] sm:$0xff] }
0x165f   : > { %4213 = vmatprep.mubr.bf16.mxu0 %v8855_v4  ;;  %4256 = vmatprep.mubr.bf16.mxu1 %v8855_v4  ;;  %v7202_v6 = vcombine.low %v3342_v8, %v3350_v62  ;;  %v7109_v47 = vcombine.high %v3247_v15, %v3255_v16  ;;  %v7111_v21 = vcombine.high %v3248_v17, %v3256_v5  ;;  %v3335_v3 = vld [vmem:[%s9364_s16 + $0x2e0] sm:$0xff]  ;;  %v3328_v8 = vld [vmem:[%s9364_s16 + $0x2a8] sm:$0xff] }
0x1660   : > { %v3336_v62 = vld [vmem:[%s9364_s16 + $0x2e8] sm:$0xff] }
0x1661   : > { %4184 = vmatpush1.bf16.msra.mxu0 %v7120_v28  ;;  %4227 = vmatpush1.bf16.msra.mxu1 %v7122_v29  ;;  %v7108_v28 = vcombine.low %v3247_v15, %v3255_v16  ;;  %v7110_v29 = vcombine.low %v3248_v17, %v3256_v5  ;;  %v3359_v15 = vld [vmem:[%s9364_s16 + $0x3a0] sm:$0xff]  ;;  %v3360_v17 = vld [vmem:[%s9364_s16 + $0x3a8] sm:$0xff] }
0x1662   : > { %4185 = vmatprep.subr.bf16.mxu0 %v7137_v31  ;;  %4228 = vmatprep.subr.bf16.mxu1 %v7139_v32  ;;  %v7125_v31 = vcombine.high %v3263_v7, %v3271_v22  ;;  %v7127_v32 = vcombine.high %v3264_v24, %v3272_v26  ;;  %v3367_v16 = vld [vmem:[%s9364_s16 + $0x3e0] sm:$0xff]  ;;  %v3368_v5 = vld [vmem:[%s9364_s16 + $0x3e8] sm:$0xff] }
0x1665   : > { %4186 = vmatpush1.bf16.msra.mxu0 %v7136_v39  ;;  %4229 = vmatpush1.bf16.msra.mxu1 %v7138_v41  ;;  %v7124_v39 = vcombine.low %v3263_v7, %v3271_v22  ;;  %v7126_v41 = vcombine.low %v3264_v24, %v3272_v26  ;;  %v3249_v7 = vld [vmem:[%s9364_s16 + $0x30] sm:$0xff]  ;;  %v3250_v24 = vld [vmem:[%s9364_s16 + $0x38] sm:$0xff] }
0x1666   : > { %4187 = vmatprep.subr.bf16.mxu0 %v7153_v44  ;;  %4230 = vmatprep.subr.bf16.mxu1 %v7155_v37  ;;  %v7141_v44 = vcombine.high %v3279_v33, %v3287_v34  ;;  %v7143_v37 = vcombine.high %v3280_v36, %v3288_v38  ;;  %v3257_v22 = vld [vmem:[%s9364_s16 + $0x70] sm:$0xff]  ;;  %v3258_v26 = vld [vmem:[%s9364_s16 + $0x78] sm:$0xff] }
0x1669   : > { %4188 = vmatpush1.bf16.msra.mxu0 %v7152_v52  ;;  %4231 = vmatpush1.bf16.msra.mxu1 %v7154_v53  ;;  %v7140_v52 = vcombine.low %v3279_v33, %v3287_v34  ;;  %v7142_v53 = vcombine.low %v3280_v36, %v3288_v38  ;;  %v3265_v33 = vld [vmem:[%s9364_s16 + $0xb0] sm:$0xff]  ;;  %v3266_v36 = vld [vmem:[%s9364_s16 + $0xb8] sm:$0xff] }
0x166a   : > { %4189 = vmatprep.subr.bf16.mxu0 %v7169_v56  ;;  %4232 = vmatprep.subr.bf16.mxu1 %v7171_v45  ;;  %v7157_v56 = vcombine.high %v3295_v43, %v3303_v46  ;;  %v7159_v45 = vcombine.high %v3296_v40, %v3304_v49  ;;  %v3273_v34 = vld [vmem:[%s9364_s16 + $0xf0] sm:$0xff]  ;;  %v3274_v38 = vld [vmem:[%s9364_s16 + $0xf8] sm:$0xff] }
0x166d   : > { %4190 = vmatpush1.bf16.msra.mxu0 %v7168_v50  ;;  %4233 = vmatpush1.bf16.msra.mxu1 %v7170_v63  ;;  %v7156_v50 = vcombine.low %v3295_v43, %v3303_v46  ;;  %v7158_v63 = vcombine.low %v3296_v40, %v3304_v49  ;;  %v3281_v43 = vld [vmem:[%s9364_s16 + $0x130] sm:$0xff]  ;;  %v3282_v40 = vld [vmem:[%s9364_s16 + $0x138] sm:$0xff] }
0x166e   : > { %4191 = vmatprep.subr.bf16.mxu0 %v7185_v55  ;;  %4234 = vmatprep.subr.bf16.mxu1 %v7187_v25  ;;  %v7173_v55 = vcombine.high %v3311_v57, %v3319_v42  ;;  %v7175_v25 = vcombine.high %v3312_v60, %v3320_v61  ;;  %v3289_v46 = vld [vmem:[%s9364_s16 + $0x170] sm:$0xff]  ;;  %v3290_v49 = vld [vmem:[%s9364_s16 + $0x178] sm:$0xff] }
0x1671   : > { %4192 = vmatpush1.bf16.msra.mxu0 %v7184_v9  ;;  %4235 = vmatpush1.bf16.msra.mxu1 %v7186_v54  ;;  %v7172_v9 = vcombine.low %v3311_v57, %v3319_v42  ;;  %v7174_v54 = vcombine.low %v3312_v60, %v3320_v61  ;;  %v3297_v57 = vld [vmem:[%s9364_s16 + $0x1b0] sm:$0xff]  ;;  %v3298_v60 = vld [vmem:[%s9364_s16 + $0x1b8] sm:$0xff] }
0x1672   : > { %4193 = vmatprep.subr.bf16.mxu0 %v7201_v10  ;;  %4236 = vmatprep.subr.bf16.mxu1 %v7203_v51  ;;  %v7189_v10 = vcombine.high %v3327_v0, %v3335_v3  ;;  %v7191_v51 = vcombine.high %v3328_v8, %v3336_v62  ;;  %v3305_v42 = vld [vmem:[%s9364_s16 + $0x1f0] sm:$0xff]  ;;  %v3306_v61 = vld [vmem:[%s9364_s16 + $0x1f8] sm:$0xff] }
0x1675   : > { %4194 = vmatpush1.bf16.msra.mxu0 %v7200_v2  ;;  %4237 = vmatpush1.bf16.msra.mxu1 %v7202_v6  ;;  %v7188_v2 = vcombine.low %v3327_v0, %v3335_v3  ;;  %v7190_v6 = vcombine.low %v3328_v8, %v3336_v62  ;;  %v3313_v0 = vld [vmem:[%s9364_s16 + $0x230] sm:$0xff]  ;;  %v3314_v8 = vld [vmem:[%s9364_s16 + $0x238] sm:$0xff] }
0x1676   : > { %4195 = vmatprep.subr.bf16.mxu0 %v7217_v13  ;;  %4238 = vmatprep.subr.bf16.mxu1 %v7219_v14  ;;  %v7205_v13 = vcombine.high %v3343_v11, %v3351_v48  ;;  %v7207_v14 = vcombine.high %v3344_v1, %v3352_v12  ;;  %v3321_v3 = vld [vmem:[%s9364_s16 + $0x270] sm:$0xff]  ;;  %v3322_v62 = vld [vmem:[%s9364_s16 + $0x278] sm:$0xff] }
0x1679   : > { %4196 = vmatpush1.bf16.msra.mxu0 %v7216_v18  ;;  %4239 = vmatpush1.bf16.msra.mxu1 %v7218_v19  ;;  %v7204_v18 = vcombine.low %v3343_v11, %v3351_v48  ;;  %v7206_v19 = vcombine.low %v3344_v1, %v3352_v12  ;;  %v3337_v11 = vld [vmem:[%s9364_s16 + $0x2f0] sm:$0xff]  ;;  %v3330_v48 = vld [vmem:[%s9364_s16 + $0x2b8] sm:$0xff]  ;;  %v7176_v12 = vcombine.low %v3313_v0, %v3321_v3 }
0x167a   : > { %4267 = vmatprep.subr.bf16.mxu0 %v7109_v47  ;;  %4310 = vmatprep.subr.bf16.mxu1 %v7111_v21  ;;  %v7221_v47 = vcombine.high %v3359_v15, %v3367_v16  ;;  %v7223_v21 = vcombine.high %v3360_v17, %v3368_v5  ;;  %v3338_v1 = vld [vmem:[%s9364_s16 + $0x2f8] sm:$0xff] }
0x167c   : > { %4214 = vmatmul.mubr.bf16.vlgmr.msra.gmra.mrb[40].mxu0 %v9845_v35  ;;  %4257 = vmatmul.mubr.bf16.vlgmr.msra.gmra.mrb[40].mxu1 %v9845_v35 }
0x167d   : > { %4268 = vmatpush1.bf16.msra.mxu0 %v7108_v28  ;;  %4311 = vmatpush1.bf16.msra.mxu1 %v7110_v29  ;;  %v7220_v28 = vcombine.low %v3359_v15, %v3367_v16  ;;  %v7222_v29 = vcombine.low %v3360_v17, %v3368_v5  ;;  %v3353_v15 = vld [vmem:[%s9364_s16 + $0x370] sm:$0xff]  ;;  %v3346_v16 = vld [vmem:[%s9364_s16 + $0x338] sm:$0xff] }
0x167e   : > { %4269 = vmatprep.subr.bf16.mxu0 %v7125_v31  ;;  %4312 = vmatprep.subr.bf16.mxu1 %v7127_v32  ;;  %v7113_v31 = vcombine.high %v3249_v7, %v3257_v22  ;;  %v7115_v32 = vcombine.high %v3250_v24, %v3258_v26  ;;  %v3354_v17 = vld [vmem:[%s9364_s16 + $0x378] sm:$0xff] }
0x167f   : > { %4299 = vmatprep.mubr.bf16.mxu0 %v8855_v4  ;;  %4342 = vmatprep.mubr.bf16.mxu1 %v8855_v4 }
0x1681   : > { %4270 = vmatpush1.bf16.msra.mxu0 %v7124_v39  ;;  %4313 = vmatpush1.bf16.msra.mxu1 %v7126_v41  ;;  %v7112_v39 = vcombine.low %v3249_v7, %v3257_v22  ;;  %v7114_v41 = vcombine.low %v3250_v24, %v3258_v26  ;;  %v3369_v7 = vld [vmem:[%s9364_s16 + $0x3f0] sm:$0xff]  ;;  %v3362_v22 = vld [vmem:[%s9364_s16 + $0x3b8] sm:$0xff] }
0x1682   : > { %4271 = vmatprep.subr.bf16.mxu0 %v7141_v44  ;;  %4314 = vmatprep.subr.bf16.mxu1 %v7143_v37  ;;  %v7129_v44 = vcombine.high %v3265_v33, %v3273_v34  ;;  %v7131_v37 = vcombine.high %v3266_v36, %v3274_v38  ;;  %v3370_v24 = vld [vmem:[%s9364_s16 + $0x3f8] sm:$0xff] }
0x1685   : > { %4272 = vmatpush1.bf16.msra.mxu0 %v7140_v52  ;;  %4315 = vmatpush1.bf16.msra.mxu1 %v7142_v53  ;;  %v7128_v52 = vcombine.low %v3265_v33, %v3273_v34  ;;  %v7130_v53 = vcombine.low %v3266_v36, %v3274_v38  ;;  %v7226_v33 = vcombine.low %v3362_v22, %v3370_v24  ;;  %v8124_v34 = vld [vmem:[%s9373_s2 + $0x40] sm:$0xff]  }
0x1686   : > { %4273 = vmatprep.subr.bf16.mxu0 %v7157_v56  ;;  %4316 = vmatprep.subr.bf16.mxu1 %v7159_v45  ;;  %v7145_v56 = vcombine.high %v3281_v43, %v3289_v46  ;;  %v7147_v45 = vcombine.high %v3282_v40, %v3290_v49  ;;  %v8125_v36 = vld [vmem:[%s9373_s2 + $0xc0] sm:$0xff]  }
0x1687   : > { %v8126_v38 = vld [vmem:[%s9373_s2] sm:$0xff]  }
0x1689   : > { %4274 = vmatpush1.bf16.msra.mxu0 %v7156_v50  ;;  %4317 = vmatpush1.bf16.msra.mxu1 %v7158_v63  ;;  %v7144_v50 = vcombine.low %v3281_v43, %v3289_v46  ;;  %v7146_v63 = vcombine.low %v3282_v40, %v3290_v49  ;;  %v8131_v43 = vld [vmem:[%s9373_s2 + $0x88] sm:$0xff]   ;;  %v8133_v46 = vld [vmem:[%s9373_s2 + $0xd0] sm:$0xff]  }
0x168a   : > { %4275 = vmatprep.subr.bf16.mxu0 %v7173_v55  ;;  %4318 = vmatprep.subr.bf16.mxu1 %v7175_v25  ;;  %v7161_v55 = vcombine.high %v3297_v57, %v3305_v42  ;;  %v7163_v25 = vcombine.high %v3298_v60, %v3306_v61  ;;  %v8134_v40 = vld [vmem:[%s9373_s2 + $0x10] sm:$0xff]  }
0x168b   : > { %v8135_v49 = vld [vmem:[%s9373_s2 + $0x90] sm:$0xff]  }
0x168d   : > { %4276 = vmatpush1.bf16.msra.mxu0 %v7172_v9  ;;  %4319 = vmatpush1.bf16.msra.mxu1 %v7174_v54  ;;  %v7160_v9 = vcombine.low %v3297_v57, %v3305_v42  ;;  %v7177_v54 = vcombine.high %v3313_v0, %v3321_v3  ;;  %v8140_v57 = vld [vmem:[%s9373_s2 + $0x60] sm:$0xff]   ;;  %v8148_v0 = vld [vmem:[%s9373_s2 + $0x70] sm:$0xff]  }
0x168e   : > { %4277 = vmatprep.subr.bf16.mxu0 %v7189_v10  ;;  %4320 = vmatprep.subr.bf16.mxu1 %v7191_v51  ;;  %v7179_v10 = vcombine.high %v3314_v8, %v3322_v62  ;;  %v3329_v51 = vld [vmem:[%s9364_s16 + $0x2b0] sm:$0xff]  ;;  %v8141_v42 = vld [vmem:[%s9373_s2 + $0xe0] sm:$0xff]  }
0x168f   : > { %v7192_v5 = vcombine.low %v3329_v51, %v3337_v11  ;;  %v8149_v3 = vld [vmem:[%s9373_s2 + $0xf0] sm:$0xff]  }
0x1691   : > { %4278 = vmatpush1.bf16.msra.mxu0 %v7188_v2  ;;  %4321 = vmatpush1.bf16.msra.mxu1 %v7190_v6  ;;  %v7178_v2 = vcombine.low %v3314_v8, %v3322_v62  ;;  %v7193_v6 = vcombine.high %v3329_v51, %v3337_v11  ;;  %v8150_v8 = vld [vmem:[%s9373_s2 + $0x30] sm:$0xff]   ;;  %v8156_v51 = vld [vmem:[%s9373_s2 + $0x140] sm:$0xff]  }
0x1692   : > { %4279 = vmatprep.subr.bf16.mxu0 %v7205_v13  ;;  %4322 = vmatprep.subr.bf16.mxu1 %v7207_v14  ;;  %v7195_v13 = vcombine.high %v3330_v48, %v3338_v1  ;;  %v3345_v14 = vld [vmem:[%s9364_s16 + $0x330] sm:$0xff]  ;;  %v8157_v11 = vld [vmem:[%s9373_s2 + $0x1c0] sm:$0xff]  }
0x1693   : > { %v7208_v26 = vcombine.low %v3345_v14, %v3353_v15  ;;  %v8151_v62 = vld [vmem:[%s9373_s2 + $0xb0] sm:$0xff]  }
0x1695   : > { %4280 = vmatpush1.bf16.msra.mxu0 %v7204_v18  ;;  %4323 = vmatpush1.bf16.msra.mxu1 %v7206_v19  ;;  %v7194_v18 = vcombine.low %v3330_v48, %v3338_v1  ;;  %v7209_v19 = vcombine.high %v3345_v14, %v3353_v15  ;;  %v9984_v48 = vld [vmem:[%s9371_s23] sm:$0xff]  ;;  %v11151_v1 = vsub.s32 3, %v9429_v23 }
0x1696   : > { %4281 = vmatprep.subr.bf16.mxu0 %v7221_v47  ;;  %4324 = vmatprep.subr.bf16.mxu1 %v7223_v21  ;;  %v7211_v47 = vcombine.high %v3346_v16, %v3354_v17  ;;  %v3361_v21 = vld [vmem:[%s9364_s16 + $0x3b0] sm:$0xff]  ;;  %s11246_s16 = scalar_lea.vmem [#allocation15], %s9338_s1 }
0x1699   : > { %4282 = vmatpush1.bf16.msra.mxu0 %v7220_v28  ;;  %4325 = vmatpush1.bf16.msra.mxu1 %v7222_v29  ;;  %v7210_v28 = vcombine.low %v3346_v16, %v3354_v17  ;;  %v7225_v29 = vcombine.high %v3361_v21, %v3369_v7 }
0x169a   : > { %4353 = vmatprep.subr.bf16.mxu0 %v7113_v31  ;;  %4396 = vmatprep.subr.bf16.mxu1 %v7115_v32  ;;  %v7227_v31 = vcombine.high %v3362_v22, %v3370_v24  ;;  %v7224_v32 = vcombine.low %v3361_v21, %v3369_v7 }
0x169c   : > { %4300 = vmatmul.mubr.bf16.vlgmr.msra.gmra.mrb[44].mxu0 %v9845_v35  ;;  %4343 = vmatmul.mubr.bf16.vlgmr.msra.gmra.mrb[44].mxu1 %v9845_v35 }
0x169d   : > { %4354 = vmatpush1.bf16.msra.mxu0 %v7112_v39  ;;  %4397 = vmatpush1.bf16.msra.mxu1 %v7114_v41  ;;  %v8127_v39 = vld [vmem:[%s9373_s2 + $0x80] sm:$0xff]   ;;  %v8128_v41 = vld [vmem:[%s9373_s2 + $0x48] sm:$0xff]  }
0x169e   : > { %4355 = vmatprep.subr.bf16.mxu0 %v7129_v44  ;;  %4398 = vmatprep.subr.bf16.mxu1 %v7131_v37  ;;  %v8129_v44 = vld [vmem:[%s9373_s2 + $0xc8] sm:$0xff]  }
0x169f   : > { %4385 = vmatprep.mubr.bf16.mxu0 %v8855_v4  ;;  %4428 = vmatprep.mubr.bf16.mxu1 %v8855_v4  ;;  %v7162_v4 = vcombine.low %v3298_v60, %v3306_v61  ;;  %v8130_v37 = vld [vmem:[%s9373_s2 + $0x8] sm:$0xff]   ;;  %v8142_v60 = vld [vmem:[%s9373_s2 + $0x20] sm:$0xff]  }
0x16a0   : > { %v8143_v61 = vld [vmem:[%s9373_s2 + $0xa0] sm:$0xff]  }
0x16a1   : > { %4356 = vmatpush1.bf16.msra.mxu0 %v7128_v52  ;;  %4399 = vmatpush1.bf16.msra.mxu1 %v7130_v53  ;;  %v8136_v52 = vld [vmem:[%s9373_s2 + $0x58] sm:$0xff]  }
0x16a2   : > { %4357 = vmatprep.subr.bf16.mxu0 %v7145_v56  ;;  %4400 = vmatprep.subr.bf16.mxu1 %v7147_v45  ;;  %v8137_v53 = vld [vmem:[%s9373_s2 + $0xd8] sm:$0xff]  }
0x16a3   : > { %v8138_v56 = vld [vmem:[%s9373_s2 + $0x18] sm:$0xff]  }
0x16a4   : > { %v8139_v45 = vld [vmem:[%s9373_s2 + $0x98] sm:$0xff]  }
0x16a5   : > { %4358 = vmatpush1.bf16.msra.mxu0 %v7144_v50  ;;  %4401 = vmatpush1.bf16.msra.mxu1 %v7146_v63  ;;  %v8144_v50 = vld [vmem:[%s9373_s2 + $0x68] sm:$0xff]  }
0x16a6   : > { %4359 = vmatprep.subr.bf16.mxu0 %v7161_v55  ;;  %4402 = vmatprep.subr.bf16.mxu1 %v7163_v25  ;;  %v8145_v63 = vld [vmem:[%s9373_s2 + $0xe8] sm:$0xff]  }
0x16a7   : > { %v8146_v55 = vld [vmem:[%s9373_s2 + $0x28] sm:$0xff]  }
0x16a8   : > { %v8147_v25 = vld [vmem:[%s9373_s2 + $0xa8] sm:$0xff]  }
0x16a9   : > { %4360 = vmatpush1.bf16.msra.mxu0 %v7160_v9  ;;  %4403 = vmatpush1.bf16.msra.mxu1 %v7162_v4  ;;  %v8152_v9 = vld [vmem:[%s9373_s2 + $0x78] sm:$0xff]  }
0x16aa   : > { %4361 = vmatprep.subr.bf16.mxu0 %v7177_v54  ;;  %4404 = vmatprep.subr.bf16.mxu1 %v7179_v10  ;;  %v8153_v4 = vld [vmem:[%s9373_s2 + $0xf8] sm:$0xff]  }
0x16ab   : > { %v8154_v54 = vld [vmem:[%s9373_s2 + $0x38] sm:$0xff]  }
0x16ac   : > { %v8155_v10 = vld [vmem:[%s9373_s2 + $0xb8] sm:$0xff]  }
0x16ad   : > { %4362 = vmatpush1.bf16.msra.mxu0 %v7176_v12  ;;  %4405 = vmatpush1.bf16.msra.mxu1 %v7178_v2  ;;  %v3378_v12 = vrot.slane %v9984_v48, %v9438_v27  ;;  %v3386_v2 = vrot.slane %v9984_v48, %v9498_v59 }
0x16ae   : > { %4363 = vmatprep.subr.bf16.mxu0 %v7193_v6  ;;  %4406 = vmatprep.subr.bf16.mxu1 %v7195_v13  ;;  %v3382_v6 = vrot.slane %v9984_v48, %v9443_v30  ;;  %v3390_v13 = vrot.slane %v9984_v48, %v11151_v1 }
0x16b1   : > { %4364 = vmatpush1.bf16.msra.mxu0 %v7192_v5  ;;  %4407 = vmatpush1.bf16.msra.mxu1 %v7194_v18 }
0x16b2   : > { %4365 = vmatprep.subr.bf16.mxu0 %v7209_v19  ;;  %4408 = vmatprep.subr.bf16.mxu1 %v7211_v47 }
0x16b5   : > { %4366 = vmatpush1.bf16.msra.mxu0 %v7208_v26  ;;  %4409 = vmatpush1.bf16.msra.mxu1 %v7210_v28 }
0x16b6   : > { %4367 = vmatprep.subr.bf16.mxu0 %v7225_v29  ;;  %4410 = vmatprep.subr.bf16.mxu1 %v7227_v31 }
0x16b9   : > { %4368 = vmatpush1.bf16.msra.mxu0 %v7224_v32  ;;  %4411 = vmatpush1.bf16.msra.mxu1 %v7226_v33 }
0x16ba   : > { %7454 = vmatprep.subr.bf16.mxu0 %v8124_v34  ;;  %7476 = vmatprep.subr.bf16.mxu1 %v8125_v36 }
0x16bc   : > { %4386 = vmatmul.mubr.bf16.vlgmr.msra.gmra.mrb[48].mxu0 %v9845_v35  ;;  %4429 = vmatmul.mubr.bf16.vlgmr.msra.gmra.mrb[48].mxu1 %v9845_v35  ;;  %v8132_v35 = vld [vmem:[%s9373_s2 + $0x50] sm:$0xff]  }
0x16bd   : > { %7455 = vmatpush3.bf16.msra.mxu0 %v8126_v38  ;;  %7477 = vmatpush3.bf16.msra.mxu1 %v8127_v39 }
0x16be   : > { %7456 = vmatprep.subr.bf16.mxu0 %v8128_v41  ;;  %7478 = vmatprep.subr.bf16.mxu1 %v8129_v44 }
0x16c1   : > { %7457 = vmatpush3.bf16.msra.mxu0 %v8130_v37  ;;  %7479 = vmatpush3.bf16.msra.mxu1 %v8131_v43 }
0x16c2   : > { %7458 = vmatprep.subr.bf16.mxu0 %v8132_v35  ;;  %7480 = vmatprep.subr.bf16.mxu1 %v8133_v46 }
0x16c5   : > { %7459 = vmatpush3.bf16.msra.mxu0 %v8134_v40  ;;  %7481 = vmatpush3.bf16.msra.mxu1 %v8135_v49 }
0x16c6   : > { %7460 = vmatprep.subr.bf16.mxu0 %v8136_v52  ;;  %7482 = vmatprep.subr.bf16.mxu1 %v8137_v53 }
0x16c9   : > { %7461 = vmatpush3.bf16.msra.mxu0 %v8138_v56  ;;  %7483 = vmatpush3.bf16.msra.mxu1 %v8139_v45 }
0x16ca   : > { %7462 = vmatprep.subr.bf16.mxu0 %v8140_v57  ;;  %7484 = vmatprep.subr.bf16.mxu1 %v8141_v42  ;;  %v11150_v57 = vsub.s32 4, %v9429_v23  ;;  %v11149_v42 = vsub.s32 6, %v9429_v23 }
0x16cd   : > { %7463 = vmatpush3.bf16.msra.mxu0 %v8142_v60  ;;  %7485 = vmatpush3.bf16.msra.mxu1 %v8143_v61  ;;  %v11148_v61 = vsub.s32 5, %v9429_v23 }
0x16ce   : > { %7464 = vmatprep.subr.bf16.mxu0 %v8144_v50  ;;  %7486 = vmatprep.subr.bf16.mxu1 %v8145_v63  ;;  %v11147_v50 = vsub.s32 7, %v9429_v23 }
0x16d1   : > { %7465 = vmatpush3.bf16.msra.mxu0 %v8146_v55  ;;  %7487 = vmatpush3.bf16.msra.mxu1 %v8147_v25 }
0x16d2   : > { %7466 = vmatprep.subr.bf16.mxu0 %v8148_v0  ;;  %7488 = vmatprep.subr.bf16.mxu1 %v8149_v3 }
0x16d5   : > { %7467 = vmatpush3.bf16.msra.mxu0 %v8150_v8  ;;  %7489 = vmatpush3.bf16.msra.mxu1 %v8151_v62 }
0x16d6   : > { %7468 = vmatprep.subr.bf16.mxu0 %v8152_v9  ;;  %7490 = vmatprep.subr.bf16.mxu1 %v8153_v4  ;;  %v10058_v9 = vrot.slane %v9984_v48, %v11150_v57  ;;  %v10063_v4 = vrot.slane %v9984_v48, %v11149_v42 }
0x16d9   : > { %7469 = vmatpush3.bf16.msra.mxu0 %v8154_v54  ;;  %7491 = vmatpush3.bf16.msra.mxu1 %v8155_v10  ;;  %v10066_v54 = vld [vmem:[%s9371_s23 + $0x8] sm:$0xff] }
0x16da   : > { %7498 = vmatprep.subr.bf16.mxu0 %v8156_v51  ;;  %7520 = vmatprep.subr.bf16.mxu1 %v8157_v11  ;;  %v10073_v11 = vrot.slane %v9984_v48, %v11148_v61 }
0x172f   : > { %v4129_v14 = vpop.f32.mrb[36].mxu0  ;;  %v4172_v15 = vpop.f32.mrb[36].mxu1 }
0x1730   : > { %v9996_v16 = vadd.f32 %v4129_v14, %v3378_v12  ;;  %v9998_v17 = vadd.f32 %v4172_v15, %v3386_v2  ;;  %v4131_v5 = vpop.f32.mrb[37].mxu0  ;;  %v4174_v18 = vpop.f32.mrb[37].mxu1 }
0x1731   : > { %v10000_v19 = vadd.f32 %v4131_v5, %v3382_v6  ;;  %v10002_v47 = vadd.f32 %v4174_v18, %v3390_v13  ;;  %v4133_v21 = vpop.f32.mrb[38].mxu0  ;;  %v4176_v7 = vpop.f32.mrb[38].mxu1 }
0x1732   : > { %v10005_v22 = vmul.f32 0.70710677, %v9996_v16  ;;  %v10008_v24 = vmul.f32 0.70710677, %v9998_v17  ;;  %v4135_v33 = vpop.f32.mrb[39].mxu0  ;;  %v4178_v39 = vpop.f32.mrb[39].mxu1  ;;  %v10025_v35 = vadd.f32 %v4133_v21, %v3378_v12  ;;  %v10031_v49 = vadd.f32 %v4176_v7, %v3386_v2 }
0x1733   : > { %v10011_v26 = vmul.f32 0.70710677, %v10000_v19  ;;  %v10019_v32 = vmul.f32 0.70710677, %v10002_v47  ;;  %v10033_v53 = vadd.f32 %v4135_v33, %v3382_v6  ;;  %v10049_v3 = vadd.f32 %v4178_v39, %v3390_v13 }
0x1734   : > { %v4567_v28 = vand.u32 2147483647, %v10005_v22  ;;  %v4569_v29 = vand.u32 2147483647, %v10008_v24  ;;  %v10029_v40 = vmul.f32 0.70710677, %v10025_v35  ;;  %v10078_v12 = vrot.slane %v9984_v48, %v11147_v50 }
0x1735   : > { %v10016_v31 = vand.u32 2147483647, %v10011_v26  ;;  %v10023_v37 = vand.u32 2147483647, %v10019_v32  ;;  %v10037_v45 = vmul.f32 0.70710677, %v10031_v49  ;;  %v10090_v21 = vrot.slane %v10066_v54, %v9438_v27 }
0x1736   : > { %v4599_v34 = vmul.f32 0.3275911, %v4567_v28  ;;  %v4601_v36 = vmul.f32 0.3275911, %v4569_v29  ;;  %v4583_v56 = vand.u32 2147483647, %v10029_v40  ;;  %v10094_v48 = vrot.slane %v10066_v54, %v9498_v59 }
0x1737   : > { %v4600_v38 = vmul.f32 0.3275911, %v10016_v31  ;;  %v4602_v46 = vmul.f32 0.3275911, %v10023_v37  ;;  %v5015_v63 = vsub.f32 0.0, %v4567_v28  ;;  %v5017_v51 = vsub.f32 0.0, %v4569_v29 }
0x1738   : > { %v4631_v41 = vadd.f32 1.0, %v4599_v34  ;;  %v4633_v44 = vadd.f32 1.0, %v4601_v36  ;;  %v4615_v60 = vmul.f32 0.3275911, %v4583_v56  ;;  %v10044_v55 = vand.u32 2147483647, %v10037_v45 }
0x1739   : > { %v4632_v43 = vadd.f32 1.0, %v4600_v38  ;;  %v4634_v52 = vadd.f32 1.0, %v4602_v46  ;;  %v10047_v25 = vmul.f32 0.70710677, %v10033_v53  ;;  %v5047_v13 = vmul.f32 %v5015_v63, %v4567_v28  ;;  %11213 = vst [vmem:[#allocation32_spill] sm:$0xff] %v10090_v21  ;;  %11214 = vst [vmem:[#allocation33_spill] sm:$0xff] %v10094_v48 }
0x173a   : > { %8320 = vrcp.f32 %v4631_v41  ;;  %v4647_v0 = vadd.f32 1.0, %v4615_v60  ;;  %v4617_v8 = vmul.f32 0.3275911, %v10044_v55  ;;  %v10086_v18 = vmul.f32 0.70710677, %v10049_v3 }
0x173b   : > { %8322 = vrcp.f32 %v4633_v44  ;;  %v10053_v62 = vand.u32 2147483647, %v10047_v25  ;;  %vm4503_vm8 = vcmp.ge.f32.partialorder %v10005_v22, 0.0  ;;  %v5049_v36 = vmul.f32 %v5017_v51, %v4569_v29 }
0x173c   : > { %8324 = vrcp.f32 %v4632_v43  ;;  %v4649_v14 = vadd.f32 1.0, %v4617_v8  ;;  %v5016_v38 = vsub.f32 0.0, %v10016_v31  ;;  %v10101_v39 = vand.u32 2147483647, %v10086_v18 }
0x173d   : > { %8326 = vrcp.f32 %v4634_v52  ;;  %v4616_v15 = vmul.f32 0.3275911, %v10053_v62  ;;  %v5079_v41 = vmul.f32 1.442695, %v5047_v13  ;;  %v5031_v44 = vsub.f32 0.0, %v4583_v56 }
0x173e   : > { %8328 = vrcp.f32 %v4647_v0  ;;  %v10106_v43 = vmul.f32 0.5, %v9996_v16  ;;  %v4618_v52 = vmul.f32 0.3275911, %v10101_v39  ;;  %v11152_v60 = vmov -1.0  }
0x173f   : > { %8330 = vrcp.f32 %v4649_v14  ;;  %v4648_v28 = vadd.f32 1.0, %v4616_v15  ;;  %v10115_v63 = vsel %vm4503_vm8, 1.0, %v11152_v60  ;;  %vm4505_vm9 = vcmp.ge.f32.partialorder %v10008_v24, 0.0 }
0x1740   : > { %v5083_v16 = vmul.f32 1.442695, %v5049_v36  ;;  %v4650_v13 = vadd.f32 1.0, %v4618_v52  ;;  %v5063_v15 = vmul.f32 %v5031_v44, %v4583_v56  ;;  %v10124_v22 = vsel %vm4505_vm9, 1.0, %v11152_v60 }
0x1741   : > { %8332 = vrcp.f32 %v4648_v28  ;;  %v5018_v36 = vsub.f32 0.0, %v10023_v37  ;;  %v10133_v44 = vrot.slane %v10066_v54, %v9443_v30  ;;  %vm4519_vm10 = vcmp.ge.f32.partialorder %v10029_v40, 0.0 }
0x1742   : > { %8334 = vpow2.f32 %v5079_v41  ;;  %vm4521_vm11 = vcmp.ge.f32.partialorder %v10037_v45, 0.0  ;;  %vm4504_vm12 = vcmp.ge.f32.partialorder %v10011_v26, 0.0  ;;  %vm4506_vm13 = vcmp.ge.f32.partialorder %v10019_v32, 0.0 }
0x1743   : > { %8336 = vrcp.f32 %v4650_v13  ;;  %11215 = vst [vmem:[#allocation34_spill] sm:$0xff] %v10133_v44  ;;  %v5034_v44 = vsub.f32 0.0, %v10101_v39  ;;  %v10256_v32 = vmul.f32 0.5, %v10000_v19  ;;  %vm4520_vm14 = vcmp.ge.f32.partialorder %v10047_v25, 0.0 }
0x1744   : > { %v10068_v10 = vpop.eup %8320  ;;  %8338 = vpow2.f32 %v5083_v16  ;;  %vm4522_vm15 = vcmp.ge.f32.partialorder %v10086_v18, 0.0  ;;  %v4458_v25 = vmul.f32 0.5, %v10049_v3 }
0x1745   : > { %v10080_v2 = vpop.eup %8322  ;;  %v4727_v6 = vmul.f32 1.0614054, %v10068_v10  ;;  %v5066_v40 = vmul.f32 %v5034_v44, %v10101_v39 }
0x1746   : > { %v4729_v5 = vmul.f32 1.0614054, %v10080_v2  ;;  %v10097_v33 = vpop.eup %8324 }
0x1747   : > { %v4759_v7 = vadd.f32 -1.4531521, %v4727_v6  ;;  %v4728_v59 = vmul.f32 1.0614054, %v10097_v33  ;;  %v10110_v29 = vpop.eup %8326  ;;  %v5048_v6 = vmul.f32 %v5016_v38, %v10016_v31 }
0x1748   : > { %v4761_v34 = vadd.f32 -1.4531521, %v4729_v5  ;;  %v5033_v5 = vsub.f32 0.0, %v10044_v55  ;;  %v4730_v24 = vmul.f32 1.0614054, %v10110_v29 }
0x1749   : > { %v4791_v27 = vmul.f32 %v10068_v10, %v4759_v7  ;;  %v4760_v8 = vadd.f32 -1.4531521, %v4728_v59  ;;  %v10121_v7 = vpop.eup %8328 }
0x174a   : > { %v4793_v46 = vmul.f32 %v10080_v2, %v4761_v34  ;;  %v4743_v38 = vmul.f32 1.0614054, %v10121_v7 }
0x174b   : > { %v4823_v0 = vadd.f32 1.4214138, %v4791_v27  ;;  %v4792_v31 = vmul.f32 %v10097_v33, %v4760_v8  ;;  %v5081_v27 = vmul.f32 1.442695, %v5048_v6  ;;  %v5065_v8 = vmul.f32 %v5033_v5, %v10044_v55 }
0x174c   : > { %v4825_v51 = vadd.f32 1.4214138, %v4793_v46  ;;  %v10135_v46 = vpop.eup %8330  ;;  %v4762_v6 = vadd.f32 -1.4531521, %v4730_v24  ;;  %v5050_v55 = vmul.f32 %v5018_v36, %v10023_v37 }
0x174d   : > { %v4855_v14 = vmul.f32 %v10068_v10, %v4823_v0  ;;  %v4775_v0 = vadd.f32 -1.4531521, %v4743_v38  ;;  %v10158_v24 = vpop.eup %8332  ;;  %v5115_v36 = vmul.f32 1.442695, %v5065_v8 }
0x174e   : > { %v4857_v28 = vmul.f32 %v10080_v2, %v4825_v51  ;;  %v5111_v51 = vmul.f32 1.442695, %v5063_v15  ;;  %v4824_v15 = vadd.f32 1.4214138, %v4792_v31  ;;  %v10166_v31 = vmul.f32 0.5, %v10025_v35 }
0x174f   : > { %v4887_v34 = vadd.f32 -0.28449672, %v4855_v14  ;;  %v4215_v41 = vpop.f32.mrb[40].mxu0  ;;  %v4258_v59 = vpop.f32.mrb[40].mxu1  ;;  %v4807_v5 = vmul.f32 %v10121_v7, %v4775_v0  ;;  %v4794_v58 = vmul.f32 %v10110_v29, %v4762_v6 }
0x1750   : > { %v4889_v56 = vadd.f32 -0.28449672, %v4857_v28  ;;  %v10139_v13 = vpop.f32.mrb[41].mxu0  ;;  %v10141_v14 = vpop.f32.mrb[41].mxu1  ;;  %v4745_v28 = vmul.f32 1.0614054, %v10135_v46  ;;  %v10146_v30 = vadd.f32 %v4215_v41, %v10058_v9  ;;  %v10162_v1 = vadd.f32 %v4258_v59, %v10063_v4 }
0x1751   : > { %v4919_v52 = vmul.f32 %v10068_v10, %v4887_v34  ;;  %v10148_v50 = vpop.f32.mrb[42].mxu0  ;;  %v10150_v61 = vpop.f32.mrb[42].mxu1  ;;  %v5032_v41 = vsub.f32 0.0, %v10053_v62  ;;  %v4839_v37 = vadd.f32 1.4214138, %v4807_v5  ;;  %8340 = vpow2.f32 %v5111_v51 }
0x1752   : > { %v4921_v16 = vmul.f32 %v10080_v2, %v4889_v56  ;;  %v10154_v38 = vpop.f32.mrb[43].mxu0  ;;  %v10156_v42 = vpop.f32.mrb[43].mxu1  ;;  %v4777_v57 = vadd.f32 -1.4531521, %v4745_v28  ;;  %v4856_v59 = vmul.f32 %v10097_v33, %v4824_v15  ;;  %8342 = vpow2.f32 %v5115_v36 }
0x1753   : > { %v4951_v34 = vadd.f32 0.2548296, %v4919_v52  ;;  %11216 = vst [vmem:[#allocation35_spill] sm:$0xff] %v10156_v42  ;;  %v8335_v28 = vpop.eup %8334  ;;  %v5064_v51 = vmul.f32 %v5032_v41, %v10053_v62  ;;  %8344 = vpow2.f32 %v5081_v27 }
0x1754   : > { %v4953_v56 = vadd.f32 0.2548296, %v4921_v16  ;;  %v4809_v0 = vmul.f32 %v10135_v46, %v4777_v57  ;;  %v4744_v16 = vmul.f32 1.0614054, %v10158_v24  ;;  %v10175_v35 = vpop.eup %8336 }
0x1755   : > { %v4983_v52 = vmul.f32 %v10068_v10, %v4951_v34  ;;  %v4871_v10 = vmul.f32 %v10121_v7, %v4839_v37  ;;  %v5085_v34 = vmul.f32 1.442695, %v5050_v55  ;;  %v8339_v48 = vpop.eup %8338  ;;  %v4746_v55 = vmul.f32 1.0614054, %v10175_v35 }
0x1756   : > { %v4985_v60 = vmul.f32 %v10080_v2, %v4953_v56  ;;  %v4841_v8 = vadd.f32 1.4214138, %v4809_v0  ;;  %v4776_v5 = vadd.f32 -1.4531521, %v4744_v16  ;;  %v11217_v2 = vmov -1.0  }
0x1757   : > { %v5143_v20 = vmul.f32 %v8335_v28, %v4983_v52  ;;  %v4903_v57 = vadd.f32 -0.28449672, %v4871_v10  ;;  %v4551_v15 = vsel %vm4519_vm10, 1.0, %v11217_v2  ;;  %v4888_v0 = vadd.f32 -0.28449672, %v4856_v59 }
0x1758   : > { %v4873_v6 = vmul.f32 %v10135_v46, %v4841_v8  ;;  %v4808_v56 = vmul.f32 %v10158_v24, %v4776_v5  ;;  %v5145_v37 = vmul.f32 %v8339_v48, %v4985_v60  ;;  %v4826_v16 = vadd.f32 1.4214138, %v4794_v58 }
0x1759   : > { %v4935_v62 = vmul.f32 %v10121_v7, %v4903_v57  ;;  %v4778_v36 = vadd.f32 -1.4531521, %v4746_v55  ;;  %v5175_v28 = vsub.f32 1.0, %v5143_v20  ;;  %v5113_v21 = vmul.f32 1.442695, %v5064_v51 }
0x175a   : > { %v4905_v41 = vadd.f32 -0.28449672, %v4873_v6  ;;  %v4840_v52 = vadd.f32 1.4214138, %v4808_v56  ;;  %v10191_v48 = vmul.f32 0.70710677, %v10146_v30  ;;  %v4920_v60 = vmul.f32 %v10097_v33, %v4888_v0 }
0x175b   : > { %v4967_v10 = vadd.f32 0.2548296, %v4935_v62  ;;  %v4810_v42 = vmul.f32 %v10175_v35, %v4778_v36  ;;  %v5177_v58 = vsub.f32 1.0, %v5145_v37  ;;  %v4858_v27 = vmul.f32 %v10110_v29, %v4826_v16  ;;  %v8341_v59 = vpop.eup %8340 }
0x175c   : > { %v4937_v8 = vmul.f32 %v10135_v46, %v4905_v41  ;;  %v4872_v5 = vmul.f32 %v10158_v24, %v4840_v52  ;;  %8346 = vpow2.f32 %v5085_v34  ;;  %v5207_v57 = vmul.f32 %v5175_v28, %v10115_v63 }
0x175d   : > { %v4999_v20 = vmul.f32 %v10121_v7, %v4967_v10  ;;  %v4842_v44 = vadd.f32 1.4214138, %v4810_v42  ;;  %v5117_v56 = vmul.f32 1.442695, %v5066_v40  ;;  %v10202_v16 = vand.u32 2147483647, %v10191_v48  ;;  %v8343_v7 = vpop.eup %8342 }
0x175e   : > { %v4969_v51 = vadd.f32 0.2548296, %v4937_v8  ;;  %v4904_v39 = vadd.f32 -0.28449672, %v4872_v5  ;;  %v4952_v34 = vadd.f32 0.2548296, %v4920_v60  ;;  %8348 = vpow2.f32 %v5113_v21  ;;  %v8345_v8 = vpop.eup %8344 }
0x175f   : > { %v5159_v6 = vmul.f32 %v8341_v59, %v4999_v20  ;;  %v4874_v0 = vmul.f32 %v10175_v35, %v4842_v44  ;;  %v4890_v62 = vadd.f32 -0.28449672, %v4858_v27  ;;  %v5209_v42 = vmul.f32 %v5177_v58, %v10124_v22 }
0x1760   : > { %v5001_v55 = vmul.f32 %v10135_v46, %v4969_v51  ;;  %v4936_v37 = vmul.f32 %v10158_v24, %v4904_v39  ;;  %v4603_v36 = vmul.f32 0.3275911, %v10202_v16  ;;  %v5239_v28 = vadd.f32 1.0, %v5207_v57 }
0x1761   : > { %v5191_v41 = vsub.f32 1.0, %v5159_v6  ;;  %v4906_v52 = vadd.f32 -0.28449672, %v4874_v0  ;;  %v4553_v10 = vsel %vm4521_vm11, 1.0, %v11217_v2  ;;  %v10210_v40 = vmul.f32 0.70710677, %v10162_v1 }
0x1762   : > { %v5161_v63 = vmul.f32 %v8343_v7, %v5001_v55  ;;  %v4968_v60 = vadd.f32 0.2548296, %v4936_v37  ;;  %v4635_v27 = vadd.f32 1.0, %v4603_v36  ;;  %v4922_v22 = vmul.f32 %v10110_v29, %v4890_v62 }
0x1763   : > { %v5223_v46 = vmul.f32 %v5191_v41, %v4551_v15  ;;  %v4938_v21 = vmul.f32 %v10175_v35, %v4906_v52  ;;  %8350 = vpow2.f32 %v5117_v56  ;;  %v10215_v20 = vand.u32 2147483647, %v10210_v40 }
0x1764   : > { %v5193_v5 = vsub.f32 1.0, %v5161_v63  ;;  %v5241_v15 = vadd.f32 1.0, %v5209_v42  ;;  %v4984_v45 = vmul.f32 %v10097_v33, %v4952_v34  ;;  %8352 = vrcp.f32 %v4635_v27 }
0x1765   : > { %v5255_v58 = vadd.f32 1.0, %v5223_v46  ;;  %v10219_v51 = vmul.f32 %v5239_v28, %v10106_v43  ;;  %v4441_v39 = vmul.f32 0.5, %v9998_v17  ;;  %v4605_v57 = vmul.f32 0.3275911, %v10215_v20 }
0x1766   : > { %v5225_v59 = vmul.f32 %v5193_v5, %v4553_v10  ;;  %v8347_v6 = vpop.eup %8346  ;;  %v4457_v56 = vmul.f32 0.5, %v10031_v49  ;;  %v5000_v37 = vmul.f32 %v10158_v24, %v4968_v60  ;;  %v4970_v0 = vadd.f32 0.2548296, %v4938_v21 }
0x1767   : > { %v10223_v44 = vmul.f32 %v5255_v58, %v10166_v31  ;;  %v4954_v33 = vadd.f32 0.2548296, %v4922_v22  ;;  %v4637_v43 = vadd.f32 1.0, %v4605_v57  ;;  %v10232_v17 = vadd.f32 %v10139_v13, %v10073_v11 }
0x1768   : > { %v5257_v55 = vadd.f32 1.0, %v5225_v59  ;;  %v10234_v31 = vmul.f32 %v5241_v15, %v4441_v39  ;;  %v5144_v34 = vmul.f32 %v8345_v8, %v4984_v45  ;;  %v8349_v49 = vpop.eup %8348  ;;  %v10245_v41 = vadd.f32 %v10141_v14, %v10078_v12 }
0x1769   : > { %8354 = vrcp.f32 %v4637_v43  ;;  %v10241_v24 = vmul.f32 0.70710677, %v10232_v17  ;;  %v5160_v42 = vmul.f32 %v8349_v49, %v5000_v37  ;;  %v5002_v63 = vmul.f32 %v10175_v35, %v4970_v0 }
0x176a   : > { %v10237_v62 = vmul.f32 %v5257_v55, %v4457_v56  ;;  %v11218_v52 = vsub.s32 3, %v9429_v23  ;;  %v4986_v28 = vmul.f32 %v10110_v29, %v4954_v33  ;;  %v10263_v14 = vmul.f32 0.70710677, %v10245_v41 }
0x176b   : > { %v10260_v46 = vand.u32 2147483647, %v10241_v24  ;;  %v4536_v35 = vsel %vm4504_vm12, 1.0, %v11217_v2  ;;  %v5176_v10 = vsub.f32 1.0, %v5144_v34  ;;  %v10269_v8 = vmul.f32 0.5, %v10002_v47 }
0x176c   : > { %v10253_v36 = vrot.slane %v10066_v54, %v11218_v52  ;;  %v4538_v54 = vsel %vm4506_vm13, 1.0, %v11217_v2  ;;  %v4456_v60 = vmul.f32 0.5, %v10033_v53  ;;  %v10280_v26 = vand.u32 2147483647, %v10263_v14 }
0x176d   : > { %v8351_v29 = vpop.eup %8350  ;;  %v4604_v21 = vmul.f32 0.3275911, %v10260_v46  ;;  %v5192_v47 = vsub.f32 1.0, %v5160_v42  ;;  %v10286_v58 = vadd.f32 %v10148_v50, %v10058_v9  ;;  %v10290_v15 = vadd.f32 %v10150_v61, %v10063_v4 }
0x176e   : > { %v10282_v27 = vpop.eup %8352  ;;  %v5162_v22 = vmul.f32 %v8351_v29, %v5002_v63  ;;  %v5146_v59 = vmul.f32 %v8347_v6, %v4986_v28  ;;  %v4606_v56 = vmul.f32 0.3275911, %v10280_v26  ;;  %v5208_v37 = vmul.f32 %v5176_v10, %v4536_v35 }
0x176f   : > { %v10272_v19 = vpop.f32.mrb[44].mxu0  ;;  %v10274_v5 = vpop.f32.mrb[44].mxu1  ;;  %v4731_v39 = vmul.f32 1.0614054, %v10282_v27  ;;  %v4636_v57 = vadd.f32 1.0, %v4604_v21  ;;  %v4552_v50 = vsel %vm4520_vm14, 1.0, %v11217_v2 }
0x1770   : > { %v10292_v53 = vpop.f32.mrb[45].mxu0  ;;  %v10294_v45 = vpop.f32.mrb[45].mxu1  ;;  %v10305_v61 = vmul.f32 0.70710677, %v10286_v58  ;;  %v5019_v0 = vsub.f32 0.0, %v10202_v16  ;;  %v4638_v33 = vadd.f32 1.0, %v4606_v56  ;;  %v5224_v34 = vmul.f32 %v5192_v47, %v4552_v50 }
0x1771   : > { %v10298_v55 = vpop.f32.mrb[46].mxu0  ;;  %v10307_v9 = vpop.f32.mrb[46].mxu1  ;;  %v4763_v6 = vadd.f32 -1.4531521, %v4731_v39  ;;  %8356 = vrcp.f32 %v4636_v57  ;;  %v5194_v49 = vsub.f32 1.0, %v5162_v22  ;;  %v5178_v52 = vsub.f32 1.0, %v5146_v59 }
0x1772   : > { %v10309_v4 = vpop.f32.mrb[47].mxu0  ;;  %v10312_v43 = vpop.f32.mrb[47].mxu1  ;;  %v10316_v42 = vand.u32 2147483647, %v10305_v61  ;;  %v5021_v35 = vsub.f32 0.0, %v10215_v20  ;;  %v5240_v29 = vadd.f32 1.0, %v5208_v37  ;;  %v5051_v39 = vmul.f32 %v5019_v0, %v10202_v16 }
0x1773   : > { %v10318_v63 = vpop.eup %8354  ;;  %v4795_v28 = vmul.f32 %v10282_v27, %v4763_v6  ;;  %v10323_v10 = vmul.f32 0.70710677, %v10290_v15  ;;  %v4554_v21 = vsel %vm4522_vm15, 1.0, %v11217_v2  ;;  %8358 = vrcp.f32 %v4638_v33  ;;  %v11219_v0 = vld [vmem:[#allocation35_spill] sm:$0xff] }
0x1774   : > { %v4733_v3 = vmul.f32 1.0614054, %v10318_v63  ;;  %v4619_v47 = vmul.f32 0.3275911, %v10316_v42  ;;  %v5256_v57 = vadd.f32 1.0, %v5224_v34  ;;  %v5226_v56 = vmul.f32 %v5194_v49, %v4554_v21 }
0x1775   : > { %v4827_v22 = vadd.f32 1.4214138, %v4795_v28  ;;  %v10332_v59 = vand.u32 2147483647, %v10323_v10  ;;  %v5210_v37 = vmul.f32 %v5178_v52, %v4538_v54  ;;  %v5053_v18 = vmul.f32 %v5021_v35, %v10215_v20 }
0x1776   : > { %v4765_v50 = vadd.f32 -1.4531521, %v4733_v3  ;;  %v4651_v6 = vadd.f32 1.0, %v4619_v47  ;;  %v10340_v16 = vadd.f32 %v10154_v38, %v10073_v11  ;;  %v10344_v33 = vadd.f32 %v11219_v0, %v10078_v12 }
0x1777   : > { %v4859_v13 = vmul.f32 %v10282_v27, %v4827_v22  ;;  %v4621_v7 = vmul.f32 0.3275911, %v10332_v59  ;;  %vm4507_vm0 = vcmp.ge.f32.partialorder %v10191_v48, 0.0  ;;  %v5087_v34 = vmul.f32 1.442695, %v5051_v39 }
0x1778   : > { %v4797_v23 = vmul.f32 %v10318_v63, %v4765_v50  ;;  %8360 = vrcp.f32 %v4651_v6  ;;  %v5288_v52 = vmul.f32 %v5256_v57, %v4456_v60  ;;  %v5258_v20 = vadd.f32 1.0, %v5226_v56  ;;  %v8158_v57 = vld [vmem:[%s9373_s2 + $0x100] sm:$0xff]  }
0x1779   : > { %v4891_v54 = vadd.f32 -0.28449672, %v4859_v13  ;;  %v4653_v49 = vadd.f32 1.0, %v4621_v7  ;;  %v10348_v35 = vmul.f32 0.70710677, %v10340_v16  ;;  %v5272_v11 = vmul.f32 %v5240_v29, %v10256_v32 }
0x177a   : > { %v4829_v28 = vadd.f32 1.4214138, %v4797_v23  ;;  %v5242_v38 = vadd.f32 1.0, %v5210_v37  ;;  %v10354_v12 = vmul.f32 0.5, %v10146_v30  ;;  %v5091_v3 = vmul.f32 1.442695, %v5053_v18 }
0x177b   : > { %v10350_v21 = vpop.eup %8356  ;;  %8362 = vrcp.f32 %v4653_v49  ;;  %v10359_v23 = vmul.f32 0.70710677, %v10344_v33  ;;  %v10364_v60 = vsel %vm4507_vm0, 1.0, %v11217_v2  ;;  %v4923_v32 = vmul.f32 %v10282_v27, %v4891_v54  ;;  %v8160_v18 = vld [vmem:[%s9373_s2 + $0x148] sm:$0xff]  }
0x177c   : > { %v4861_v13 = vmul.f32 %v10318_v63, %v4829_v28  ;;  %v4732_v7 = vmul.f32 1.0614054, %v10350_v21  ;;  %v5035_v30 = vsub.f32 0.0, %v10316_v42  ;;  %v10369_v29 = vand.u32 2147483647, %v10348_v35 }
0x177d   : > { %v5290_v47 = vmul.f32 %v5258_v20, %v4458_v25  ;;  %8364 = vpow2.f32 %v5087_v34  ;;  %v5304_v39 = vpack.c.bf16 %v5288_v52, %v5272_v11  ;;  %v10372_v56 = vpop.eup %8358  ;;  %v5274_v50 = vmul.f32 %v5242_v38, %v10269_v8 }
0x177e   : > { %v4893_v22 = vadd.f32 -0.28449672, %v4861_v13  ;;  %v4764_v6 = vadd.f32 -1.4531521, %v4732_v7  ;;  %v5020_v48 = vsub.f32 0.0, %v10260_v46  ;;  %vm4509_vm1 = vcmp.ge.f32.partialorder %v10210_v40, 0.0 }
0x177f   : > { %v4620_v37 = vmul.f32 0.3275911, %v10369_v29  ;;  %8366 = vpow2.f32 %v5091_v3  ;;  %v5022_v25 = vsub.f32 0.0, %v10280_v26  ;;  %v10381_v0 = vand.u32 2147483647, %v10359_v23  ;;  %6382 = vmatprep.mubr.bf16.mxu0 %v5304_v39  ;;  %v8162_v13 = vld [vmem:[%s9373_s2 + $0x108] sm:$0xff]  }
0x1780   : > { %v4955_v54 = vadd.f32 0.2548296, %v4923_v32  ;;  %v5067_v8 = vmul.f32 %v5035_v30, %v10316_v42  ;;  %v5037_v34 = vsub.f32 0.0, %v10332_v59  ;;  %v11220_v52 = vpack.c.bf16 %v10223_v44, %v10219_v51  ;;  %v8159_v42 = vld [vmem:[%s9373_s2 + $0x180] sm:$0xff]   ;;  %v8161_v44 = vld [vmem:[%s9373_s2 + $0x1c8] sm:$0xff]   ;;  %v8164_v30 = vld [vmem:[%s9373_s2 + $0x150] sm:$0xff]  }
0x1781   : > { %v4652_v49 = vadd.f32 1.0, %v4620_v37  ;;  %v4925_v28 = vmul.f32 %v10318_v63, %v4893_v22  ;;  %v4734_v11 = vmul.f32 1.0614054, %v10372_v56  ;;  %v4622_v38 = vmul.f32 0.3275911, %v10381_v0  ;;  %v8165_v40 = vld [vmem:[%s9373_s2 + $0x1d0] sm:$0xff]  }
0x1782   : > { %6383 = vmatmul.mubr.bf16.vlgmr.msra.gmra.mrb[52].mxu0 %v11220_v52  ;;  %v10388_v20 = vpop.eup %8360  ;;  %v5306_v3 = vpack.c.bf16 %v5290_v47, %v5274_v50  ;;  %v4796_v7 = vmul.f32 %v10350_v21, %v4764_v6  ;;  %v5052_v32 = vmul.f32 %v5020_v48, %v10260_v46  ;;  %v10401_v22 = vmul.f32 0.5, %v10162_v1 }
0x1783   : > { %7499 = vmatpush3.bf16.msra.mxu0 %v8158_v57  ;;  %v4747_v51 = vmul.f32 1.0614054, %v10388_v20  ;;  %8368 = vrcp.f32 %v4652_v49  ;;  %v10406_v47 = vsel %vm4509_vm1, 1.0, %v11217_v2  ;;  %v5054_v39 = vmul.f32 %v5022_v25, %v10280_v26  ;;  %v8163_v57 = vld [vmem:[%s9373_s2 + $0x188] sm:$0xff]   ;;  %v8168_v49 = vld [vmem:[%s9373_s2 + $0x158] sm:$0xff]  }
0x1784   : > { %7500 = vmatprep.subr.bf16.mxu0 %v8160_v18  ;;  %v4654_v46 = vadd.f32 1.0, %v4622_v38  ;;  %6423 = vmatprep.mubr.bf16.mxu1 %v5306_v3  ;;  %v4987_v50 = vmul.f32 %v10282_v27, %v4955_v54  ;;  %v10412_v6 = vmul.f32 0.5, %v10232_v17  ;;  %v10415_v48 = vmul.f32 0.5, %v10286_v58  ;;  %v8166_v18 = vld [vmem:[%s9373_s2 + $0x110] sm:$0xff]  }
0x1785   : > { %v4779_v1 = vadd.f32 -1.4531521, %v4747_v51  ;;  %v11221_v37 = vpack.c.bf16 %v10237_v62, %v10234_v31  ;;  %v10423_v26 = vpop.eup %8362  ;;  %v4957_v25 = vadd.f32 0.2548296, %v4925_v28  ;;  %v4766_v52 = vadd.f32 -1.4531521, %v4734_v11 }
0x1786   : > { %v5119_v38 = vmul.f32 1.442695, %v5067_v8  ;;  %v5069_v27 = vmul.f32 %v5037_v34, %v10332_v59  ;;  %v4828_v17 = vadd.f32 1.4214138, %v4796_v7  ;;  %v5089_v58 = vmul.f32 1.442695, %v5052_v32 }
0x1787   : > { %6424 = vmatmul.mubr.bf16.vlgmr.msra.gmra.mrb[52].mxu1 %v11221_v37  ;;  %7501 = vmatpush3.bf16.msra.mxu0 %v8162_v13  ;;  %v4811_v54 = vmul.f32 %v10388_v20, %v4779_v1  ;;  %v4749_v3 = vmul.f32 1.0614054, %v10423_v26  ;;  %v8365_v31 = vpop.eup %8364  ;;  %v5093_v62 = vmul.f32 1.442695, %v5054_v39  ;;  %vm4523_vm2 = vcmp.ge.f32.partialorder %v10305_v61, 0.0  ;;  %v11222_v8 = vld [vmem:[#allocation32_spill] sm:$0xff] }
0x1788   : > { %7521 = vmatpush3.bf16.msra.mxu1 %v8159_v42  ;;  %7502 = vmatprep.subr.bf16.mxu0 %v8164_v30  ;;  %8370 = vrcp.f32 %v4654_v46  ;;  %v10431_v59 = vadd.f32 %v10272_v19, %v11222_v8  ;;  %v5147_v34 = vmul.f32 %v8365_v31, %v4987_v50  ;;  %v5036_v42 = vsub.f32 0.0, %v10369_v29  ;;  %v8170_v19 = vld [vmem:[%s9373_s2 + $0x118] sm:$0xff]   ;;  %v8173_v61 = vld [vmem:[%s9373_s2 + $0x1e0] sm:$0xff]  }
0x1789   : > { %7522 = vmatprep.subr.bf16.mxu1 %v8161_v44  ;;  %v4843_v28 = vadd.f32 1.4214138, %v4811_v54  ;;  %v4781_v11 = vadd.f32 -1.4531521, %v4749_v3  ;;  %v8367_v13 = vpop.eup %8366  ;;  %v4989_v7 = vmul.f32 %v10318_v63, %v4957_v25  ;;  %v4798_v32 = vmul.f32 %v10372_v56, %v4766_v52  ;;  %v8167_v44 = vld [vmem:[%s9373_s2 + $0x190] sm:$0xff]   ;;  %v8169_v50 = vld [vmem:[%s9373_s2 + $0x1d8] sm:$0xff]  }
0x178a   : > { %8372 = vpow2.f32 %v5119_v38  ;;  %v5123_v51 = vmul.f32 1.442695, %v5069_v27  ;;  %v4860_v30 = vmul.f32 %v10350_v21, %v4828_v17  ;;  %v8172_v63 = vld [vmem:[%s9373_s2 + $0x160] sm:$0xff]   ;;  %v10450_v37 = vsel %vm4523_vm2, 1.0, %v11217_v2 }
0x178b   : > { %7503 = vmatpush3.bf16.msra.mxu0 %v8166_v18  ;;  %8374 = vpow2.f32 %v5089_v58  ;;  %v4875_v39 = vmul.f32 %v10388_v20, %v4843_v28  ;;  %v4813_v46 = vmul.f32 %v10423_v26, %v4781_v11  ;;  %vm4525_vm3 = vcmp.ge.f32.partialorder %v10323_v10, 0.0  ;;  %v8174_v54 = vld [vmem:[%s9373_s2 + $0x120] sm:$0xff]  }
0x178c   : > { %7523 = vmatpush3.bf16.msra.mxu1 %v8163_v57  ;;  %7504 = vmatprep.subr.bf16.mxu0 %v8168_v49  ;;  %8376 = vpow2.f32 %v5093_v62  ;;  %v10454_v18 = vmul.f32 0.70710677, %v10431_v59  ;;  %v5179_v38 = vsub.f32 1.0, %v5147_v34  ;;  %v5068_v58 = vmul.f32 %v5036_v42, %v10369_v29  ;;  %v11231_v10 = vld [vmem:[#allocation33_spill] sm:$0xff] }
0x178d   : > { %7524 = vmatprep.subr.bf16.mxu1 %v8165_v40  ;;  %v8171_v40 = vld [vmem:[%s9373_s2 + $0x198] sm:$0xff]   ;;  %v10461_v52 = vpop.eup %8368  ;;  %v4907_v27 = vadd.f32 -0.28449672, %v4875_v39  ;;  %v4845_v17 = vadd.f32 1.4214138, %v4813_v46  ;;  %v5149_v3 = vmul.f32 %v8367_v13, %v4989_v7  ;;  %8378 = vpow2.f32 %v5123_v51  ;;  %v8176_v13 = vld [vmem:[%s9373_s2 + $0x168] sm:$0xff]  }
0x178e   : > { %v4830_v31 = vadd.f32 1.4214138, %v4798_v32  ;;  %v4748_v62 = vmul.f32 1.0614054, %v10461_v52  ;;  %v10475_v29 = vsel %vm4525_vm3, 1.0, %v11217_v2  ;;  %v5211_v39 = vmul.f32 %v5179_v38, %v10364_v60 }
0x178f   : > { %v10443_v1 = vpop.f32.mrb[48].mxu0  ;;  %v10445_v57 = vpop.f32.mrb[48].mxu1  ;;  %7505 = vmatpush3.bf16.msra.mxu0 %v8170_v19  ;;  %v4939_v34 = vmul.f32 %v10388_v20, %v4907_v27  ;;  %v4877_v42 = vmul.f32 %v10423_v26, %v4845_v17  ;;  %v10485_v19 = vand.u32 2147483647, %v10454_v18  ;;  %v5181_v17 = vsub.f32 1.0, %v5149_v3  ;;  %v8177_v3 = vld [vmem:[%s9373_s2 + $0x1e8] sm:$0xff]  }
0x1790   : > { %11223 = vst [vmem:[#allocation35_spill] sm:$0xff] %v10443_v1  ;;  %11224 = vst [vmem:[#allocation32_spill] sm:$0xff] %v10445_v57  ;;  %v10457_v49 = vpop.f32.mrb[49].mxu0  ;;  %v10459_v25 = vpop.f32.mrb[49].mxu1  ;;  %7525 = vmatpush3.bf16.msra.mxu1 %v8167_v44  ;;  %7506 = vmatprep.subr.bf16.mxu0 %v8172_v63  ;;  %v4780_v51 = vadd.f32 -1.4531521, %v4748_v62  ;;  %v4862_v62 = vmul.f32 %v10372_v56, %v4830_v31 }
0x1791   : > { %11225 = vst [vmem:[#allocation36_spill] sm:$0xff] %v10457_v49  ;;  %11226 = vst [vmem:[#allocation37_spill] sm:$0xff] %v10459_v25  ;;  %v10467_v28 = vpop.f32.mrb[50].mxu0  ;;  %v10469_v11 = vpop.f32.mrb[50].mxu1  ;;  %v4892_v25 = vadd.f32 -0.28449672, %v4860_v30  ;;  %7526 = vmatprep.subr.bf16.mxu1 %v8169_v50  ;;  %v10489_v30 = vadd.f32 %v10274_v5, %v11231_v10 }
0x1792   : > { %11227 = vst [vmem:[#allocation38_spill] sm:$0xff] %v10467_v28  ;;  %11228 = vst [vmem:[#allocation39_spill] sm:$0xff] %v10469_v11  ;;  %v10479_v7 = vpop.f32.mrb[51].mxu0  ;;  %v10481_v32 = vpop.f32.mrb[51].mxu1  ;;  %v5038_v44 = vsub.f32 0.0, %v10381_v0  ;;  %v8175_v5 = vld [vmem:[%s9373_s2 + $0x1a0] sm:$0xff]  }
0x1793   : > { %11229 = vst [vmem:[#allocation40_spill] sm:$0xff] %v10479_v7  ;;  %11230 = vst [vmem:[#allocation41_spill] sm:$0xff] %v10481_v32  ;;  %v4971_v46 = vadd.f32 0.2548296, %v4939_v34  ;;  %v4909_v50 = vadd.f32 -0.28449672, %v4877_v42  ;;  %v10492_v27 = vpop.eup %8370  ;;  %v4812_v32 = vmul.f32 %v10461_v52, %v4780_v51  ;;  %7507 = vmatpush3.bf16.msra.mxu0 %v8174_v54  ;;  %v4924_v60 = vmul.f32 %v10350_v21, %v4892_v25 }
0x1794   : > { %v5121_v63 = vmul.f32 1.442695, %v5068_v58  ;;  %v4607_v7 = vmul.f32 0.3275911, %v10485_v19  ;;  %7527 = vmatpush3.bf16.msra.mxu1 %v8171_v40  ;;  %v8178_v11 = vld [vmem:[%s9373_s2 + $0x128] sm:$0xff]   ;;  %7508 = vmatprep.subr.bf16.mxu0 %v8176_v13  ;;  %v8180_v31 = vld [vmem:[%s9373_s2 + $0x170] sm:$0xff]   ;;  %v8373_v42 = vpop.eup %8372  ;;  %v5070_v40 = vmul.f32 %v5038_v44, %v10381_v0  ;;  %v5213_v13 = vmul.f32 %v5181_v17, %v10406_v47 }
0x1795   : > { %v5003_v38 = vmul.f32 %v10388_v20, %v4971_v46  ;;  %v4941_v58 = vmul.f32 %v10423_v26, %v4909_v50  ;;  %v4750_v34 = vmul.f32 1.0614054, %v10492_v27  ;;  %7528 = vmatprep.subr.bf16.mxu1 %v8173_v61  ;;  %v4844_v51 = vadd.f32 1.4214138, %v4812_v32  ;;  %v8375_v25 = vpop.eup %8374  ;;  %v8179_v0 = vld [vmem:[%s9373_s2 + $0x1a8] sm:$0xff]  }
0x1796   : > { %v4639_v54 = vadd.f32 1.0, %v4607_v7  ;;  %v10507_v28 = vmul.f32 0.70710677, %v10489_v30  ;;  %v5243_v20 = vadd.f32 1.0, %v5211_v39  ;;  %v10509_v61 = vpop.eup %8376  ;;  %v4894_v32 = vadd.f32 -0.28449672, %v4862_v62 }
0x1797   : > { %v5163_v46 = vmul.f32 %v8373_v42, %v5003_v38  ;;  %v4973_v50 = vadd.f32 0.2548296, %v4941_v58  ;;  %v4782_v49 = vadd.f32 -1.4531521, %v4750_v34  ;;  %v4876_v57 = vmul.f32 %v10461_v52, %v4844_v51  ;;  %7509 = vmatpush3.bf16.msra.mxu0 %v8178_v11  ;;  %v8182_v7 = vld [vmem:[%s9373_s2 + $0x130] sm:$0xff]   ;;  %v8184_v34 = vld [vmem:[%s9373_s2 + $0x178] sm:$0xff]   ;;  %v8379_v47 = vpop.eup %8378 }
0x1798   : > { %8380 = vrcp.f32 %v4639_v54  ;;  %7529 = vmatpush3.bf16.msra.mxu1 %v8175_v5  ;;  %v4956_v44 = vadd.f32 0.2548296, %v4924_v60  ;;  %7510 = vmatprep.subr.bf16.mxu0 %v8180_v31  ;;  %v8181_v58 = vld [vmem:[%s9373_s2 + $0x1f0] sm:$0xff]   ;;  %v5125_v62 = vmul.f32 1.442695, %v5070_v40  ;;  %v5245_v31 = vadd.f32 1.0, %v5213_v13 }
0x1799   : > { %v5195_v1 = vsub.f32 1.0, %v5163_v46  ;;  %v5005_v39 = vmul.f32 %v10423_v26, %v4973_v50  ;;  %v4814_v38 = vmul.f32 %v10492_v27, %v4782_v49  ;;  %7530 = vmatprep.subr.bf16.mxu1 %v8177_v3  ;;  %v4908_v17 = vadd.f32 -0.28449672, %v4876_v57  ;;  %v11232_v11 = vld [vmem:[#allocation34_spill] sm:$0xff]  ;;  %v8185_v46 = vld [vmem:[%s9373_s2 + $0x1f8] sm:$0xff]  }
0x179a   : > { %v10520_v5 = vand.u32 2147483647, %v10507_v28  ;;  %v10524_v60 = vadd.f32 %v10292_v53, %v11232_v11  ;;  %8382 = vpow2.f32 %v5121_v63  ;;  %v10528_v3 = vmul.f32 %v5243_v20, %v10354_v12  ;;  %v8183_v40 = vld [vmem:[%s9373_s2 + $0x1b0] sm:$0xff]   ;;  %v8186_v53 = vld [vmem:[%s9373_s2 + $0x138] sm:$0xff]   ;;  %v8188_v12 = vld [vmem:[%s9373_s2 + $0x240] sm:$0xff]  }
0x179b   : > { %v5227_v26 = vmul.f32 %v5195_v1, %v10450_v37  ;;  %v5165_v42 = vmul.f32 %v8379_v47, %v5005_v39  ;;  %v4846_v49 = vadd.f32 1.4214138, %v4814_v38  ;;  %v4926_v57 = vmul.f32 %v10372_v56, %v4894_v32  ;;  %7511 = vmatpush3.bf16.msra.mxu0 %v8182_v7  ;;  %v8187_v38 = vld [vmem:[%s9373_s2 + $0x1b8] sm:$0xff]  }
0x179c   : > { %v4609_v51 = vmul.f32 0.3275911, %v10520_v5  ;;  %7531 = vmatpush3.bf16.msra.mxu1 %v8179_v0  ;;  %v4988_v54 = vmul.f32 %v10350_v21, %v4956_v44  ;;  %7512 = vmatprep.subr.bf16.mxu0 %v8184_v34  ;;  %v4940_v20 = vmul.f32 %v10461_v52, %v4908_v17  ;;  %8384 = vpow2.f32 %v5125_v62 }
0x179d   : > { %v5259_v1 = vadd.f32 1.0, %v5227_v26  ;;  %v5197_v37 = vsub.f32 1.0, %v5165_v42  ;;  %v4878_v63 = vmul.f32 %v10492_v27, %v4846_v49  ;;  %7532 = vmatprep.subr.bf16.mxu1 %v8181_v58  ;;  %v10540_v13 = vmul.f32 0.70710677, %v10524_v60 }
0x179e   : > { %v4641_v50 = vadd.f32 1.0, %v4609_v51  ;;  %v10548_v7 = vadd.f32 %v10294_v45, %v10253_v36  ;;  %vm4508_vm4 = vcmp.ge.f32.partialorder %v10241_v24, 0.0  ;;  %v4958_v44 = vadd.f32 0.2548296, %v4926_v57  ;;  %v8189_v45 = vld [vmem:[%s9373_s2 + $0x2c0] sm:$0xff]  }
0x179f   : > { %v10543_v32 = vmul.f32 %v5259_v1, %v10415_v48  ;;  %v5229_v21 = vmul.f32 %v5197_v37, %v10475_v29  ;;  %v4910_v0 = vadd.f32 -0.28449672, %v4878_v63  ;;  %v4461_v39 = vmul.f32 0.5, %v10290_v15  ;;  %7513 = vmatpush3.bf16.msra.mxu0 %v8186_v53 }
0x17a0   : > { %8386 = vrcp.f32 %v4641_v50  ;;  %7533 = vmatpush3.bf16.msra.mxu1 %v8183_v40  ;;  %v5148_v58 = vmul.f32 %v8375_v25, %v4988_v54  ;;  %7542 = vmatprep.subr.bf16.mxu0 %v8188_v12  ;;  %v10560_v17 = vmul.f32 %v5245_v31, %v10401_v22  ;;  %vm4510_vm6 = vcmp.ge.f32.partialorder %v10263_v14, 0.0 }
0x17a1   : > { %v5307_v48 = vpack.c.bf16 %v10543_v32, %v10528_v3  ;;  %v5261_v29 = vadd.f32 1.0, %v5229_v21  ;;  %v4942_v34 = vmul.f32 %v10492_v27, %v4910_v0  ;;  %7534 = vmatprep.subr.bf16.mxu1 %v8185_v46  ;;  %v4972_v15 = vadd.f32 0.2548296, %v4940_v20 }
0x17a2   : > { %v10557_v47 = vpop.eup %8380  ;;  %v10564_v62 = vand.u32 2147483647, %v10540_v13  ;;  %v10570_v49 = vmul.f32 0.70710677, %v10548_v7  ;;  %v4540_v57 = vsel %vm4508_vm4, 1.0, %v11217_v2  ;;  %v10576_v22 = vmul.f32 0.5, %v10245_v41 }
0x17a3   : > { %v10566_v25 = vmul.f32 %v5261_v29, %v4461_v39  ;;  %v4974_v26 = vadd.f32 0.2548296, %v4942_v34  ;;  %v4735_v42 = vmul.f32 1.0614054, %v10557_v47  ;;  %v10581_v51 = vadd.f32 %v10298_v55, %v11222_v8 }
0x17a4   : > { %v4608_v31 = vmul.f32 0.3275911, %v10564_v62  ;;  %7535 = vmatpush3.bf16.msra.mxu1 %v8187_v38  ;;  %v8383_v40 = vpop.eup %8382  ;;  %v5180_v53 = vsub.f32 1.0, %v5148_v58  ;;  %v4990_v54 = vmul.f32 %v10372_v56, %v4958_v44  ;;  %v4542_v24 = vsel %vm4510_vm6, 1.0, %v11217_v2 }
0x17a5   : > { %v5309_v1 = vpack.c.bf16 %v10566_v25, %v10560_v17  ;;  %v4767_v37 = vadd.f32 -1.4531521, %v4735_v42  ;;  %7564 = vmatprep.subr.bf16.mxu1 %v8189_v45  ;;  %v10590_v41 = vmul.f32 0.5, %v10340_v16  ;;  %v5004_v55 = vmul.f32 %v10461_v52, %v4972_v15  ;;  %v8196_v17 = vld [vmem:[%s9373_s2 + $0x250] sm:$0xff]  }
0x17a6   : > { %v4640_v8 = vadd.f32 1.0, %v4608_v31  ;;  %vm4524_vm7 = vcmp.ge.f32.partialorder %v10348_v35, 0.0  ;;  %v5006_v63 = vmul.f32 %v10492_v27, %v4974_v26  ;;  %v10597_v46 = vand.u32 2147483647, %v10570_v49  ;;  %v8385_v12 = vpop.eup %8384  ;;  %v8197_v25 = vld [vmem:[%s9373_s2 + $0x2d0] sm:$0xff]  }
0x17a7   : > { %v4799_v56 = vmul.f32 %v10557_v47, %v4767_v37  ;;  %vm4526_vm8 = vcmp.ge.f32.partialorder %v10359_v23, 0.0  ;;  %v5023_v14 = vsub.f32 0.0, %v10485_v19  ;;  %v10602_v16 = vmul.f32 0.70710677, %v10581_v51 }
0x17a8   : > { %8388 = vrcp.f32 %v4640_v8  ;;  %v5212_v52 = vmul.f32 %v5180_v53, %v4540_v57  ;;  %v5150_v20 = vmul.f32 %v10509_v61, %v4990_v54  ;;  %v4610_v27 = vmul.f32 0.3275911, %v10597_v46 }
0x17a9   : > { %v4831_v35 = vadd.f32 1.4214138, %v4799_v56  ;;  %v4556_v21 = vsel %vm4524_vm7, 1.0, %v11217_v2  ;;  %v5164_v0 = vmul.f32 %v8383_v40, %v5004_v55  ;;  %v10610_v44 = vmul.f32 0.5, %v10344_v33 }
0x17aa   : > { %v10606_v50 = vpop.eup %8386  ;;  %v10613_v39 = vand.u32 2147483647, %v10602_v16  ;;  %v5166_v38 = vmul.f32 %v8385_v12, %v5006_v63  ;;  %v4642_v61 = vadd.f32 1.0, %v4610_v27  ;;  %v4558_v34 = vsel %vm4526_vm8, 1.0, %v11217_v2 }
0x17ab   : > { %v4863_v58 = vmul.f32 %v10557_v47, %v4831_v35  ;;  %v4737_v29 = vmul.f32 1.0614054, %v10606_v50  ;;  %vm4511_vm9 = vcmp.ge.f32.partialorder %v10454_v18, 0.0  ;;  %v5055_v45 = vmul.f32 %v5023_v14, %v10485_v19 }
0x17ac   : > { %v4623_v33 = vmul.f32 0.3275911, %v10613_v39  ;;  %v5244_v15 = vadd.f32 1.0, %v5212_v52  ;;  %v5182_v26 = vsub.f32 1.0, %v5150_v20  ;;  %8390 = vrcp.f32 %v4642_v61 }
0x17ad   : > { %v4769_v42 = vadd.f32 -1.4531521, %v4737_v29  ;;  %v5196_v57 = vsub.f32 1.0, %v5164_v0  ;;  %v5025_v31 = vsub.f32 0.0, %v10520_v5  ;;  %v10626_v53 = vadd.f32 %v10307_v9, %v11231_v10 }
0x17ae   : > { %v4655_v40 = vadd.f32 1.0, %v4623_v33  ;;  %v5198_v23 = vsub.f32 1.0, %v5166_v38  ;;  %v4895_v54 = vadd.f32 -0.28449672, %v4863_v58  ;;  %v10631_v19 = vadd.f32 %v10309_v4, %v11232_v11 }
0x17af   : > { %v4801_v37 = vmul.f32 %v10606_v50, %v4769_v42  ;;  %v10634_v55 = vmul.f32 0.5, %v10431_v59  ;;  %v10639_v8 = vsel %vm4511_vm9, 1.0, %v11217_v2  ;;  %v5095_v63 = vmul.f32 1.442695, %v5055_v45 }
0x17b0   : > { %v10642_v9 = vmul.f32 0.70710677, %v10626_v53  ;;  %v5214_v10 = vmul.f32 %v5182_v26, %v4542_v24  ;;  %v5024_v12 = vsub.f32 0.0, %v10564_v62  ;;  %8392 = vrcp.f32 %v4655_v40 }
0x17b1   : > { %v4833_v56 = vadd.f32 1.4214138, %v4801_v37  ;;  %v5228_v4 = vmul.f32 %v5196_v57, %v4556_v21  ;;  %v10648_v59 = vmul.f32 0.5, %v10489_v30  ;;  %v10652_v18 = vmul.f32 0.70710677, %v10631_v19 }
0x17b2   : > { %v10645_v14 = vpop.eup %8388  ;;  %v4593_v11 = vand.u32 2147483647, %v10642_v9  ;;  %v10655_v52 = vmul.f32 %v5244_v15, %v10412_v6  ;;  %v5230_v20 = vmul.f32 %v5198_v23, %v4558_v34  ;;  %v4927_v24 = vmul.f32 %v10557_v47, %v4895_v54 }
0x17b3   : > { %v5057_v35 = vmul.f32 %v5025_v31, %v10520_v5  ;;  %8394 = vpow2.f32 %v5095_v63  ;;  %v4736_v27 = vmul.f32 1.0614054, %v10645_v14  ;;  %v10661_v30 = vand.u32 2147483647, %v10652_v18 }
0x17b4   : > { %v4625_v21 = vmul.f32 0.3275911, %v4593_v11  ;;  %v5246_v0 = vadd.f32 1.0, %v5214_v10  ;;  %vm4513_vm10 = vcmp.ge.f32.partialorder %v10507_v28, 0.0  ;;  %v4865_v38 = vmul.f32 %v10606_v50, %v4833_v56 }
0x17b5   : > { %v5056_v6 = vmul.f32 %v5024_v12, %v10564_v62  ;;  %v5260_v58 = vadd.f32 1.0, %v5228_v4  ;;  %v5039_v29 = vsub.f32 0.0, %v10613_v39  ;;  %v4624_v5 = vmul.f32 0.3275911, %v10661_v30 }
0x17b6   : > { %v4657_v61 = vadd.f32 1.0, %v4625_v21  ;;  %v10668_v34 = vpop.eup %8390  ;;  %v5262_v45 = vadd.f32 1.0, %v5230_v20  ;;  %v4959_v33 = vadd.f32 0.2548296, %v4927_v24  ;;  %v5099_v15 = vmul.f32 1.442695, %v5057_v35 }
0x17b7   : > { %v10672_v26 = vadd.f32 %v10312_v43, %v10253_v36  ;;  %v4768_v42 = vadd.f32 -1.4531521, %v4736_v27  ;;  %v4738_v57 = vmul.f32 1.0614054, %v10668_v34  ;;  %v4656_v62 = vadd.f32 1.0, %v4624_v5 }
0x17b8   : > { %8396 = vrcp.f32 %v4657_v61  ;;  %v5278_v31 = vmul.f32 %v5246_v0, %v10576_v22  ;;  %v10679_v40 = vsel %vm4513_vm10, 1.0, %v11217_v2  ;;  %v4897_v23 = vadd.f32 -0.28449672, %v4865_v38  ;;  %v8192_v61 = vld [vmem:[%s9373_s2 + $0x248] sm:$0xff]  }
0x17b9   : > { %v5097_v54 = vmul.f32 1.442695, %v5056_v6  ;;  %v5292_v37 = vmul.f32 %v5260_v58, %v10590_v41  ;;  %v4770_v63 = vadd.f32 -1.4531521, %v4738_v57  ;;  %v5071_v36 = vmul.f32 %v5039_v29, %v10613_v39  ;;  %v8190_v58 = vld [vmem:[%s9373_s2 + $0x200] sm:$0xff]  }
0x17ba   : > { %v10684_v43 = vmul.f32 0.70710677, %v10672_v26  ;;  %v10686_v10 = vpop.eup %8392  ;;  %v5294_v56 = vmul.f32 %v5262_v45, %v10610_v44  ;;  %v4991_v22 = vmul.f32 %v10557_v47, %v4959_v33  ;;  %v5041_v12 = vsub.f32 0.0, %v4593_v11  ;;  %v8191_v29 = vld [vmem:[%s9373_s2 + $0x280] sm:$0xff]  }
0x17bb   : > { %8398 = vrcp.f32 %v4656_v62  ;;  %v10691_v28 = vmul.f32 0.5, %v10524_v60  ;;  %v4800_v41 = vmul.f32 %v10645_v14, %v4768_v42  ;;  %v4751_v39 = vmul.f32 1.0614054, %v10686_v10 }
0x17bc   : > { %8400 = vpow2.f32 %v5099_v15  ;;  %v4929_v4 = vmul.f32 %v10606_v50, %v4897_v23  ;;  %v5026_v44 = vsub.f32 0.0, %v10597_v46  ;;  %v10698_v47 = vmul.f32 0.5, %v10581_v51  ;;  %v8193_v15 = vld [vmem:[%s9373_s2 + $0x2c8] sm:$0xff]  }
0x17bd   : > { %8402 = vpow2.f32 %v5097_v54  ;;  %v8395_v20 = vpop.eup %8394  ;;  %v4802_v60 = vmul.f32 %v10668_v34, %v4770_v63  ;;  %v4783_v24 = vadd.f32 -1.4531521, %v4751_v39  ;;  %v5127_v35 = vmul.f32 1.442695, %v5071_v36 }
0x17be   : > { %v10702_v27 = vand.u32 2147483647, %v10684_v43  ;;  %v5151_v21 = vmul.f32 %v8395_v20, %v4991_v22  ;;  %v5073_v0 = vmul.f32 %v5041_v12, %v4593_v11  ;;  %v5308_v38 = vpack.c.bf16 %v5292_v37, %v10655_v52  ;;  %v10715_v11 = vld [vmem:[%s9371_s23 + $0x8] sm:$0xff]  ;;  %s11249_s23 = scalar_lea.vmem [#allocation16], %s9338_s1 }
0x17bf   : > { %v5310_v6 = vpack.c.bf16 %v5294_v56, %v5278_v31  ;;  %v4832_v51 = vadd.f32 1.4214138, %v4800_v41  ;;  %v4815_v5 = vmul.f32 %v10686_v10, %v4783_v24  ;;  %v5040_v45 = vsub.f32 0.0, %v10661_v30  ;;  %v11233_v52 = vld [vmem:[#allocation29_spill] sm:$0xff]  ;;  %v11235_v41 = vld [vmem:[#allocation35_spill] sm:$0xff] }
0x17c0   : > { %v4626_v33 = vmul.f32 0.3275911, %v10702_v27  ;;  %v4961_v42 = vadd.f32 0.2548296, %v4929_v4  ;;  %v5058_v57 = vmul.f32 %v5026_v44, %v10597_v46  ;;  %vm4527_vm11 = vcmp.ge.f32.partialorder %v10602_v16, 0.0  ;;  %6464 = vmatprep.mubr.bf16.mxu0 %v5308_v38  ;;  %v8194_v46 = vld [vmem:[%s9373_s2 + $0x208] sm:$0xff]  }
0x17c1   : > { %6505 = vmatprep.mubr.bf16.mxu1 %v5310_v6  ;;  %v11234_v62 = vsub.s32 4, %v11233_v52  ;;  %v4834_v54 = vadd.f32 1.4214138, %v4802_v60  ;;  %v4847_v37 = vadd.f32 1.4214138, %v4815_v5  ;;  %8404 = vpow2.f32 %v5127_v35  ;;  %6465 = vmatmul.mubr.bf16.vlgmr.msra.gmra.mrb[56].mxu0 %v5307_v48  ;;  %v8195_v12 = vld [vmem:[%s9373_s2 + $0x288] sm:$0xff]  }
0x17c2   : > { %v10722_v23 = vpop.eup %8396  ;;  %v4658_v63 = vadd.f32 1.0, %v4626_v33  ;;  %6506 = vmatmul.mubr.bf16.vlgmr.msra.gmra.mrb[56].mxu1 %v5309_v1  ;;  %v5183_v36 = vsub.f32 1.0, %v5151_v21  ;;  %v5131_v22 = vmul.f32 1.442695, %v5073_v0  ;;  %7543 = vmatpush3.bf16.msra.mxu0 %v8190_v58  ;;  %v4864_v3 = vmul.f32 %v10645_v14, %v4832_v51  ;;  %v8198_v38 = vld [vmem:[%s9373_s2 + $0x210] sm:$0xff]   ;;  %v8200_v51 = vld [vmem:[%s9373_s2 + $0x258] sm:$0xff]  }
0x17c3   : > { %v10720_v31 = vrot.slane %v10715_v11, %v11234_v62  ;;  %v4753_v56 = vmul.f32 1.0614054, %v10722_v23  ;;  %7565 = vmatpush3.bf16.msra.mxu1 %v8191_v29  ;;  %v4879_v32 = vmul.f32 %v10686_v10, %v4847_v37  ;;  %v5072_v48 = vmul.f32 %v5040_v45, %v10661_v30  ;;  %7544 = vmatprep.subr.bf16.mxu0 %v8192_v61  ;;  %v8199_v61 = vld [vmem:[%s9373_s2 + $0x290] sm:$0xff]   ;;  %v8201_v5 = vld [vmem:[%s9373_s2 + $0x2d8] sm:$0xff]  }
0x17c4   : > { %8406 = vrcp.f32 %v4658_v63  ;;  %7566 = vmatprep.subr.bf16.mxu1 %v8193_v15  ;;  %v4993_v4 = vmul.f32 %v10606_v50, %v4961_v42  ;;  %v5101_v44 = vmul.f32 1.442695, %v5058_v57  ;;  %v10748_v20 = vsel %vm4527_vm11, 1.0, %v11217_v2 }
0x17c5   : > { %v10735_v39 = vadd.f32 %v11235_v41, %v10720_v31  ;;  %v10742_v1 = vpop.eup %8398  ;;  %v4785_v60 = vadd.f32 -1.4531521, %v4753_v56  ;;  %v4866_v24 = vmul.f32 %v10668_v34, %v4834_v54  ;;  %v4911_v35 = vadd.f32 -0.28449672, %v4879_v32  ;;  %v8203_v32 = vld [vmem:[%s9373_s2 + $0x298] sm:$0xff]  }
0x17c6   : > { %v8401_v30 = vpop.eup %8400  ;;  %v4752_v21 = vmul.f32 1.0614054, %v10742_v1  ;;  %v11236_v0 = vsub.s32 6, %v11233_v52  ;;  %v5215_v16 = vmul.f32 %v5183_v36, %v10639_v8  ;;  %8408 = vpow2.f32 %v5131_v22  ;;  %7545 = vmatpush3.bf16.msra.mxu0 %v8194_v46  ;;  %v11237_v36 = vld [vmem:[#allocation32_spill] sm:$0xff] }
0x17c7   : > { %v10758_v6 = vpop.eup %8402  ;;  %v4817_v58 = vmul.f32 %v10722_v23, %v4785_v60  ;;  %7567 = vmatpush3.bf16.msra.mxu1 %v8195_v12  ;;  %v10763_v29 = vmul.f32 0.70710677, %v10735_v39  ;;  %v4896_v45 = vadd.f32 -0.28449672, %v4864_v3  ;;  %v4943_v33 = vmul.f32 %v10686_v10, %v4911_v35  ;;  %7546 = vmatprep.subr.bf16.mxu0 %v8196_v17  ;;  %v8202_v3 = vld [vmem:[%s9373_s2 + $0x218] sm:$0xff]   ;;  %v8204_v60 = vld [vmem:[%s9373_s2 + $0x260] sm:$0xff]  }
0x17c8   : > { %v10755_v50 = vrot.slane %v10715_v11, %v11236_v0  ;;  %v4784_v15 = vadd.f32 -1.4531521, %v4752_v21  ;;  %v5129_v42 = vmul.f32 1.442695, %v5072_v48  ;;  %7568 = vmatprep.subr.bf16.mxu1 %v8197_v25  ;;  %v5153_v8 = vmul.f32 %v8401_v30, %v4993_v4 }
0x17c9   : > { %v4849_v57 = vadd.f32 1.4214138, %v4817_v58  ;;  %v5042_v62 = vsub.f32 0.0, %v10702_v27  ;;  %v10771_v54 = vand.u32 2147483647, %v10763_v29  ;;  %v5247_v22 = vadd.f32 1.0, %v5215_v16 }
0x17ca   : > { %v4898_v37 = vadd.f32 -0.28449672, %v4866_v24  ;;  %v4975_v63 = vadd.f32 0.2548296, %v4943_v33  ;;  %v4816_v46 = vmul.f32 %v10742_v1, %v4784_v15  ;;  %v10776_v56 = vadd.f32 %v11237_v36, %v10755_v50  ;;  %7547 = vmatpush3.bf16.msra.mxu0 %v8198_v38  ;;  %v8207_v33 = vld [vmem:[%s9373_s2 + $0x2a0] sm:$0xff]   ;;  %v8208_v15 = vld [vmem:[%s9373_s2 + $0x268] sm:$0xff]  }
0x17cb   : > { %8410 = vpow2.f32 %v5101_v44  ;;  %v4881_v12 = vmul.f32 %v10722_v23, %v4849_v57  ;;  %v4611_v41 = vmul.f32 0.3275911, %v10771_v54  ;;  %7569 = vmatpush3.bf16.msra.mxu1 %v8199_v61  ;;  %v8405_v48 = vpop.eup %8404  ;;  %v4928_v17 = vmul.f32 %v10645_v14, %v4896_v45  ;;  %7548 = vmatprep.subr.bf16.mxu0 %v8200_v51  ;;  %v8205_v44 = vld [vmem:[%s9373_s2 + $0x2e0] sm:$0xff]  }
0x17cc   : > { %v5007_v25 = vmul.f32 %v10686_v10, %v4975_v63  ;;  %v4848_v4 = vadd.f32 1.4214138, %v4816_v46  ;;  %8412 = vpow2.f32 %v5129_v42  ;;  %7570 = vmatprep.subr.bf16.mxu1 %v8201_v5  ;;  %v5185_v30 = vsub.f32 1.0, %v5153_v8  ;;  %v8206_v61 = vld [vmem:[%s9373_s2 + $0x220] sm:$0xff]   ;;  %v8209_v42 = vld [vmem:[%s9373_s2 + $0x2e8] sm:$0xff]  }
0x17cd   : > { %v4913_v24 = vadd.f32 -0.28449672, %v4881_v12  ;;  %v5074_v35 = vmul.f32 %v5042_v62, %v10702_v27  ;;  %v4643_v21 = vadd.f32 1.0, %v4611_v41  ;;  %v4930_v38 = vmul.f32 %v10668_v34, %v4898_v37 }
0x17ce   : > { %v10787_v0 = vpop.eup %8406  ;;  %v5167_v10 = vmul.f32 %v8405_v48, %v5007_v25  ;;  %v4880_v16 = vmul.f32 %v10742_v1, %v4848_v4  ;;  %v10792_v58 = vmul.f32 0.70710677, %v10776_v56  ;;  %v11238_v27 = vsub.s32 5, %v11233_v52  ;;  %7549 = vmatpush3.bf16.msra.mxu0 %v8202_v3 }
0x17cf   : > { %v4945_v51 = vmul.f32 %v10722_v23, %v4913_v24  ;;  %v4754_v5 = vmul.f32 1.0614054, %v10787_v0  ;;  %8414 = vrcp.f32 %v4643_v21  ;;  %7571 = vmatpush3.bf16.msra.mxu1 %v8203_v32  ;;  %v4960_v8 = vadd.f32 0.2548296, %v4928_v17  ;;  %7550 = vmatprep.subr.bf16.mxu0 %v8204_v60  ;;  %v8210_v60 = vld [vmem:[%s9373_s2 + $0x228] sm:$0xff]  }
0x17d0   : > { %v10800_v45 = vrot.slane %v10715_v11, %v11238_v27  ;;  %v5199_v57 = vsub.f32 1.0, %v5167_v10  ;;  %vm4529_vm12 = vcmp.ge.f32.partialorder %v10642_v9, 0.0  ;;  %v4912_v62 = vadd.f32 -0.28449672, %v4880_v16  ;;  %7572 = vmatprep.subr.bf16.mxu1 %v8205_v44  ;;  %v8409_v37 = vpop.eup %8408  ;;  %v8213_v16 = vld [vmem:[%s9373_s2 + $0x2f0] sm:$0xff]  }
0x17d1   : > { %v10807_v63 = vmul.f32 %v5247_v22, %v10634_v55  ;;  %v4977_v46 = vadd.f32 0.2548296, %v4945_v51  ;;  %v4786_v36 = vadd.f32 -1.4531521, %v4754_v5  ;;  %v5133_v12 = vmul.f32 1.442695, %v5074_v35 }
0x17d2   : > { %v4962_v41 = vadd.f32 0.2548296, %v4930_v38  ;;  %v5231_v3 = vmul.f32 %v5199_v57, %v10748_v20  ;;  %v4944_v32 = vmul.f32 %v10742_v1, %v4912_v62  ;;  %v10812_v48 = vand.u32 2147483647, %v10792_v58  ;;  %v11239_v55 = vld [vmem:[#allocation36_spill] sm:$0xff]  ;;  %7551 = vmatpush3.bf16.msra.mxu0 %v8206_v61  ;;  %v8211_v20 = vld [vmem:[%s9373_s2 + $0x2a8] sm:$0xff]  }
0x17d3   : > { %v5217_v17 = vmul.f32 %v5185_v30, %v10679_v40  ;;  %v5009_v25 = vmul.f32 %v10722_v23, %v4977_v46  ;;  %v4818_v4 = vmul.f32 %v10787_v0, %v4786_v36  ;;  %v10819_v22 = vadd.f32 %v11239_v55, %v10800_v45  ;;  %7573 = vmatpush3.bf16.msra.mxu1 %v8207_v33  ;;  %v8212_v40 = vld [vmem:[%s9373_s2 + $0x270] sm:$0xff]   ;;  %v8216_v46 = vld [vmem:[%s9373_s2 + $0x278] sm:$0xff]  }
0x17d4   : > { %v4992_v44 = vmul.f32 %v10645_v14, %v4960_v8  ;;  %v5263_v24 = vadd.f32 1.0, %v5231_v3  ;;  %v4976_v35 = vadd.f32 0.2548296, %v4944_v32  ;;  %v4613_v21 = vmul.f32 0.3275911, %v10812_v48  ;;  %7552 = vmatprep.subr.bf16.mxu0 %v8208_v15  ;;  %7574 = vmatprep.subr.bf16.mxu1 %v8209_v42  ;;  %v8217_v3 = vld [vmem:[%s9373_s2 + $0x2f8] sm:$0xff]  }
0x17d5   : > { %v8411_v23 = vpop.eup %8410  ;;  %vm4512_vm13 = vcmp.ge.f32.partialorder %v10540_v13, 0.0  ;;  %v5169_v30 = vmul.f32 %v8409_v37, %v5009_v25  ;;  %v4850_v38 = vadd.f32 1.4214138, %v4818_v4  ;;  %8416 = vpow2.f32 %v5133_v12  ;;  %v8215_v37 = vld [vmem:[%s9373_s2 + $0x2b0] sm:$0xff]  }
0x17d6   : > { %v10828_v10 = vmul.f32 0.70710677, %v10819_v22  ;;  %v8413_v14 = vpop.eup %8412  ;;  %v4994_v61 = vmul.f32 %v10668_v34, %v4962_v41  ;;  %v10833_v51 = vmul.f32 %v5263_v24, %v10698_v47  ;;  %v5008_v5 = vmul.f32 %v10742_v1, %v4976_v35  ;;  %7553 = vmatpush3.bf16.msra.mxu0 %v8210_v60  ;;  %v8214_v34 = vld [vmem:[%s9373_s2 + $0x230] sm:$0xff]   ;;  %v8218_v35 = vld [vmem:[%s9373_s2 + $0x238] sm:$0xff]  }
0x17d7   : > { %v4645_v27 = vadd.f32 1.0, %v4613_v21  ;;  %v5201_v33 = vsub.f32 1.0, %v5169_v30  ;;  %v4882_v15 = vmul.f32 %v10787_v0, %v4850_v38  ;;  %v11240_v42 = vsub.s32 7, %v11233_v52  ;;  %7575 = vmatpush3.bf16.msra.mxu1 %v8211_v20  ;;  %7554 = vmatprep.subr.bf16.mxu0 %v8212_v40  ;;  %v11242_v21 = vld [vmem:[#allocation38_spill] sm:$0xff]  ;;  %v8219_v40 = vld [vmem:[%s9373_s2 + $0x2b8] sm:$0xff]  }
0x17d8   : > { %v10838_v8 = vand.u32 2147483647, %v10828_v10  ;;  %v5311_v47 = vpack.c.bf16 %v10833_v51, %v10807_v63  ;;  %v4561_v1 = vsel %vm4529_vm12, 1.0, %v11217_v2  ;;  %v5168_v62 = vmul.f32 %v8413_v14, %v5008_v5  ;;  %7576 = vmatprep.subr.bf16.mxu1 %v8213_v16  ;;  %v8221_v14 = vld [vmem:[%s9373_s2 + $0x3c0] sm:$0xff]   ;;  %v8226_v63 = vld [vmem:[%s9373_s2 + $0x308] sm:$0xff]  }
0x17d9   : > { %v10843_v57 = vrot.slane %v10715_v11, %v11240_v42  ;;  %8418 = vrcp.f32 %v4645_v27  ;;  %v10853_v52 = vpop.eup %8414  ;;  %v5249_v11 = vadd.f32 1.0, %v5217_v17  ;;  %v5233_v36 = vmul.f32 %v5201_v33, %v4561_v1  ;;  %v11241_v17 = vld [vmem:[#allocation37_spill] sm:$0xff] }
0x17da   : > { %v4914_v12 = vadd.f32 -0.28449672, %v4882_v15  ;;  %v4612_v41 = vmul.f32 0.3275911, %v10838_v8  ;;  %v5152_v32 = vmul.f32 %v10758_v6, %v4992_v44  ;;  %v5154_v9 = vmul.f32 %v8411_v23, %v4994_v61  ;;  %7555 = vmatpush3.bf16.msra.mxu0 %v8214_v34  ;;  %v8220_v23 = vld [vmem:[%s9373_s2 + $0x340] sm:$0xff]   ;;  %v8227_v51 = vld [vmem:[%s9373_s2 + $0x388] sm:$0xff]  }
0x17db   : > { %v4465_v25 = vmul.f32 0.5, %v10626_v53  ;;  %v4739_v4 = vmul.f32 1.0614054, %v10853_v52  ;;  %v5265_v55 = vadd.f32 1.0, %v5233_v36  ;;  %v10863_v24 = vadd.f32 %v11241_v17, %v10843_v57  ;;  %7577 = vmatpush3.bf16.msra.mxu1 %v8215_v37  ;;  %7556 = vmatprep.subr.bf16.mxu0 %v8216_v46 }
0x17dc   : > { %v4946_v60 = vmul.f32 %v10787_v0, %v4914_v12  ;;  %v4644_v20 = vadd.f32 1.0, %v4612_v41  ;;  %vm4528_vm14 = vcmp.ge.f32.partialorder %v10652_v18, 0.0  ;;  %v5200_v6 = vsub.f32 1.0, %v5168_v62  ;;  %7578 = vmatprep.subr.bf16.mxu1 %v8217_v3 }
0x17dd   : > { %v4771_v44 = vadd.f32 -1.4531521, %v4739_v4  ;;  %v10869_v53 = vadd.f32 %v11242_v21, %v10720_v31  ;;  %v10874_v30 = vmul.f32 %v5249_v11, %v10648_v59  ;;  %v10876_v38 = vmul.f32 %v5265_v55, %v4465_v25 }
0x17de   : > { %v4978_v16 = vadd.f32 0.2548296, %v4946_v60  ;;  %8420 = vrcp.f32 %v4644_v20  ;;  %v5184_v61 = vsub.f32 1.0, %v5152_v32  ;;  %vm4514_vm15 = vcmp.ge.f32.partialorder %v10570_v49, 0.0  ;;  %7557 = vmatpush3.bf16.msra.mxu0 %v8218_v35 }
0x17df   : > { %v5186_v5 = vsub.f32 1.0, %v5154_v9  ;;  %v10881_v31 = vmul.f32 0.70710677, %v10863_v24  ;;  %v8417_v27 = vpop.eup %8416  ;;  %v5313_v33 = vpack.c.bf16 %v10876_v38, %v10874_v30  ;;  %v4560_v59 = vsel %vm4528_vm14, 1.0, %v11217_v2  ;;  %7579 = vmatpush3.bf16.msra.mxu1 %v8219_v40  ;;  %7586 = vmatprep.subr.bf16.mxu0 %v8220_v23  ;;  %v8228_v30 = vld [vmem:[%s9373_s2 + $0x350] sm:$0xff]  }
0x17e0   : > { %v5010_v15 = vmul.f32 %v10787_v0, %v4978_v16  ;;  %v10890_v42 = vmul.f32 0.70710677, %v10869_v53  ;;  %v4544_v49 = vsel %vm4512_vm13, 1.0, %v11217_v2  ;;  %v4450_v34 = vmul.f32 0.5, %v10548_v7  ;;  %7608 = vmatprep.subr.bf16.mxu1 %v8221_v14  ;;  %v8229_v38 = vld [vmem:[%s9373_s2 + $0x3d0] sm:$0xff]  }
0x17e1   : > { %v5232_v1 = vmul.f32 %v5200_v6, %v4560_v59  ;;  %v4803_v62 = vmul.f32 %v10853_v52, %v4771_v44  ;;  %v4546_v18 = vsel %vm4514_vm15, 1.0, %v11217_v2  ;;  %vm4530_vm0 = vcmp.ge.f32.partialorder %v10684_v43, 0.0  ;;  %v11243_v43 = vld [vmem:[#allocation39_spill] sm:$0xff] }
0x17e2   : > { %v5170_v0 = vmul.f32 %v8417_v27, %v5010_v15  ;;  %v10900_v37 = vand.u32 2147483647, %v10881_v31  ;;  %v5216_v13 = vmul.f32 %v5184_v61, %v4544_v49  ;;  %v5218_v11 = vmul.f32 %v5186_v5, %v4546_v18 }
0x17e3   : > { %v10902_v46 = vpop.eup %8418  ;;  %v5027_v7 = vsub.f32 0.0, %v10771_v54  ;;  %v10906_v36 = vand.u32 2147483647, %v10890_v42  ;;  %v10912_v32 = vadd.f32 %v11243_v43, %v10755_v50  ;;  %v5264_v9 = vadd.f32 1.0, %v5232_v1  ;;  %v8225_v43 = vld [vmem:[%s9373_s2 + $0x3c8] sm:$0xff]  }
0x17e4   : > { %v5202_v12 = vsub.f32 1.0, %v5170_v0  ;;  %v4741_v41 = vmul.f32 1.0614054, %v10902_v46  ;;  %v4614_v3 = vmul.f32 0.3275911, %v10900_v37  ;;  %v4562_v25 = vsel %vm4530_vm0, 1.0, %v11217_v2 }
0x17e5   : > { %v4835_v4 = vadd.f32 1.4214138, %v4803_v62  ;;  %v4627_v55 = vmul.f32 0.3275911, %v10906_v36  ;;  %v4464_v60 = vmul.f32 0.5, %v10631_v19  ;;  %v5248_v6 = vadd.f32 1.0, %v5216_v13 }
0x17e6   : > { %v5234_v20 = vmul.f32 %v5202_v12, %v4562_v25  ;;  %v4773_v17 = vadd.f32 -1.4531521, %v4741_v41  ;;  %v4646_v35 = vadd.f32 1.0, %v4614_v3  ;;  %v5250_v44 = vadd.f32 1.0, %v5218_v11  ;;  %v11244_v62 = vld [vmem:[#allocation40_spill] sm:$0xff] }
0x17e7   : > { %v4466_v21 = vmul.f32 0.5, %v10672_v26  ;;  %v4659_v40 = vadd.f32 1.0, %v4627_v55  ;;  %v5059_v16 = vmul.f32 %v5027_v7, %v10771_v54  ;;  %v10922_v14 = vmul.f32 0.70710677, %v10912_v32  ;;  %v8222_v12 = vld [vmem:[%s9373_s2 + $0x300] sm:$0xff]  }
0x17e8   : > { %v10918_v23 = vpop.eup %8420  ;;  %v5266_v50 = vadd.f32 1.0, %v5234_v20  ;;  %8422 = vrcp.f32 %v4646_v35  ;;  %v5296_v61 = vmul.f32 %v5264_v9, %v4464_v60  ;;  %v4867_v19 = vmul.f32 %v10853_v52, %v4835_v4  ;;  %v8223_v41 = vld [vmem:[%s9373_s2 + $0x380] sm:$0xff]  }
0x17e9   : > { %v4740_v5 = vmul.f32 1.0614054, %v10918_v23  ;;  %8424 = vrcp.f32 %v4659_v40  ;;  %v4805_v26 = vmul.f32 %v10902_v46, %v4773_v17  ;;  %v5280_v59 = vmul.f32 %v5248_v6, %v10691_v28  ;;  %v11245_v55 = vld [vmem:[#allocation41_spill] sm:$0xff]  ;;  %v8230_v40 = vld [vmem:[%s9373_s2 + $0x310] sm:$0xff]  }
0x17ea   : > { %v5298_v27 = vmul.f32 %v5266_v50, %v4466_v21  ;;  %v5282_v54 = vmul.f32 %v5250_v44, %v4450_v34  ;;  %v5029_v15 = vsub.f32 0.0, %v10812_v48  ;;  %v5103_v49 = vmul.f32 1.442695, %v5059_v16  ;;  %v8224_v34 = vld [vmem:[%s9373_s2 + $0x348] sm:$0xff]   ;;  %v8231_v50 = vld [vmem:[%s9373_s2 + $0x390] sm:$0xff]  }
0x17eb   : > { %v10930_v1 = vand.u32 2147483647, %v10922_v14  ;;  %v10934_v18 = vadd.f32 %v11244_v62, %v10800_v45  ;;  %v4899_v0 = vadd.f32 -0.28449672, %v4867_v19  ;;  %v4772_v13 = vadd.f32 -1.4531521, %v4740_v5 }
0x17ec   : > { %v5312_v11 = vpack.c.bf16 %v5296_v61, %v5280_v59  ;;  %v5314_v7 = vpack.c.bf16 %v5298_v27, %v5282_v54  ;;  %v4837_v3 = vadd.f32 1.4214138, %v4805_v26  ;;  %v5061_v9 = vmul.f32 %v5029_v15, %v10812_v48  ;;  %v8232_v5 = vld [vmem:[%s9373_s2 + $0x358] sm:$0xff]  }
0x17ed   : > { %v4629_v28 = vmul.f32 0.3275911, %v10930_v1  ;;  %v5043_v25 = vsub.f32 0.0, %v10906_v36  ;;  %v10944_v45 = vmul.f32 0.70710677, %v10934_v18  ;;  %v10948_v60 = vadd.f32 %v11245_v55, %v10843_v57 }
0x17ee   : > { %6546 = vmatprep.mubr.bf16.mxu0 %v5312_v11  ;;  %6587 = vmatprep.mubr.bf16.mxu1 %v5314_v7  ;;  %v4931_v48 = vmul.f32 %v10853_v52, %v4899_v0  ;;  %8426 = vpow2.f32 %v5103_v49  ;;  %v4804_v20 = vmul.f32 %v10918_v23, %v4772_v13  ;;  %v5107_v35 = vmul.f32 1.442695, %v5061_v9  ;;  %v8233_v49 = vld [vmem:[%s9373_s2 + $0x3d8] sm:$0xff]  }
0x17ef   : > { %v4661_v4 = vadd.f32 1.0, %v4629_v28  ;;  %6547 = vmatmul.mubr.bf16.vlgmr.msra.gmra.mrb[60].mxu0 %v5311_v47  ;;  %6588 = vmatmul.mubr.bf16.vlgmr.msra.gmra.mrb[60].mxu1 %v5313_v33  ;;  %v10959_v17 = vand.u32 2147483647, %v10944_v45  ;;  %v4869_v47 = vmul.f32 %v10902_v46, %v4837_v3  ;;  %v5028_v6 = vsub.f32 0.0, %v10838_v8  ;;  %v8234_v28 = vld [vmem:[%s9373_s2 + $0x318] sm:$0xff]  }
0x17f0   : > { %7587 = vmatpush3.bf16.msra.mxu0 %v8222_v12  ;;  %7609 = vmatpush3.bf16.msra.mxu1 %v8223_v41  ;;  %v5075_v21 = vmul.f32 %v5043_v25, %v10906_v36  ;;  %v10978_v19 = vmul.f32 0.70710677, %v10948_v60  ;;  %v4963_v27 = vadd.f32 0.2548296, %v4931_v48  ;;  %v4836_v26 = vadd.f32 1.4214138, %v4804_v20 }
0x17f1   : > { %8428 = vrcp.f32 %v4661_v4  ;;  %7588 = vmatprep.subr.bf16.mxu0 %v8224_v34  ;;  %7610 = vmatprep.subr.bf16.mxu1 %v8225_v43  ;;  %v4628_v61 = vmul.f32 0.3275911, %v10959_v17  ;;  %v4901_v54 = vadd.f32 -0.28449672, %v4869_v47  ;;  %v5045_v11 = vsub.f32 0.0, %v10930_v1  ;;  %v8235_v34 = vld [vmem:[%s9373_s2 + $0x398] sm:$0xff]  }
0x17f2   : > { %v10963_v57 = vpop.eup %8422  ;;  %v5135_v0 = vmul.f32 1.442695, %v5075_v21  ;;  %v10986_v7 = vand.u32 2147483647, %v10978_v19  ;;  %v4995_v12 = vmul.f32 %v10853_v52, %v4963_v27  ;;  %v4868_v41 = vmul.f32 %v10918_v23, %v4836_v26  ;;  %v8236_v52 = vld [vmem:[%s9373_s2 + $0x360] sm:$0xff]  }
0x17f3   : > { %v10968_v33 = vpop.eup %8424  ;;  %v4742_v44 = vmul.f32 1.0614054, %v10963_v57  ;;  %v4660_v36 = vadd.f32 1.0, %v4628_v61  ;;  %v5060_v3 = vmul.f32 %v5028_v6, %v10838_v8  ;;  %v4933_v43 = vmul.f32 %v10902_v46, %v4901_v54  ;;  %v8237_v4 = vld [vmem:[%s9373_s2 + $0x3e0] sm:$0xff]  }
0x17f4   : > { %v4755_v16 = vmul.f32 1.0614054, %v10968_v33  ;;  %7589 = vmatpush3.bf16.msra.mxu0 %v8226_v63  ;;  %7611 = vmatpush3.bf16.msra.mxu1 %v8227_v51  ;;  %v4630_v25 = vmul.f32 0.3275911, %v10986_v7  ;;  %vm4515_vm1 = vcmp.ge.f32.partialorder %v10763_v29, 0.0  ;;  %v5030_v20 = vsub.f32 0.0, %v10900_v37 }
0x17f5   : > { %v4774_v59 = vadd.f32 -1.4531521, %v4742_v44  ;;  %7590 = vmatprep.subr.bf16.mxu0 %v8228_v30  ;;  %7612 = vmatprep.subr.bf16.mxu1 %v8229_v38  ;;  %8430 = vrcp.f32 %v4660_v36  ;;  %v5077_v51 = vmul.f32 %v5045_v11, %v10930_v1  ;;  %v8238_v30 = vld [vmem:[%s9373_s2 + $0x320] sm:$0xff]   ;;  %v4900_v44 = vadd.f32 -0.28449672, %v4868_v41  ;;  %v8241_v1 = vld [vmem:[%s9373_s2 + $0x3e8] sm:$0xff]  }
0x17f6   : > { %v4787_v15 = vadd.f32 -1.4531521, %v4755_v16  ;;  %8432 = vpow2.f32 %v5107_v35  ;;  %v4662_v47 = vadd.f32 1.0, %v4630_v25  ;;  %v8239_v38 = vld [vmem:[%s9373_s2 + $0x3a0] sm:$0xff]   ;;  %v8240_v35 = vld [vmem:[%s9373_s2 + $0x368] sm:$0xff]   ;;  %v5044_v61 = vsub.f32 0.0, %v10959_v17 }
0x17f7   : > { %v4806_v62 = vmul.f32 %v10963_v57, %v4774_v59  ;;  %8434 = vpow2.f32 %v5135_v0  ;;  %v5105_v21 = vmul.f32 1.442695, %v5060_v3  ;;  %v11011_v26 = vmul.f32 0.5, %v10735_v39  ;;  %v8242_v39 = vld [vmem:[%s9373_s2 + $0x328] sm:$0xff]   ;;  %v8244_v41 = vld [vmem:[%s9373_s2 + $0x370] sm:$0xff]  }
0x17f8   : > { %v4819_v13 = vmul.f32 %v10968_v33, %v4787_v15  ;;  %7591 = vmatpush3.bf16.msra.mxu0 %v8230_v40  ;;  %7613 = vmatpush3.bf16.msra.mxu1 %v8231_v50  ;;  %v8427_v55 = vpop.eup %8426  ;;  %v4965_v50 = vadd.f32 0.2548296, %v4933_v43  ;;  %8436 = vrcp.f32 %v4662_v47  ;;  %v5062_v59 = vmul.f32 %v5030_v20, %v10900_v37  ;;  %v8243_v0 = vld [vmem:[%s9373_s2 + $0x3a8] sm:$0xff]   ;;  %v8245_v3 = vld [vmem:[%s9373_s2 + $0x3f0] sm:$0xff]  }
0x17f9   : > { %7592 = vmatprep.subr.bf16.mxu0 %v8232_v5  ;;  %7614 = vmatprep.subr.bf16.mxu1 %v8233_v49  ;;  %v4838_v8 = vadd.f32 1.4214138, %v4806_v62  ;;  %v5155_v6 = vmul.f32 %v8427_v55, %v4995_v12  ;;  %v5139_v15 = vmul.f32 1.442695, %v5077_v51  ;;  %v4547_v36 = vsel %vm4515_vm1, 1.0, %v11217_v2 }
0x17fa   : > { %v4851_v9 = vadd.f32 1.4214138, %v4819_v13  ;;  %v4932_v49 = vmul.f32 %v10918_v23, %v4900_v44  ;;  %8438 = vpow2.f32 %v5105_v21  ;;  %v4997_v11 = vmul.f32 %v10902_v46, %v4965_v50  ;;  %v8246_v46 = vld [vmem:[%s9373_s2 + $0x330] sm:$0xff]  }
0x17fb   : > { %v10998_v48 = vpop.eup %8428  ;;  %v4870_v5 = vmul.f32 %v10963_v57, %v4838_v8  ;;  %v5187_v37 = vsub.f32 1.0, %v5155_v6  ;;  %v5076_v29 = vmul.f32 %v5044_v61, %v10959_v17  ;;  %v5109_v25 = vmul.f32 1.442695, %v5062_v59 }
0x17fc   : > { %v4883_v63 = vmul.f32 %v10968_v33, %v4851_v9  ;;  %v4757_v40 = vmul.f32 1.0614054, %v10998_v48  ;;  %7593 = vmatpush3.bf16.msra.mxu0 %v8234_v28  ;;  %7615 = vmatpush3.bf16.msra.mxu1 %v8235_v34  ;;  %8440 = vpow2.f32 %v5139_v15  ;;  %v4964_v55 = vadd.f32 0.2548296, %v4932_v49  ;;  %v8251_v15 = vld [vmem:[%s9373_s2 + $0x3b8] sm:$0xff]  }
0x17fd   : > { %7594 = vmatprep.subr.bf16.mxu0 %v8236_v52  ;;  %7616 = vmatprep.subr.bf16.mxu1 %v8237_v4  ;;  %v4902_v28 = vadd.f32 -0.28449672, %v4870_v5  ;;  %v5046_v4 = vsub.f32 0.0, %v10986_v7  ;;  %vm4531_vm2 = vcmp.ge.f32.partialorder %v10890_v42, 0.0  ;;  %v5219_v51 = vmul.f32 %v5187_v37, %v4547_v36 }
0x17fe   : > { %v4915_v16 = vadd.f32 -0.28449672, %v4883_v63  ;;  %v4789_v27 = vadd.f32 -1.4531521, %v4757_v40  ;;  %v8247_v63 = vld [vmem:[%s9373_s2 + $0x3b0] sm:$0xff]   ;;  %vm4517_vm3 = vcmp.ge.f32.partialorder %v10792_v58, 0.0  ;;  %8442 = vpow2.f32 %v5109_v25 }
0x17ff   : > { %v11022_v13 = vpop.eup %8430  ;;  %v4934_v6 = vmul.f32 %v10963_v57, %v4902_v28  ;;  %v4563_v50 = vsel %vm4531_vm2, 1.0, %v11217_v2  ;;  %v5078_v61 = vmul.f32 %v5046_v4, %v10986_v7  ;;  %v5251_v36 = vadd.f32 1.0, %v5219_v51 }
0x1800   : > { %v4947_v54 = vmul.f32 %v10968_v33, %v4915_v16  ;;  %v4821_v62 = vmul.f32 %v10998_v48, %v4789_v27  ;;  %7595 = vmatpush3.bf16.msra.mxu0 %v8238_v30  ;;  %7617 = vmatpush3.bf16.msra.mxu1 %v8239_v38  ;;  %v4756_v43 = vmul.f32 1.0614054, %v11022_v13  ;;  %v8433_v9 = vpop.eup %8432  ;;  %v8248_v38 = vld [vmem:[%s9373_s2 + $0x378] sm:$0xff]   ;;  %v4549_v37 = vsel %vm4517_vm3, 1.0, %v11217_v2 }
0x1801   : > { %7596 = vmatprep.subr.bf16.mxu0 %v8240_v35  ;;  %7618 = vmatprep.subr.bf16.mxu1 %v8241_v1  ;;  %v8435_v17 = vpop.eup %8434  ;;  %v5157_v47 = vmul.f32 %v8433_v9, %v4997_v11  ;;  %v8249_v35 = vld [vmem:[%s9373_s2 + $0x3f8] sm:$0xff]   ;;  %v4996_v1 = vmul.f32 %v10918_v23, %v4964_v55  ;;  %v4467_v11 = vmul.f32 0.5, %v10869_v53  ;;  %v5283_v9 = vmul.f32 %v5251_v36, %v11011_v26 }
0x1802   : > { %v4979_v12 = vadd.f32 0.2548296, %v4947_v54  ;;  %v4853_v34 = vadd.f32 1.4214138, %v4821_v62  ;;  %v4788_v20 = vadd.f32 -1.4531521, %v4756_v43  ;;  %v11040_v40 = vpop.eup %8436 }
0x1803   : > { %v4758_v59 = vmul.f32 1.0614054, %v11040_v40  ;;  %v8250_v54 = vld [vmem:[%s9373_s2 + $0x338] sm:$0xff]   ;;  %v5189_v49 = vsub.f32 1.0, %v5157_v47  ;;  %vm4533_vm4 = vcmp.ge.f32.partialorder %v10922_v14, 0.0  ;;  %vm4516_vm6 = vcmp.ge.f32.partialorder %v10828_v10, 0.0 }
0x1804   : > { %v5011_v52 = vmul.f32 %v10968_v33, %v4979_v12  ;;  %v4885_v8 = vmul.f32 %v10998_v48, %v4853_v34  ;;  %7597 = vmatpush3.bf16.msra.mxu0 %v8242_v39  ;;  %7619 = vmatpush3.bf16.msra.mxu1 %v8243_v0  ;;  %v5137_v33 = vmul.f32 1.442695, %v5076_v29  ;;  %v4820_v21 = vmul.f32 %v11022_v13, %v4788_v20  ;;  %v8439_v42 = vpop.eup %8438 }
0x1805   : > { %7598 = vmatprep.subr.bf16.mxu0 %v8244_v41  ;;  %7620 = vmatprep.subr.bf16.mxu1 %v8245_v3  ;;  %v4966_v39 = vadd.f32 0.2548296, %v4934_v6  ;;  %v4790_v0 = vadd.f32 -1.4531521, %v4758_v59  ;;  %v5141_v29 = vmul.f32 1.442695, %v5078_v61  ;;  %v5156_v41 = vmul.f32 %v8439_v42, %v4996_v1 }
0x1806   : > { %v5171_v30 = vmul.f32 %v8435_v17, %v5011_v52  ;;  %v4917_v44 = vadd.f32 -0.28449672, %v4885_v8  ;;  %v4852_v27 = vadd.f32 1.4214138, %v4820_v21  ;;  %8444 = vpow2.f32 %v5137_v33  ;;  %v8441_v43 = vpop.eup %8440 }
0x1807   : > { %v4822_v34 = vmul.f32 %v11040_v40, %v4790_v0  ;;  %v5221_v25 = vmul.f32 %v5189_v49, %v4549_v37  ;;  %v4998_v58 = vmul.f32 %v10963_v57, %v4966_v39  ;;  %8446 = vpow2.f32 %v5141_v29 }
0x1808   : > { %v5203_v16 = vsub.f32 1.0, %v5171_v30  ;;  %v4949_v5 = vmul.f32 %v10998_v48, %v4917_v44  ;;  %7599 = vmatpush3.bf16.msra.mxu0 %v8246_v46  ;;  %7621 = vmatpush3.bf16.msra.mxu1 %v8247_v63  ;;  %v4884_v23 = vmul.f32 %v11022_v13, %v4852_v27  ;;  %v5188_v17 = vsub.f32 1.0, %v5156_v41  ;;  %v8443_v26 = vpop.eup %8442 }
0x1809   : > { %7600 = vmatprep.subr.bf16.mxu0 %v8248_v38  ;;  %7622 = vmatprep.subr.bf16.mxu1 %v8249_v35  ;;  %v4854_v46 = vadd.f32 1.4214138, %v4822_v34  ;;  %v5253_v63 = vadd.f32 1.0, %v5221_v25  ;;  %v4565_v51 = vsel %vm4533_vm4, 1.0, %v11217_v2  ;;  %v5158_v14 = vmul.f32 %v8443_v26, %v4998_v58 }
0x180a   : > { %v5235_v62 = vmul.f32 %v5203_v16, %v4563_v50  ;;  %v4981_v7 = vadd.f32 0.2548296, %v4949_v5  ;;  %v4916_v28 = vadd.f32 -0.28449672, %v4884_v23  ;;  %v4453_v38 = vmul.f32 0.5, %v10776_v56 }
0x180b   : > { %v4886_v20 = vmul.f32 %v11040_v40, %v4854_v46  ;;  %v4548_v35 = vsel %vm4516_vm6, 1.0, %v11217_v2  ;;  %v4469_v6 = vmul.f32 0.5, %v10912_v32  ;;  %vm4532_vm7 = vcmp.ge.f32.partialorder %v10944_v45, 0.0 }
0x180c   : > { %v5267_v12 = vadd.f32 1.0, %v5235_v62  ;;  %v5013_v3 = vmul.f32 %v10998_v48, %v4981_v7  ;;  %7601 = vmatpush3.bf16.msra.mxu0 %v8250_v54  ;;  %7623 = vmatpush3.bf16.msra.mxu1 %v8251_v15  ;;  %v4948_v4 = vmul.f32 %v11022_v13, %v4916_v28  ;;  %v5220_v44 = vmul.f32 %v5188_v17, %v4548_v35  ;;  %v7228_v28 = vld [vmem:[%s11246_s16] ss:$0 sm:$0xff] }
0x180d   : > { %v4918_v30 = vadd.f32 -0.28449672, %v4886_v20  ;;  %v5285_v61 = vmul.f32 %v5253_v63, %v4453_v38  ;;  %vm4518_vm8 = vcmp.ge.f32.partialorder %v10881_v31, 0.0  ;;  %v4564_v27 = vsel %vm4532_vm7, 1.0, %v11217_v2 }
0x180e   : > { %v5299_v52 = vmul.f32 %v5267_v12, %v4467_v11  ;;  %v5173_v53 = vmul.f32 %v8441_v43, %v5013_v3  ;;  %v4980_v8 = vadd.f32 0.2548296, %v4948_v4  ;;  %v5252_v10 = vadd.f32 1.0, %v5220_v44 }
0x180f   : > { %v4950_v16 = vmul.f32 %v11040_v40, %v4918_v30  ;;  %v4452_v15 = vmul.f32 0.5, %v10819_v22  ;;  %v4550_v36 = vsel %vm4518_vm8, 1.0, %v11217_v2  ;;  %v4468_v49 = vmul.f32 0.5, %v10934_v18 }
0x1810   : > { %v5315_v48 = vpack.c.bf16 %v5299_v52, %v5283_v9  ;;  %v5205_v55 = vsub.f32 1.0, %v5173_v53  ;;  %v5012_v57 = vmul.f32 %v11022_v13, %v4980_v8  ;;  %v8445_v33 = vpop.eup %8444  ;;  %v5190_v13 = vsub.f32 1.0, %v5158_v14 }
0x1811   : > { %v4982_v56 = vadd.f32 0.2548296, %v4950_v16  ;;  %v8447_v45 = vpop.eup %8446  ;;  %vm4534_vm9 = vcmp.ge.f32.partialorder %v10978_v19, 0.0  ;;  %v5284_v39 = vmul.f32 %v5252_v10, %v4452_v15  ;;  %v4454_v22 = vmul.f32 0.5, %v10863_v24 }
0x1812   : > { %v5237_v47 = vmul.f32 %v5205_v55, %v4565_v51  ;;  %v5172_v50 = vmul.f32 %v8445_v33, %v5012_v57  ;;  %v5222_v62 = vmul.f32 %v5190_v13, %v4550_v36  ;;  %v4566_v0 = vsel %vm4534_vm9, 1.0, %v11217_v2 }
0x1813   : > { %v5014_v32 = vmul.f32 %v11040_v40, %v4982_v56  ;;  %v4470_v12 = vmul.f32 0.5, %v10948_v60 }
0x1814   : > { %v5269_v21 = vadd.f32 1.0, %v5237_v47  ;;  %v5204_v5 = vsub.f32 1.0, %v5172_v50  ;;  %v5254_v37 = vadd.f32 1.0, %v5222_v62 }
0x1815   : > { %v5174_v42 = vmul.f32 %v8447_v45, %v5014_v32 }
0x1816   : > { %v5301_v1 = vmul.f32 %v5269_v21, %v4469_v6  ;;  %v5236_v54 = vmul.f32 %v5204_v5, %v4564_v27  ;;  %v5286_v18 = vmul.f32 %v5254_v37, %v4454_v22 }
0x1817   : > { %v5206_v23 = vsub.f32 1.0, %v5174_v42 }
0x1818   : > { %v5317_v59 = vpack.c.bf16 %v5301_v1, %v5285_v61  ;;  %v5268_v31 = vadd.f32 1.0, %v5236_v54 }
0x1819   : > { %v5238_v40 = vmul.f32 %v5206_v23, %v4566_v0 }
0x181a   : > { %v5300_v7 = vmul.f32 %v5268_v31, %v4468_v49 }
0x181b   : > { %v5270_v29 = vadd.f32 1.0, %v5238_v40 }
0x181c   : > { %v5316_v11 = vpack.c.bf16 %v5300_v7, %v5284_v39 }
0x181d   : > { %v5302_v41 = vmul.f32 %v5270_v29, %v4470_v12 }
0x181e   : > { %6628 = vmatprep.mubr.bf16.mxu0 %v5316_v11 }
0x181f   : > { %6629 = vmatmul.mubr.bf16.vlgmr.msra.gmra.mrb[64].mxu0 %v5315_v48  ;;  %v5318_v19 = vpack.c.bf16 %v5302_v41, %v5286_v18 }
0x1821   : > { %6669 = vmatprep.mubr.bf16.mxu1 %v5318_v19 }
0x1822   : > { %6670 = vmatmul.mubr.bf16.vlgmr.msra.gmra.mrb[64].mxu1 %v5317_v59 }
0x1855   : > { %v7470_v3 = vpop.f32.mrb[52].mxu0 }
0x1856   : > { %v7471_v34 = vpop.f32.mrb[53].mxu0 }
0x1857   : > { %v7472_v2 = vadd.f32 %v7471_v34, %v7470_v3  ;;  %v7473_v43 = vpop.f32.mrb[54].mxu0 }
0x1858   : > { %v7474_v9 = vpop.f32.mrb[55].mxu0 }
0x1859   : > { %v6385_v52 = vadd.f32 %v7472_v2, %v7228_v28  ;;  %v7475_v24 = vadd.f32 %v7474_v9, %v7473_v43  ;;  %v11248_v2 = vld [vmem:[#allocation31_spill] sm:$0xff] }
0x185a   : > { %v7492_v25 = vpop.f32.mrb[52].mxu1 }
0x185b   : > { %v7493_v58 = vpop.f32.mrb[53].mxu1  ;;  %v6388_v4 = vadd.f32 %v7475_v24, %v7228_v28  ;;  %v11247_v28 = vld [vmem:[#allocation30_spill] sm:$0xff] }
0x185c   : > { %v7494_v60 = vadd.f32 %v7493_v58, %v7492_v25  ;;  %v7495_v53 = vpop.f32.mrb[54].mxu1 }
0x185d   : > { %v7496_v46 = vpop.f32.mrb[55].mxu1 }
0x185e   : > { %v6426_v48 = vadd.f32 %v7494_v60, %v6385_v52  ;;  %v7497_v17 = vadd.f32 %v7496_v46, %v7495_v53 }
0x1860   : > { %v6429_v55 = vadd.f32 %v7497_v17, %v6388_v4 }
0x1894   : > { %v7514_v8 = vpop.f32.mrb[56].mxu0 }
0x1895   : > { %v7536_v20 = vpop.f32.mrb[56].mxu1  ;;  %v7515_v26 = vpop.f32.mrb[57].mxu0 }
0x1896   : > { %v7537_v63 = vpop.f32.mrb[57].mxu1  ;;  %v7516_v51 = vadd.f32 %v7515_v26, %v7514_v8  ;;  %v7517_v47 = vpop.f32.mrb[58].mxu0 }
0x1897   : > { %v7538_v14 = vadd.f32 %v7537_v63, %v7536_v20  ;;  %v7539_v57 = vpop.f32.mrb[58].mxu1  ;;  %v7518_v30 = vpop.f32.mrb[59].mxu0 }
0x1898   : > { %v7540_v33 = vpop.f32.mrb[59].mxu1  ;;  %v6467_v38 = vadd.f32 %v7516_v51, %v6426_v48  ;;  %v7519_v35 = vadd.f32 %v7518_v30, %v7517_v47 }
0x1899   : > { %v7541_v6 = vadd.f32 %v7540_v33, %v7539_v57  ;;  %v7358_v57 = vld [vmem:[%s744_s18] ss:$0 sm:$0xff] }
0x189a   : > { %v6508_v44 = vadd.f32 %v7538_v14, %v6467_v38  ;;  %v6470_v21 = vadd.f32 %v7519_v35, %v6429_v55  ;;  %v7357_v14 = vld [vmem:[%s11249_s23] ss:$0 sm:$0xff] }
0x189c   : > { %v6511_v50 = vadd.f32 %v7541_v6, %v6470_v21 }
0x18c2   : > { %v7558_v16 = vpop.f32.mrb[60].mxu0  ;;  %v7580_v61 = vpop.f32.mrb[60].mxu1 }
0x18c3   : > { %v7559_v13 = vpop.f32.mrb[61].mxu0  ;;  %v7581_v1 = vpop.f32.mrb[61].mxu1 }
0x18c4   : > { %v7560_v5 = vadd.f32 %v7559_v13, %v7558_v16  ;;  %v7582_v56 = vadd.f32 %v7581_v1, %v7580_v61  ;;  %v7561_v27 = vpop.f32.mrb[62].mxu0  ;;  %v7583_v10 = vpop.f32.mrb[62].mxu1 }
0x18c5   : > { %v7562_v59 = vpop.f32.mrb[63].mxu0  ;;  %v7584_v54 = vpop.f32.mrb[63].mxu1 }
0x18c6   : > { %v6549_v32 = vadd.f32 %v7560_v5, %v6508_v44  ;;  %v7563_v45 = vadd.f32 %v7562_v59, %v7561_v27  ;;  %v7585_v15 = vadd.f32 %v7584_v54, %v7583_v10 }
0x18c8   : > { %v6590_v36 = vadd.f32 %v7582_v56, %v6549_v32  ;;  %v6552_v49 = vadd.f32 %v7563_v45, %v6511_v50 }
0x18ca   : > { %v6593_v62 = vadd.f32 %v7585_v15, %v6552_v49 }
0x18f2   : > { %v7602_v31 = vpop.f32.mrb[64].mxu0 }
0x18f3   : > { %v7603_v42 = vpop.f32.mrb[65].mxu0 }
0x18f4   : > { %v7604_v39 = vadd.f32 %v7603_v42, %v7602_v31  ;;  %v7605_v7 = vpop.f32.mrb[66].mxu0 }
0x18f5   : > { %v7606_v23 = vpop.f32.mrb[67].mxu0  ;;  %v7624_v40 = vpop.f32.mrb[64].mxu1 }
0x18f6   : > { %v6631_v0 = vadd.f32 %v7604_v39, %v6590_v36  ;;  %v7607_v37 = vadd.f32 %v7606_v23, %v7605_v7  ;;  %v7625_v22 = vpop.f32.mrb[65].mxu1 }
0x18f7   : > { %v7626_v12 = vadd.f32 %v7625_v22, %v7624_v40  ;;  %v7627_v29 = vpop.f32.mrb[66].mxu1 }
0x18f8   : > { %v6634_v11 = vadd.f32 %v7607_v37, %v6593_v62  ;;  %v7628_v18 = vpop.f32.mrb[67].mxu1 }
0x18f9   : > { %v6672_v41 = vadd.f32 %v7626_v12, %v6631_v0  ;;  %v7629_v19 = vadd.f32 %v7628_v18, %v7627_v29 }
0x18fb   : > { %v6675_v3 = vadd.f32 %v7629_v19, %v6634_v11  ;;  %v6678_v34 = vadd.f32 %v6672_v41, %v11247_v28 }
0x18fd   : > { %6682 = vadd.xlane.f32.xlu0 %v6678_v34  ;;  %v6679_v43 = vadd.f32 %v6675_v3, %v11248_v2 }
0x18ff   : > { %v6684_v9 = vsel %vm1252_vm5, %v6679_v43, 0.0 }
0x1900   : > { %6685 = vadd.xlane.f32.xlu1 %v6684_v9 }
0x198a   : > { %v6683_v25 = vpop.xlane.xlu0 %6682 }
0x198b   : > { %v6687_v52 = vmul.f32 0.0078125, %v6683_v25 }
0x198d   : > { %v6689_v24 = vsub.f32 %v6678_v34, %v6687_v52  ;;  %v6686_v58 = vpop.xlane.xlu1 %6685 }
0x198e   : > { %v6688_v60 = vmul.f32 0.0078125, %v6686_v58 }
0x198f   : > { %v6691_v53 = vmul.f32 %v6689_v24, %v6689_v24 }
0x1990   : > { %v6690_v4 = vsub.f32 %v6679_v43, %v6688_v60 }
0x1991   : > { %6693 = vadd.xlane.f32.xlu0 %v6691_v53 }
0x1992   : > { %v6692_v46 = vmul.f32 %v6690_v4, %v6690_v4 }
0x1994   : > { %v6695_v48 = vsel %vm1252_vm5, %v6692_v46, 0.0 }
0x1995   : > { %6696 = vadd.xlane.f32.xlu0 %v6695_v48 }
0x1a1e   : > { %v6694_v17 = vpop.xlane.xlu0 %6693 }
0x1a1f   : > { %v6698_v55 = vmul.f32 0.0078125, %v6694_v17 }
0x1a21   : > { %v6700_v8 = vadd.f32 1e-05, %v6698_v55 }
0x1a22   : > { %v6697_v20 = vpop.xlane.xlu0 %6696 }
0x1a23   : > { %8448 = vrsqrt.f32 %v6700_v8  ;;  %v6699_v26 = vmul.f32 0.0078125, %v6697_v20 }
0x1a25   : > { %v6701_v63 = vadd.f32 1e-05, %v6699_v26 }
0x1a27   : > { %8450 = vrsqrt.f32 %v6701_v63 }
0x1a2d   : > { %v8449_v51 = vpop.eup %8448 }
0x1a2e   : > { %v6704_v47 = vmul.f32 %v8449_v51, %v6689_v24 }
0x1a30   : > { %v6712_v30 = vmul.f32 %v7357_v14, %v6704_v47 }
0x1a31   : > { %v8451_v33 = vpop.eup %8450 }
0x1a32   : > { %v6720_v38 = vadd.f32 %v7358_v57, %v6712_v30  ;;  %v6705_v35 = vmul.f32 %v8451_v33, %v6690_v4 }
0x1a34   : > { %6722 = vst [vmem:[%s11202_s29] sm:$0xff] %v6720_v38  ;;  %v6713_v6 = vmul.f32 %v7357_v14, %v6705_v35 }
0x1a36   : > { %v6721_v44 = vadd.f32 %v7358_v57, %v6713_v6 }
0x1a38   : > { %6723 = vst [vmem:[%s11202_s29 + $0x8] sm:$0x3] %v6721_v44 }
0x1a39 PF: > { %s11250_s16 = sld [smem:[#allocation27_spill]]  ;;  %s11251_s14 = sld [smem:[#allocation25_spill]] }
0x1a3a   : > { %s11252_s15 = sld [smem:[#allocation28_spill]]  ;;  %s11253_s29 = smov %s8831_s30 }
0x1a3f   : > { %p39_p8 = scmp.ge.s32.totalorder %s11250_s16, 8   ;;  %s11254_s30 = smov %s11251_s14 }
0x1a41   :  { %41 = sbr.rel (!%p39_p8) target bundleno = 22 (0x16), region = 239 }
0x1a48   :  { %6735 = vsyncpa [#allocation3], 1 }
0x1a49   :  { %6737 = vsyncpa [#allocation3 + $0x1], 1 }
0x1a4a   :  { %6738 = vsyncpa [#allocation5], 1 }
0x1a4b   :  { %6740 = vsyncpa [#allocation5 + $0x1], 1 }
0x1a4c   :  { %6741 = vsyncpa [#allocation8], 1 }
0x1a4d   :  { %6743 = vsyncpa [#allocation8 + $0x1], 1 }
0x1a4e   :  { %6744 = vsyncpa [#allocation11], 1 }
0x1a4f   :  { %6746 = vsyncpa [#allocation11 + $0x1], 1 }
0x1a50   :  { %6747 = vsyncpa [#allocation14], 1 }
0x1a51   :  { %6749 = vsyncpa [#allocation14 + $0x1], 1 }
0x1a52   :  { %6750 = vsyncpa [#allocation17], 1 }
0x1a53   :  { %6752 = vsyncpa [#allocation17 + $0x1], 1 }

</bundles_post_ra>
